<compile_context>
chip_gen: v6e
topology: v6e:2x2x1
jax: 0.10.0
libtpu: 0.0.40
codegen_flags: <defaults>
</compile_context>

<pallas_src>
import functools

import jax
import jax.numpy as jnp
import numpy as np
from jax.experimental import pallas as pl
from jax.experimental.pallas import tpu as pltpu


def mha_kernel(q_ref, k_ref, v_ref,
               wq_ref, bq_ref, wk_ref, bk_ref,
               wv_ref, bv_ref, wo_ref, bo_ref,
               out_ref, *, num_heads, head_dim, approx_recip):
    Bt, Lq, D = q_ref.shape
    Lk = k_ref.shape[1]
    H, Hd = num_heads, head_dim
    in_dtype = q_ref.dtype  # MXU operands stay in the input/compute dtype.

    # ---- input projections over all Bt*L rows (fat MXU M dim) -------------
    q2 = q_ref[...].reshape(Bt * Lq, D)
    k2 = k_ref[...].reshape(Bt * Lk, D)
    v2 = v_ref[...].reshape(Bt * Lk, D)

    # The 1/sqrt(head_dim) scale is already folded into wq/bq (prepare_params).
    q = (jnp.dot(q2, wq_ref[...], preferred_element_type=jnp.float32)
         + bq_ref[...]).astype(in_dtype)
    k = (jnp.dot(k2, wk_ref[...], preferred_element_type=jnp.float32)
         + bk_ref[...]).astype(in_dtype)
    v = (jnp.dot(v2, wv_ref[...], preferred_element_type=jnp.float32)
         + bv_ref[...]).astype(in_dtype)

    # ---- split heads once: (Bt*L, D) -> (Bt*H, L, Hd) ----------------------
    # TODO(synk): drop these relayouts once Mosaic dot_general supports
    # non-leading batch dims, so attention can run directly on the
    # (Bt, L, H, Hd) layout ('bqhd,bkhd->bhqk') with no physical transpose.
    def split_heads(x, L):
        return x.reshape(Bt, L, H, Hd).swapaxes(1, 2).reshape(Bt * H, L, Hd)

    qh = split_heads(q, Lq)
    kh = split_heads(k, Lk)
    vh = split_heads(v, Lk)

    # ---- attention: one batched dot_general over (batch*head) -------------
    s = jnp.einsum('nqd,nkd->nqk', qh, kh, preferred_element_type=jnp.float32)
    # TODO(synk): optional attention mask (mask=None path implemented here).
    s_max = jnp.max(s, axis=-1, keepdims=True)
    p = jnp.exp(s - s_max)                               # un-normalized, f32
    l = jnp.sum(p, axis=-1, keepdims=True)               # (n, Lq, 1)

    # PV with un-normalized probabilities; normalize afterwards on the small
    # (n, Lq, Hd) context instead of the (n, Lq, Lk) score tensor.
    # TODO(synk): flash-style Lk streaming (online softmax over an Lk grid
    # axis) once bt*H*Lq*Lk*4 approaches the VMEM budget.
    ctx = jnp.einsum('nqk,nkd->nqd', p.astype(in_dtype), vh,
                     preferred_element_type=jnp.float32)
    if approx_recip:
        ctx = ctx * pl.reciprocal(l, approx=True)        # EUP slot, off VALU
    else:
        ctx = ctx / l
    # Dropout is identity in eval mode.

    # ---- merge heads back to concat layout and apply output projection ----
    ctx = ctx.astype(in_dtype).reshape(Bt, H, Lq, Hd).swapaxes(1, 2)
    ctx = ctx.reshape(Bt * Lq, D)
    out = jnp.dot(ctx, wo_ref[...], preferred_element_type=jnp.float32) + bo_ref[...]
    out_ref[...] = out.reshape(Bt, Lq, D).astype(out_ref.dtype)


def prepare_params(params, *, num_heads):
    """One-time parameter transform: fold 1/sqrt(head_dim) into wq/bq."""
    wq, bq, wk, bk, wv, bv, wo, bo = params
    head_dim = wq.shape[1] // num_heads
    scale = jnp.asarray(float(head_dim) ** -0.5, wq.dtype)
    return (wq * scale, bq * scale, wk, bk, wv, bv, wo, bo)


def _vmem_capacity_bytes():
    """Physical VMEM per TensorCore for the current chip generation."""
    try:
        return int(pltpu.get_tpu_info().vmem_capacity_bytes)
    except Exception:
        return 64 * 2**20  # conservative default (v7x per-core VMEM)


def _pick_batch_tile(B, Lq, Lk, D, num_heads, itemsize, vmem_budget):
    """Largest divisor of B whose per-step working set fits `vmem_budget`.

    Capped at B//2 so both v7x TensorCores get grid steps, and at
    bt*max(Lq,Lk) <= 1024 (the MXU M dimension saturates well before that).
    """
    max_bt = max(1, B // 2)
    best = 1
    for bt in range(1, max_bt + 1):
        if B % bt:
            continue
        rows = bt * (Lq + 2 * Lk)
        n_scores = bt * num_heads * Lq * Lk
        live = (rows * D * (4 + itemsize)               # f32 q/k/v proj + low-prec copies
                + n_scores * (8 + itemsize)             # s, exp(s) f32 + low-prec p
                + 2 * bt * Lq * D * 4                   # ctx + out accumulators (f32)
                + 2 * (rows + bt * Lq) * D * itemsize)  # double-buffered streamed tiles
        if bt * max(Lq, Lk) <= 1024 and live <= vmem_budget:
            best = bt
    return best


def _mha_call(q, k, v, wq, bq, wk, bk, wv, bv, wo, bo, *,
              num_heads, head_dim, bt, out_dtype, vmem_limit,
              single_buffer_weights, approx_recip):
    B, Lq, D = q.shape
    Lk = k.shape[1]
    grid = (B // bt,)

    kernel = functools.partial(mha_kernel, num_heads=num_heads,
                               head_dim=head_dim, approx_recip=approx_recip)

    def seq_spec(L):
        return pl.BlockSpec((bt, L, D), lambda b: (b, 0, 0))

    # Grid-invariant weights/biases: single-buffer them (constant index_map,
    # so double-buffering only doubles their VMEM footprint).
    const_kwargs = {}
    if single_buffer_weights:
        const_kwargs = dict(pipeline_mode=pl.Buffered(buffer_count=1))
    w_spec = pl.BlockSpec((D, D), lambda b: (0, 0), **const_kwargs)
    b_spec = pl.BlockSpec((1, D), lambda b: (0, 0), **const_kwargs)

    # TODO(synk): tile the (D, D) weights over a K/N grid axis (and/or store
    # them quantized) once 4*D*D*itemsize stops fitting v7x's 64 MiB VMEM.
    return pl.pallas_call(
        kernel,
        out_shape=jax.ShapeDtypeStruct((B, Lq, D), out_dtype),
        grid_spec=pltpu.PrefetchScalarGridSpec(
            num_scalar_prefetch=0,
            grid=grid,
            in_specs=[seq_spec(Lq), seq_spec(Lk), seq_spec(Lk),
                      w_spec, b_spec, w_spec, b_spec,
                      w_spec, b_spec, w_spec, b_spec],
            out_specs=seq_spec(Lq),
        ),
        compiler_params=pltpu.CompilerParams(
            dimension_semantics=("parallel",),
            vmem_limit_bytes=vmem_limit),
    )(q, k, v, wq, bq, wk, bk, wv, bv, wo, bo)


def multi_head_attention(query, key, value, params, *, num_heads,
                         batch_tile=None, compute_dtype=None,
                         approx_recip=True):
    """query: (B, Lq, D); key/value: (B, Lk, D). params from prepare_params().
    Returns (B, Lq, D) in the original query dtype."""
    B, Lq, D = query.shape
    Lk = key.shape[1]
    head_dim = D // num_heads
    assert head_dim * num_heads == D
    out_dtype = query.dtype

    wq, bq, wk, bk, wv, bv, wo, bo = params  # weights stored as (in, out)

    if compute_dtype is not None and query.dtype != compute_dtype:
        # Optional low-precision MXU feed (e.g. bf16) for f32 callers:
        # halves streamed-activation / weight bytes and boosts MXU throughput.
        query, key, value = (x.astype(compute_dtype) for x in (query, key, value))
        wq, wk, wv, wo = (w.astype(compute_dtype) for w in (wq, wk, wv, wo))

    itemsize = query.dtype.itemsize
    capacity = _vmem_capacity_bytes()

    bt = batch_tile or _pick_batch_tile(B, Lq, Lk, D, num_heads,
                                        itemsize, capacity // 2)
    assert B % bt == 0

    # Tight VMEM request: single-buffered weights + double-buffered streamed
    # tiles + live f32 temporaries, ~30% headroom, capped below physical VMEM.
    w_bytes = (4 * D * D + 4 * D) * wq.dtype.itemsize
    rows = bt * (Lq + 2 * Lk)
    io_bytes = 2 * (rows + bt * Lq) * D * itemsize
    tmp_bytes = (rows * D * (4 + itemsize)
                 + bt * num_heads * Lq * Lk * (8 + itemsize)
                 + 2 * bt * Lq * D * 4)
    need = int(1.3 * (w_bytes + io_bytes + tmp_bytes))
    cap = capacity - 8 * 2**20           # e.g. ~56 MiB on v7x, ~120 MiB on v5e/v6e
    vmem_limit = max(min(need, cap), min(32 * 2**20, cap))

    args = (query, key, value, wq, bq, wk, bk, wv, bv, wo, bo)
    kwargs = dict(num_heads=num_heads, head_dim=head_dim, bt=bt,
                  out_dtype=out_dtype, vmem_limit=vmem_limit,
                  approx_recip=approx_recip)
    try:
        return _mha_call(*args, single_buffer_weights=True, **kwargs)
    except Exception:
        # TODO(synk): remove fallback once pipeline_mode=pl.Buffered(1) on
        # top-level pallas_call BlockSpecs is guaranteed by the installed JAX.
        return _mha_call(*args, single_buffer_weights=False, **kwargs)


def reference(query, key, value, params, *, num_heads):
    """Pure-JAX reference matching the PyTorch module (unscaled params)."""
    wq, bq, wk, bk, wv, bv, wo, bo = params
    B, Lq, D = query.shape
    Lk = key.shape[1]
    Hd = D // num_heads
    scale = float(Hd) ** -0.5

    def proj(x, w, b):
        return x @ w + b  # w is (in, out)

    q = proj(query, wq, bq).reshape(B, Lq, num_heads, Hd).transpose(0, 2, 1, 3)
    k = proj(key, wk, bk).reshape(B, Lk, num_heads, Hd).transpose(0, 2, 1, 3)
    v = proj(value, wv, bv).reshape(B, Lk, num_heads, Hd).transpose(0, 2, 1, 3)
    q = q * scale
    attn = q @ jnp.swapaxes(k, -1, -2)
    attn = jax.nn.softmax(attn, axis=-1)
    out = attn @ v
    out = out.transpose(0, 2, 1, 3).reshape(B, Lq, D)
    return proj(out, wo, bo)


if __name__ == "__main__":
    B, Lq, Lk, D, H = 2, 8, 8, 32, 8

    key0 = jax.random.PRNGKey(0)
    ks = jax.random.split(key0, 11)

    query = jax.random.normal(ks[0], (B, Lq, D), jnp.float32)
    key_t = jax.random.normal(ks[1], (B, Lk, D), jnp.float32)
    value = jax.random.normal(ks[2], (B, Lk, D), jnp.float32)

    # Deterministic synthetic parameters, nn.Linear-style, stored as
    # (in_dim, out_dim) (i.e. W.T) so the kernel computes x @ W + b.
    def make_linear(kw, kb):
        bound = 1.0 / np.sqrt(D)
        w = jax.random.uniform(kw, (D, D), jnp.float32, -bound, bound)
        b = jax.random.uniform(kb, (1, D), jnp.float32, -bound, bound)
        return w, b

    wq, bq = make_linear(ks[3], ks[4])
    wk, bk = make_linear(ks[5], ks[6])
    wv, bv = make_linear(ks[7], ks[8])
    wo, bo = make_linear(ks[9], ks[10])
    raw_params = (wq, bq, wk, bk, wv, bv, wo, bo)

    params = prepare_params(raw_params, num_heads=H)
    out = multi_head_attention(query, key_t, value, params, num_heads=H)
    out = jax.block_until_ready(out)

    ref = reference(query, key_t, value, raw_params, num_heads=H)
    assert out.shape == (B, Lq, D)
    np.testing.assert_allclose(np.asarray(out), np.asarray(ref), rtol=2e-3, atol=2e-3)

    print("KERNEL_OK")
</pallas_src>

<mosaic_0001>
module attributes {stable_mosaic.version = 11 : i64} {
  func.func @mha_kernel(%arg0: i32, %arg1: memref<1x8x32xf32, #tpu.memory_space<vmem>>, %arg2: memref<1x8x32xf32, #tpu.memory_space<vmem>>, %arg3: memref<1x8x32xf32, #tpu.memory_space<vmem>>, %arg4: memref<32x32xf32, #tpu.memory_space<vmem>>, %arg5: memref<1x32xf32, #tpu.memory_space<vmem>>, %arg6: memref<32x32xf32, #tpu.memory_space<vmem>>, %arg7: memref<1x32xf32, #tpu.memory_space<vmem>>, %arg8: memref<32x32xf32, #tpu.memory_space<vmem>>, %arg9: memref<1x32xf32, #tpu.memory_space<vmem>>, %arg10: memref<32x32xf32, #tpu.memory_space<vmem>>, %arg11: memref<1x32xf32, #tpu.memory_space<vmem>>, %arg12: memref<1x8x32xf32, #tpu.memory_space<vmem>>) attributes {dimension_semantics = [#tpu.dimension_semantics<parallel>], iteration_bounds = array<i64: 2>, scalar_prefetch = 0 : i64, scratch_operands = 0 : i64, tpu.core_type = #tpu.core_type<tc>, window_params = [{transform_indices = @transform_0, window_bounds = array<i64: 1, 8, 32>}, {transform_indices = @transform_1, window_bounds = array<i64: 1, 8, 32>}, {transform_indices = @transform_2, window_bounds = array<i64: 1, 8, 32>}, {pipeline_mode = #tpu.pipeline_mode<synchronous>, transform_indices = @transform_3, window_bounds = array<i64: 32, 32>}, {pipeline_mode = #tpu.pipeline_mode<synchronous>, transform_indices = @transform_4, window_bounds = array<i64: 1, 32>}, {pipeline_mode = #tpu.pipeline_mode<synchronous>, transform_indices = @transform_5, window_bounds = array<i64: 32, 32>}, {pipeline_mode = #tpu.pipeline_mode<synchronous>, transform_indices = @transform_6, window_bounds = array<i64: 1, 32>}, {pipeline_mode = #tpu.pipeline_mode<synchronous>, transform_indices = @transform_7, window_bounds = array<i64: 32, 32>}, {pipeline_mode = #tpu.pipeline_mode<synchronous>, transform_indices = @transform_8, window_bounds = array<i64: 1, 32>}, {pipeline_mode = #tpu.pipeline_mode<synchronous>, transform_indices = @transform_9, window_bounds = array<i64: 32, 32>}, {pipeline_mode = #tpu.pipeline_mode<synchronous>, transform_indices = @transform_10, window_bounds = array<i64: 1, 32>}, {transform_indices = @transform_11, window_bounds = array<i64: 1, 8, 32>}]} {
    %c0 = arith.constant 0 : index
    %c0_0 = arith.constant 0 : index
    %c0_1 = arith.constant 0 : index
    %0 = vector.load %arg1[%c0, %c0_0, %c0_1] : memref<1x8x32xf32, #tpu.memory_space<vmem>>, vector<1x8x32xf32>
    %1 = vector.shape_cast %0 : vector<1x8x32xf32> to vector<8x32xf32>
    %c0_2 = arith.constant 0 : index
    %c0_3 = arith.constant 0 : index
    %c0_4 = arith.constant 0 : index
    %2 = vector.load %arg2[%c0_2, %c0_3, %c0_4] : memref<1x8x32xf32, #tpu.memory_space<vmem>>, vector<1x8x32xf32>
    %3 = vector.shape_cast %2 : vector<1x8x32xf32> to vector<8x32xf32>
    %c0_5 = arith.constant 0 : index
    %c0_6 = arith.constant 0 : index
    %c0_7 = arith.constant 0 : index
    %4 = vector.load %arg3[%c0_5, %c0_6, %c0_7] : memref<1x8x32xf32, #tpu.memory_space<vmem>>, vector<1x8x32xf32>
    %5 = vector.shape_cast %4 : vector<1x8x32xf32> to vector<8x32xf32>
    %c0_8 = arith.constant 0 : index
    %c0_9 = arith.constant 0 : index
    %6 = vector.load %arg4[%c0_8, %c0_9] : memref<32x32xf32, #tpu.memory_space<vmem>>, vector<32x32xf32>
    %cst = arith.constant dense<0.000000e+00> : vector<8x32xf32>
    %7 = tpu.matmul %1, %6, %cst {dimension_numbers = #tpu.dot_dimension_numbers<[1], [0], [0], [1], [0, 0, 1, 1], [], []>} : vector<8x32xf32>, vector<32x32xf32>, vector<8x32xf32> -> vector<8x32xf32>
    %c0_10 = arith.constant 0 : index
    %c0_11 = arith.constant 0 : index
    %8 = vector.load %arg5[%c0_10, %c0_11] : memref<1x32xf32, #tpu.memory_space<vmem>>, vector<1x32xf32>
    %9 = vector.broadcast %8 : vector<1x32xf32> to vector<8x32xf32>
    %10 = arith.addf %7, %9 : vector<8x32xf32>
    %c0_12 = arith.constant 0 : index
    %c0_13 = arith.constant 0 : index
    %11 = vector.load %arg6[%c0_12, %c0_13] : memref<32x32xf32, #tpu.memory_space<vmem>>, vector<32x32xf32>
    %cst_14 = arith.constant dense<0.000000e+00> : vector<8x32xf32>
    %12 = tpu.matmul %3, %11, %cst_14 {dimension_numbers = #tpu.dot_dimension_numbers<[1], [0], [0], [1], [0, 0, 1, 1], [], []>} : vector<8x32xf32>, vector<32x32xf32>, vector<8x32xf32> -> vector<8x32xf32>
    %c0_15 = arith.constant 0 : index
    %c0_16 = arith.constant 0 : index
    %13 = vector.load %arg7[%c0_15, %c0_16] : memref<1x32xf32, #tpu.memory_space<vmem>>, vector<1x32xf32>
    %14 = vector.broadcast %13 : vector<1x32xf32> to vector<8x32xf32>
    %15 = arith.addf %12, %14 : vector<8x32xf32>
    %c0_17 = arith.constant 0 : index
    %c0_18 = arith.constant 0 : index
    %16 = vector.load %arg8[%c0_17, %c0_18] : memref<32x32xf32, #tpu.memory_space<vmem>>, vector<32x32xf32>
    %cst_19 = arith.constant dense<0.000000e+00> : vector<8x32xf32>
    %17 = tpu.matmul %5, %16, %cst_19 {dimension_numbers = #tpu.dot_dimension_numbers<[1], [0], [0], [1], [0, 0, 1, 1], [], []>} : vector<8x32xf32>, vector<32x32xf32>, vector<8x32xf32> -> vector<8x32xf32>
    %c0_20 = arith.constant 0 : index
    %c0_21 = arith.constant 0 : index
    %18 = vector.load %arg9[%c0_20, %c0_21] : memref<1x32xf32, #tpu.memory_space<vmem>>, vector<1x32xf32>
    %19 = vector.broadcast %18 : vector<1x32xf32> to vector<8x32xf32>
    %20 = arith.addf %17, %19 : vector<8x32xf32>
    %21 = vector.shape_cast %10 : vector<8x32xf32> to vector<1x8x8x4xf32>
    %22 = tpu.transpose %21, [0, 2, 1, 3] : vector<1x8x8x4xf32> -> vector<1x8x8x4xf32>
    %23 = vector.shape_cast %22 : vector<1x8x8x4xf32> to vector<8x8x4xf32>
    %24 = vector.shape_cast %15 : vector<8x32xf32> to vector<1x8x8x4xf32>
    %25 = tpu.transpose %24, [0, 2, 1, 3] : vector<1x8x8x4xf32> -> vector<1x8x8x4xf32>
    %26 = vector.shape_cast %25 : vector<1x8x8x4xf32> to vector<8x8x4xf32>
    %27 = vector.shape_cast %20 : vector<8x32xf32> to vector<1x8x8x4xf32>
    %28 = tpu.transpose %27, [0, 2, 1, 3] : vector<1x8x8x4xf32> -> vector<1x8x8x4xf32>
    %29 = vector.shape_cast %28 : vector<1x8x8x4xf32> to vector<8x8x4xf32>
    "tpu.trace_start"() <{level = 10 : i32, message = "nqd,nkd->nqk"}> : () -> ()
    %cst_22 = arith.constant dense<0.000000e+00> : vector<8x8x8xf32>
    %30 = tpu.matmul %23, %26, %cst_22 {dimension_numbers = #tpu.dot_dimension_numbers<[2], [2], [1], [1], [0, 0, 0, 1, 1, 1], [0], [0]>} : vector<8x8x4xf32>, vector<8x8x4xf32>, vector<8x8x8xf32> -> vector<8x8x8xf32>
    "tpu.trace_stop"() : () -> ()
    %cst_23 = arith.constant dense<0xFF800000> : vector<8x8xf32>
    %31 = vector.multi_reduction <maximumf>, %30, %cst_23 [2] : vector<8x8x8xf32> to vector<8x8xf32>
    %32 = vector.shape_cast %31 : vector<8x8xf32> to vector<8x8x1xf32>
    %33 = vector.broadcast %32 : vector<8x8x1xf32> to vector<8x8x8xf32>
    %34 = arith.subf %30, %33 : vector<8x8x8xf32>
    %35 = math.exp %34 : vector<8x8x8xf32>
    %cst_24 = arith.constant dense<0.000000e+00> : vector<8x8xf32>
    %36 = vector.multi_reduction <add>, %35, %cst_24 [2] : vector<8x8x8xf32> to vector<8x8xf32>
    %37 = vector.shape_cast %36 : vector<8x8xf32> to vector<8x8x1xf32>
    "tpu.trace_start"() <{level = 10 : i32, message = "nqk,nkd->nqd"}> : () -> ()
    %cst_25 = arith.constant dense<0.000000e+00> : vector<8x8x4xf32>
    %38 = tpu.matmul %35, %29, %cst_25 {dimension_numbers = #tpu.dot_dimension_numbers<[2], [1], [1], [2], [0, 0, 0, 1, 1, 2], [0], [0]>} : vector<8x8x8xf32>, vector<8x8x4xf32>, vector<8x8x4xf32> -> vector<8x8x4xf32>
    "tpu.trace_stop"() : () -> ()
    %39 = tpu.reciprocal %37 {approx = true} : vector<8x8x1xf32> -> vector<8x8x1xf32>
    %40 = vector.broadcast %39 : vector<8x8x1xf32> to vector<8x8x4xf32>
    %41 = arith.mulf %38, %40 : vector<8x8x4xf32>
    %42 = vector.shape_cast %41 : vector<8x8x4xf32> to vector<1x8x8x4xf32>
    %43 = tpu.transpose %42, [0, 2, 1, 3] : vector<1x8x8x4xf32> -> vector<1x8x8x4xf32>
    %44 = vector.shape_cast %43 : vector<1x8x8x4xf32> to vector<8x32xf32>
    %c0_26 = arith.constant 0 : index
    %c0_27 = arith.constant 0 : index
    %45 = vector.load %arg10[%c0_26, %c0_27] : memref<32x32xf32, #tpu.memory_space<vmem>>, vector<32x32xf32>
    %cst_28 = arith.constant dense<0.000000e+00> : vector<8x32xf32>
    %46 = tpu.matmul %44, %45, %cst_28 {dimension_numbers = #tpu.dot_dimension_numbers<[1], [0], [0], [1], [0, 0, 1, 1], [], []>} : vector<8x32xf32>, vector<32x32xf32>, vector<8x32xf32> -> vector<8x32xf32>
    %c0_29 = arith.constant 0 : index
    %c0_30 = arith.constant 0 : index
    %47 = vector.load %arg11[%c0_29, %c0_30] : memref<1x32xf32, #tpu.memory_space<vmem>>, vector<1x32xf32>
    %48 = vector.broadcast %47 : vector<1x32xf32> to vector<8x32xf32>
    %49 = arith.addf %46, %48 : vector<8x32xf32>
    %50 = vector.shape_cast %49 : vector<8x32xf32> to vector<1x8x32xf32>
    %c0_31 = arith.constant 0 : index
    %c0_32 = arith.constant 0 : index
    %c0_33 = arith.constant 0 : index
    %51 = vector.load %arg12[%c0_31, %c0_32, %c0_33] : memref<1x8x32xf32, #tpu.memory_space<vmem>>, vector<1x8x32xf32>
    tpu.vector_store %arg12[%c0_31, %c0_32, %c0_33], %50 {strides = array<i32>} : memref<1x8x32xf32, #tpu.memory_space<vmem>>, vector<1x8x32xf32>,
    return
  }
  func.func @transform_0(%arg0: i32) -> (i32, i32, i32) {
    %c0_i32 = arith.constant 0 : i32
    %c0_i32_0 = arith.constant 0 : i32
    %c0_i32_1 = arith.constant 0 : i32
    return %arg0, %c0_i32, %c0_i32_0 : i32, i32, i32
  }
  func.func @transform_1(%arg0: i32) -> (i32, i32, i32) {
    %c0_i32 = arith.constant 0 : i32
    %c0_i32_0 = arith.constant 0 : i32
    %c0_i32_1 = arith.constant 0 : i32
    return %arg0, %c0_i32, %c0_i32_0 : i32, i32, i32
  }
  func.func @transform_2(%arg0: i32) -> (i32, i32, i32) {
    %c0_i32 = arith.constant 0 : i32
    %c0_i32_0 = arith.constant 0 : i32
    %c0_i32_1 = arith.constant 0 : i32
    return %arg0, %c0_i32, %c0_i32_0 : i32, i32, i32
  }
  func.func @transform_3(%arg0: i32) -> (i32, i32) {
    %c0_i32 = arith.constant 0 : i32
    %c0_i32_0 = arith.constant 0 : i32
    %c0_i32_1 = arith.constant 0 : i32
    return %c0_i32, %c0_i32_0 : i32, i32
  }
  func.func @transform_4(%arg0: i32) -> (i32, i32) {
    %c0_i32 = arith.constant 0 : i32
    %c0_i32_0 = arith.constant 0 : i32
    %c0_i32_1 = arith.constant 0 : i32
    return %c0_i32, %c0_i32_0 : i32, i32
  }
  func.func @transform_5(%arg0: i32) -> (i32, i32) {
    %c0_i32 = arith.constant 0 : i32
    %c0_i32_0 = arith.constant 0 : i32
    %c0_i32_1 = arith.constant 0 : i32
    return %c0_i32, %c0_i32_0 : i32, i32
  }
  func.func @transform_6(%arg0: i32) -> (i32, i32) {
    %c0_i32 = arith.constant 0 : i32
    %c0_i32_0 = arith.constant 0 : i32
    %c0_i32_1 = arith.constant 0 : i32
    return %c0_i32, %c0_i32_0 : i32, i32
  }
  func.func @transform_7(%arg0: i32) -> (i32, i32) {
    %c0_i32 = arith.constant 0 : i32
    %c0_i32_0 = arith.constant 0 : i32
    %c0_i32_1 = arith.constant 0 : i32
    return %c0_i32, %c0_i32_0 : i32, i32
  }
  func.func @transform_8(%arg0: i32) -> (i32, i32) {
    %c0_i32 = arith.constant 0 : i32
    %c0_i32_0 = arith.constant 0 : i32
    %c0_i32_1 = arith.constant 0 : i32
    return %c0_i32, %c0_i32_0 : i32, i32
  }
  func.func @transform_9(%arg0: i32) -> (i32, i32) {
    %c0_i32 = arith.constant 0 : i32
    %c0_i32_0 = arith.constant 0 : i32
    %c0_i32_1 = arith.constant 0 : i32
    return %c0_i32, %c0_i32_0 : i32, i32
  }
  func.func @transform_10(%arg0: i32) -> (i32, i32) {
    %c0_i32 = arith.constant 0 : i32
    %c0_i32_0 = arith.constant 0 : i32
    %c0_i32_1 = arith.constant 0 : i32
    return %c0_i32, %c0_i32_0 : i32, i32
  }
  func.func @transform_11(%arg0: i32) -> (i32, i32, i32) {
    %c0_i32 = arith.constant 0 : i32
    %c0_i32_0 = arith.constant 0 : i32
    %c0_i32_1 = arith.constant 0 : i32
    return %arg0, %c0_i32, %c0_i32_0 : i32, i32, i32
  }
}

module attributes {stable_mosaic.version = 11 : i64} {
  func.func @mha_kernel(%arg0: i32, %arg1: memref<1x8x32xf32, #tpu.memory_space<vmem>>, %arg2: memref<1x8x32xf32, #tpu.memory_space<vmem>>, %arg3: memref<1x8x32xf32, #tpu.memory_space<vmem>>, %arg4: memref<32x32xf32, #tpu.memory_space<vmem>>, %arg5: memref<1x32xf32, #tpu.memory_space<vmem>>, %arg6: memref<32x32xf32, #tpu.memory_space<vmem>>, %arg7: memref<1x32xf32, #tpu.memory_space<vmem>>, %arg8: memref<32x32xf32, #tpu.memory_space<vmem>>, %arg9: memref<1x32xf32, #tpu.memory_space<vmem>>, %arg10: memref<32x32xf32, #tpu.memory_space<vmem>>, %arg11: memref<1x32xf32, #tpu.memory_space<vmem>>, %arg12: memref<1x8x32xf32, #tpu.memory_space<vmem>>) attributes {dimension_semantics = [#tpu.dimension_semantics<parallel>], iteration_bounds = array<i64: 2>, scalar_prefetch = 0 : i64, scratch_operands = 0 : i64, tpu.core_type = #tpu.core_type<tc>, window_params = [{transform_indices = @transform_0, window_bounds = array<i64: 1, 8, 32>}, {transform_indices = @transform_1, window_bounds = array<i64: 1, 8, 32>}, {transform_indices = @transform_2, window_bounds = array<i64: 1, 8, 32>}, {pipeline_mode = #tpu.pipeline_mode<synchronous>, transform_indices = @transform_3, window_bounds = array<i64: 32, 32>}, {pipeline_mode = #tpu.pipeline_mode<synchronous>, transform_indices = @transform_4, window_bounds = array<i64: 1, 32>}, {pipeline_mode = #tpu.pipeline_mode<synchronous>, transform_indices = @transform_5, window_bounds = array<i64: 32, 32>}, {pipeline_mode = #tpu.pipeline_mode<synchronous>, transform_indices = @transform_6, window_bounds = array<i64: 1, 32>}, {pipeline_mode = #tpu.pipeline_mode<synchronous>, transform_indices = @transform_7, window_bounds = array<i64: 32, 32>}, {pipeline_mode = #tpu.pipeline_mode<synchronous>, transform_indices = @transform_8, window_bounds = array<i64: 1, 32>}, {pipeline_mode = #tpu.pipeline_mode<synchronous>, transform_indices = @transform_9, window_bounds = array<i64: 32, 32>}, {pipeline_mode = #tpu.pipeline_mode<synchronous>, transform_indices = @transform_10, window_bounds = array<i64: 1, 32>}, {transform_indices = @transform_11, window_bounds = array<i64: 1, 8, 32>}]} {
    %c0 = arith.constant 0 : index
    %c0_0 = arith.constant 0 : index
    %c0_1 = arith.constant 0 : index
    %0 = vector.load %arg1[%c0, %c0_0, %c0_1] : memref<1x8x32xf32, #tpu.memory_space<vmem>>, vector<1x8x32xf32>
    %1 = vector.shape_cast %0 : vector<1x8x32xf32> to vector<8x32xf32>
    %c0_2 = arith.constant 0 : index
    %c0_3 = arith.constant 0 : index
    %c0_4 = arith.constant 0 : index
    %2 = vector.load %arg2[%c0_2, %c0_3, %c0_4] : memref<1x8x32xf32, #tpu.memory_space<vmem>>, vector<1x8x32xf32>
    %3 = vector.shape_cast %2 : vector<1x8x32xf32> to vector<8x32xf32>
    %c0_5 = arith.constant 0 : index
    %c0_6 = arith.constant 0 : index
    %c0_7 = arith.constant 0 : index
    %4 = vector.load %arg3[%c0_5, %c0_6, %c0_7] : memref<1x8x32xf32, #tpu.memory_space<vmem>>, vector<1x8x32xf32>
    %5 = vector.shape_cast %4 : vector<1x8x32xf32> to vector<8x32xf32>
    %c0_8 = arith.constant 0 : index
    %c0_9 = arith.constant 0 : index
    %6 = vector.load %arg4[%c0_8, %c0_9] : memref<32x32xf32, #tpu.memory_space<vmem>>, vector<32x32xf32>
    %cst = arith.constant dense<0.000000e+00> : vector<8x32xf32>
    %7 = tpu.matmul %1, %6, %cst {dimension_numbers = #tpu.dot_dimension_numbers<[1], [0], [0], [1], [0, 0, 1, 1], [], []>} : vector<8x32xf32>, vector<32x32xf32>, vector<8x32xf32> -> vector<8x32xf32>
    %c0_10 = arith.constant 0 : index
    %c0_11 = arith.constant 0 : index
    %8 = vector.load %arg5[%c0_10, %c0_11] : memref<1x32xf32, #tpu.memory_space<vmem>>, vector<1x32xf32>
    %9 = vector.broadcast %8 : vector<1x32xf32> to vector<8x32xf32>
    %10 = arith.addf %7, %9 : vector<8x32xf32>
    %c0_12 = arith.constant 0 : index
    %c0_13 = arith.constant 0 : index
    %11 = vector.load %arg6[%c0_12, %c0_13] : memref<32x32xf32, #tpu.memory_space<vmem>>, vector<32x32xf32>
    %cst_14 = arith.constant dense<0.000000e+00> : vector<8x32xf32>
    %12 = tpu.matmul %3, %11, %cst_14 {dimension_numbers = #tpu.dot_dimension_numbers<[1], [0], [0], [1], [0, 0, 1, 1], [], []>} : vector<8x32xf32>, vector<32x32xf32>, vector<8x32xf32> -> vector<8x32xf32>
    %c0_15 = arith.constant 0 : index
    %c0_16 = arith.constant 0 : index
    %13 = vector.load %arg7[%c0_15, %c0_16] : memref<1x32xf32, #tpu.memory_space<vmem>>, vector<1x32xf32>
    %14 = vector.broadcast %13 : vector<1x32xf32> to vector<8x32xf32>
    %15 = arith.addf %12, %14 : vector<8x32xf32>
    %c0_17 = arith.constant 0 : index
    %c0_18 = arith.constant 0 : index
    %16 = vector.load %arg8[%c0_17, %c0_18] : memref<32x32xf32, #tpu.memory_space<vmem>>, vector<32x32xf32>
    %cst_19 = arith.constant dense<0.000000e+00> : vector<8x32xf32>
    %17 = tpu.matmul %5, %16, %cst_19 {dimension_numbers = #tpu.dot_dimension_numbers<[1], [0], [0], [1], [0, 0, 1, 1], [], []>} : vector<8x32xf32>, vector<32x32xf32>, vector<8x32xf32> -> vector<8x32xf32>
    %c0_20 = arith.constant 0 : index
    %c0_21 = arith.constant 0 : index
    %18 = vector.load %arg9[%c0_20, %c0_21] : memref<1x32xf32, #tpu.memory_space<vmem>>, vector<1x32xf32>
    %19 = vector.broadcast %18 : vector<1x32xf32> to vector<8x32xf32>
    %20 = arith.addf %17, %19 : vector<8x32xf32>
    %21 = vector.shape_cast %10 : vector<8x32xf32> to vector<1x8x8x4xf32>
    %22 = tpu.transpose %21, [0, 2, 1, 3] : vector<1x8x8x4xf32> -> vector<1x8x8x4xf32>
    %23 = vector.shape_cast %22 : vector<1x8x8x4xf32> to vector<8x8x4xf32>
    %24 = vector.shape_cast %15 : vector<8x32xf32> to vector<1x8x8x4xf32>
    %25 = tpu.transpose %24, [0, 2, 1, 3] : vector<1x8x8x4xf32> -> vector<1x8x8x4xf32>
    %26 = vector.shape_cast %25 : vector<1x8x8x4xf32> to vector<8x8x4xf32>
    %27 = vector.shape_cast %20 : vector<8x32xf32> to vector<1x8x8x4xf32>
    %28 = tpu.transpose %27, [0, 2, 1, 3] : vector<1x8x8x4xf32> -> vector<1x8x8x4xf32>
    %29 = vector.shape_cast %28 : vector<1x8x8x4xf32> to vector<8x8x4xf32>
    "tpu.trace_start"() <{level = 10 : i32, message = "nqd,nkd->nqk"}> : () -> ()
    %cst_22 = arith.constant dense<0.000000e+00> : vector<8x8x8xf32>
    %30 = tpu.matmul %23, %26, %cst_22 {dimension_numbers = #tpu.dot_dimension_numbers<[2], [2], [1], [1], [0, 0, 0, 1, 1, 1], [0], [0]>} : vector<8x8x4xf32>, vector<8x8x4xf32>, vector<8x8x8xf32> -> vector<8x8x8xf32>
    "tpu.trace_stop"() : () -> ()
    %cst_23 = arith.constant dense<0xFF800000> : vector<8x8xf32>
    %31 = vector.multi_reduction <maximumf>, %30, %cst_23 [2] : vector<8x8x8xf32> to vector<8x8xf32>
    %32 = vector.shape_cast %31 : vector<8x8xf32> to vector<8x8x1xf32>
    %33 = vector.broadcast %32 : vector<8x8x1xf32> to vector<8x8x8xf32>
    %34 = arith.subf %30, %33 : vector<8x8x8xf32>
    %35 = math.exp %34 : vector<8x8x8xf32>
    %cst_24 = arith.constant dense<0.000000e+00> : vector<8x8xf32>
    %36 = vector.multi_reduction <add>, %35, %cst_24 [2] : vector<8x8x8xf32> to vector<8x8xf32>
    %37 = vector.shape_cast %36 : vector<8x8xf32> to vector<8x8x1xf32>
    "tpu.trace_start"() <{level = 10 : i32, message = "nqk,nkd->nqd"}> : () -> ()
    %cst_25 = arith.constant dense<0.000000e+00> : vector<8x8x4xf32>
    %38 = tpu.matmul %35, %29, %cst_25 {dimension_numbers = #tpu.dot_dimension_numbers<[2], [1], [1], [2], [0, 0, 0, 1, 1, 2], [0], [0]>} : vector<8x8x8xf32>, vector<8x8x4xf32>, vector<8x8x4xf32> -> vector<8x8x4xf32>
    "tpu.trace_stop"() : () -> ()
    %39 = tpu.reciprocal %37 {approx = true} : vector<8x8x1xf32> -> vector<8x8x1xf32>
    %40 = vector.broadcast %39 : vector<8x8x1xf32> to vector<8x8x4xf32>
    %41 = arith.mulf %38, %40 : vector<8x8x4xf32>
    %42 = vector.shape_cast %41 : vector<8x8x4xf32> to vector<1x8x8x4xf32>
    %43 = tpu.transpose %42, [0, 2, 1, 3] : vector<1x8x8x4xf32> -> vector<1x8x8x4xf32>
    %44 = vector.shape_cast %43 : vector<1x8x8x4xf32> to vector<8x32xf32>
    %c0_26 = arith.constant 0 : index
    %c0_27 = arith.constant 0 : index
    %45 = vector.load %arg10[%c0_26, %c0_27] : memref<32x32xf32, #tpu.memory_space<vmem>>, vector<32x32xf32>
    %cst_28 = arith.constant dense<0.000000e+00> : vector<8x32xf32>
    %46 = tpu.matmul %44, %45, %cst_28 {dimension_numbers = #tpu.dot_dimension_numbers<[1], [0], [0], [1], [0, 0, 1, 1], [], []>} : vector<8x32xf32>, vector<32x32xf32>, vector<8x32xf32> -> vector<8x32xf32>
    %c0_29 = arith.constant 0 : index
    %c0_30 = arith.constant 0 : index
    %47 = vector.load %arg11[%c0_29, %c0_30] : memref<1x32xf32, #tpu.memory_space<vmem>>, vector<1x32xf32>
    %48 = vector.broadcast %47 : vector<1x32xf32> to vector<8x32xf32>
    %49 = arith.addf %46, %48 : vector<8x32xf32>
    %50 = vector.shape_cast %49 : vector<8x32xf32> to vector<1x8x32xf32>
    %c0_31 = arith.constant 0 : index
    %c0_32 = arith.constant 0 : index
    %c0_33 = arith.constant 0 : index
    %51 = vector.load %arg12[%c0_31, %c0_32, %c0_33] : memref<1x8x32xf32, #tpu.memory_space<vmem>>, vector<1x8x32xf32>
    tpu.vector_store %arg12[%c0_31, %c0_32, %c0_33], %50 {strides = array<i32>} : memref<1x8x32xf32, #tpu.memory_space<vmem>>, vector<1x8x32xf32>,
    return
  }
  func.func @transform_0(%arg0: i32) -> (i32, i32, i32) {
    %c0_i32 = arith.constant 0 : i32
    %c0_i32_0 = arith.constant 0 : i32
    %c0_i32_1 = arith.constant 0 : i32
    return %arg0, %c0_i32, %c0_i32_0 : i32, i32, i32
  }
  func.func @transform_1(%arg0: i32) -> (i32, i32, i32) {
    %c0_i32 = arith.constant 0 : i32
    %c0_i32_0 = arith.constant 0 : i32
    %c0_i32_1 = arith.constant 0 : i32
    return %arg0, %c0_i32, %c0_i32_0 : i32, i32, i32
  }
  func.func @transform_2(%arg0: i32) -> (i32, i32, i32) {
    %c0_i32 = arith.constant 0 : i32
    %c0_i32_0 = arith.constant 0 : i32
    %c0_i32_1 = arith.constant 0 : i32
    return %arg0, %c0_i32, %c0_i32_0 : i32, i32, i32
  }
  func.func @transform_3(%arg0: i32) -> (i32, i32) {
    %c0_i32 = arith.constant 0 : i32
    %c0_i32_0 = arith.constant 0 : i32
    %c0_i32_1 = arith.constant 0 : i32
    return %c0_i32, %c0_i32_0 : i32, i32
  }
  func.func @transform_4(%arg0: i32) -> (i32, i32) {
    %c0_i32 = arith.constant 0 : i32
    %c0_i32_0 = arith.constant 0 : i32
    %c0_i32_1 = arith.constant 0 : i32
    return %c0_i32, %c0_i32_0 : i32, i32
  }
  func.func @transform_5(%arg0: i32) -> (i32, i32) {
    %c0_i32 = arith.constant 0 : i32
    %c0_i32_0 = arith.constant 0 : i32
    %c0_i32_1 = arith.constant 0 : i32
    return %c0_i32, %c0_i32_0 : i32, i32
  }
  func.func @transform_6(%arg0: i32) -> (i32, i32) {
    %c0_i32 = arith.constant 0 : i32
    %c0_i32_0 = arith.constant 0 : i32
    %c0_i32_1 = arith.constant 0 : i32
    return %c0_i32, %c0_i32_0 : i32, i32
  }
  func.func @transform_7(%arg0: i32) -> (i32, i32) {
    %c0_i32 = arith.constant 0 : i32
    %c0_i32_0 = arith.constant 0 : i32
    %c0_i32_1 = arith.constant 0 : i32
    return %c0_i32, %c0_i32_0 : i32, i32
  }
  func.func @transform_8(%arg0: i32) -> (i32, i32) {
    %c0_i32 = arith.constant 0 : i32
    %c0_i32_0 = arith.constant 0 : i32
    %c0_i32_1 = arith.constant 0 : i32
    return %c0_i32, %c0_i32_0 : i32, i32
  }
  func.func @transform_9(%arg0: i32) -> (i32, i32) {
    %c0_i32 = arith.constant 0 : i32
    %c0_i32_0 = arith.constant 0 : i32
    %c0_i32_1 = arith.constant 0 : i32
    return %c0_i32, %c0_i32_0 : i32, i32
  }
  func.func @transform_10(%arg0: i32) -> (i32, i32) {
    %c0_i32 = arith.constant 0 : i32
    %c0_i32_0 = arith.constant 0 : i32
    %c0_i32_1 = arith.constant 0 : i32
    return %c0_i32, %c0_i32_0 : i32, i32
  }
  func.func @transform_11(%arg0: i32) -> (i32, i32, i32) {
    %c0_i32 = arith.constant 0 : i32
    %c0_i32_0 = arith.constant 0 : i32
    %c0_i32_1 = arith.constant 0 : i32
    return %arg0, %c0_i32, %c0_i32_0 : i32, i32, i32
  }
}

</mosaic_0001>

<bundles_post_ra>
// kernel: tpu_custom_call.1
= control target key start
LH: loop header
LB: loop body
LE: loop exit
PB: predicated region body
PF: predicated region fallthrough
CT: control target
= control target key end

     0   :  { %s4907_s0 = inlined_call_operand.hbm [shape: f32[2,8,32], index: 0, kind: input, shape index: {}]   ;;  %s4908_s1 = inlined_call_operand.hbm [shape: f32[2,8,32], index: 1, kind: input, shape index: {}]   ;;  %s4909_s2 = inlined_call_operand.hbm [shape: f32[2,8,32], index: 2, kind: input, shape index: {}]   ;;  %s4910_s3 = inlined_call_operand.hbm [shape: f32[32,32], index: 3, kind: input, shape index: {}]   ;;  %s4911_s4 = inlined_call_operand.vmem [shape: f32[1,32], index: 4, kind: input, shape index: {}]   ;;  %s4912_s5 = inlined_call_operand.hbm [shape: f32[32,32], index: 5, kind: input, shape index: {}]   ;;  %s4913_s6 = inlined_call_operand.vmem [shape: f32[1,32], index: 6, kind: input, shape index: {}]   ;;  %s4914_s7 = inlined_call_operand.hbm [shape: f32[32,32], index: 7, kind: input, shape index: {}]   ;;  %s4915_s8 = inlined_call_operand.vmem [shape: f32[1,32], index: 8, kind: input, shape index: {}]   ;;  %s4916_s9 = inlined_call_operand.hbm [shape: f32[32,32], index: 9, kind: input, shape index: {}]   ;;  %s4917_s10 = inlined_call_operand.vmem [shape: f32[1,32], index: 10, kind: input, shape index: {}]   ;;  %s4918_s11 = inlined_call_operand.hbm [shape: f32[2,8,32], index: 11, kind: output, shape index: {}]  }
   0x1   :  { %4939 = sst [smem:[#allocation25_spill]] %s4907_s0 }
   0x2   :  { %4940 = sst [smem:[#allocation26_spill]] %s4908_s1 }
   0x3   :  { %4941 = sst [smem:[#allocation27_spill]] %s4910_s3 }
   0x4   :  { %4942 = sst [smem:[#allocation28_spill]] %s4914_s7 }
   0x5   :  { %4943 = sst [smem:[#allocation29_spill]] %s4917_s10 }
   0x6   :  { %4944 = sst [smem:[#allocation30_spill]] %s4918_s11 }
   0x7   :  { %16 = vsyncpa [#allocation3], 0 }
   0x8   :  { %18 = vsyncpa [#allocation3 + $0x1], 0 }
   0x9   :  { %19 = vsyncpa [#allocation6], 0 }
   0xa   :  { %21 = vsyncpa [#allocation6 + $0x1], 0 }
   0xb   :  { %22 = vsyncpa [#allocation9], 0 }
   0xc   :  { %23 = vsyncpa [#allocation12], 0 }
   0xd   :  { %24 = vsyncpa [#allocation4], 0 }
   0xe   :  { %26 = vsyncpa [#allocation4 + $0x1], 0  ;;  %s4282_s17 = smov 0   ;;  %s4284_s18 = smov 0  }
   0xf   :  { %s4286_s19 = smov 0   ;;  %s4288_s20 = smov 0  }
  0x10 LB: > { %4945 = sst [smem:[#allocation20_spill]] %s4180_s17  ;;  %s4194_s21 = smov [#allocation8]   ;;  %s4192_s20 = sphi %s4288_s20, %s4982_s20   ;;  %s4188_s19 = sphi %s4286_s19, %s4986_s19   ;;  %s4184_s18 = sphi %s4284_s18, %s4985_s18   ;;  %s4180_s17 = sphi %s4282_s17, %s4984_s17  }
  0x11   : > { %4946 = sst [smem:[#allocation21_spill]] %s4192_s20  ;;  %s321_s22 = sshll.u32 %s4194_s21, 4  ;;  %s322_s22 = int_to_ptr.vmem [resolvable:$true] %s321_s22 }
  0x12   : > { %s4303_s23 = sadd.s32 4294967295, %s4192_s20   ;;  %p3514_p0 = scmp.ge.s32.totalorder %s4192_s20, 1 }
  0x13   : > { %p4931_p1 = scmp.eq.s32.totalorder %s4303_s23, 0  ;;  %p309_p2 = scmp.lt.s32.totalorder %s4192_s20, 3 }
  0x14   : > { %s4195_s25 = smov [#allocation11]   ;;  %s3939_s28 = scalar_lea.vmem %s322_s22, 512 }
  0x15   : > { %p4308_p3 = pnand %p3514_p0, %p309_p2  ;;  %s353_s26 = sshll.u32 %s4195_s25, 4  ;;  %s354_s26 = int_to_ptr.vmem [resolvable:$true] %s353_s26 }
  0x16   : > { %p3940_p8 = scmp.ne.s32.totalorder %s322_s22, %s3939_s28  ;;  %p3947_p11 = scmp.lt.s32.totalorder %s322_s22, %s322_s22 }
  0x17   : > { %s4947_s24 = scalar_select %p4308_p3, 1, 0 }
  0x18   : > { %p3803_p5 = pneg %p4308_p3  ;;  %p3948_p12 = scmp.lt.s32.totalorder %s3939_s28, %s3939_s28 }
  0x1a   : > { %p4317_p6 = pnand %p3803_p5, %p4931_p1  ;;  %p3949_p13 = por %p3948_p12, %p3947_p11 }
  0x1c   : > { %s4948_s27 = scalar_select %p4317_p6, 1, 0 }
  0x1d   : > { %p4919_p7 = pneg %p4317_p6 }
  0x1f   : > { %p3942_p9 = pnand %p3940_p8, %p4919_p7 }
  0x21   : > { %p3943_p10 = pneg %p3942_p9 }
  0x23   : > { %p3950_p0 = pnand %p3949_p13, %p3943_p10 }
  0x25   : > { %3953 = shalt.err (!%p3950_p0)
}
  0x26   : > { %s4920_s29 = smov 128   ;;  %s4922_s30 = smov 8  }
  0x27   : > { %s4949_s3 = sld [smem:[#allocation27_spill]]  ;;  %s3965_s14 = scalar_lea.vmem %s354_s26, 512 }
  0x28   : > { %p3966_p2 = scmp.ne.s32.totalorder %s354_s26, %s3965_s14  ;;  %p3973_p9 = scmp.lt.s32.totalorder %s354_s26, %s354_s26 }
  0x29   : > { %p3974_p10 = scmp.lt.s32.totalorder %s3965_s14, %s3965_s14 }
  0x2a   : > { %p3968_p5 = pnand %p3966_p2, %p4919_p7 }
  0x2b   : > { %p3975_p11 = por %p3974_p10, %p3973_p9 }
  0x2c   : > { %p3969_p8 = pneg %p3968_p5 }
  0x2d   : > { %3806 = dma.hbm_to_vmem [thread:$0]  (!%p4317_p6), %s4949_s3, 512, %s322_s22, [#allocation9], %s4920_s29, %s4920_s29, %s4922_s30  }
  0x2e   : > { %p3976_p12 = pnand %p3975_p11, %p3969_p8 }
  0x30   : > { %3979 = shalt.err (!%p3976_p12)
}
  0x31   : > { %s4950_s7 = sld [smem:[#allocation28_spill]]  ;;  %s3513_s21 = sadd.s32 4294967294, %s4192_s20  }
  0x32   : > { %s4347_s22 = sadd.s32 1, %s4192_s20   ;;  %s39_s28 = sadd.s32 1, %s4188_s19 }
  0x33   : > { %4951 = sst [smem:[#allocation22_spill]] %s4347_s22  ;;  %s36_s25 = ssub.s32 %s4192_s20, %s4347_s22 }
  0x34   : > { %p37_p13 = scmp.eq.s32.totalorder %s36_s25, 0  ;;  %p46_p0 = scmp.ne.s32.totalorder %s4188_s19, %s4184_s18 }
  0x35   : > { %p47_p2 = scmp.eq.s32.totalorder %s4192_s20, 0  ;;  %p52_p5 = scmp.ne.s32.totalorder %s4184_s18, %s4180_s17 }
  0x36   : > { %s4358_s12 = scalar_select %p37_p13, %s4188_s19, %s39_s28  }
  0x37   : > { %3812 = dma.hbm_to_vmem [thread:$0]  (!%p4317_p6), %s4950_s7, 512, %s354_s26, [#allocation12], %s4920_s29, %s4920_s29, %s4922_s30  }
  0x38   : > { %4952 = sst [smem:[#allocation23_spill]] %s4358_s12  ;;  %p48_p8 = por %p47_p2, %p46_p0 }
  0x39   : > { %p4362_p9 = por %p4931_p1, %p52_p5  ;;  %p296_p10 = scmp.eq.s32.totalorder %s4303_s23, 1 }
  0x3a   : > { %p302_p11 = scmp.eq.s32.totalorder %s3513_s21, 1  ;;  %p3834_p12 = scmp.lt.s32.totalorder %s4192_s20, 2 }
  0x3b   : > { %s4953_s13 = scalar_select %p4362_p9, 1, 0 }
  0x3c   : > { %s4924_s26 = sand.u32 1, %s4188_s19   ;;  %p4369_p4 = por %p296_p10, %p46_p0 }
  0x3d   : > { %p4373_p7 = por %p302_p11, %p52_p5  ;;  %s4379_s16 = sshll.u32 %s4924_s26, 3 }
  0x3e   : > { %s4954_s14 = scalar_select %p4369_p4, 1, 0 }
  0x3f   : > { %s4955_s15 = scalar_select %p4373_p7, 1, 0 }
  0x40   : > { %s4382_s25 = sshll.u32 %s4192_s20, 7  ;;  %p4384_p13 = pnand %p3834_p12, %p48_p8 }
  0x41   : > { %4956 = sst [smem:[#allocation24_spill]] %s4955_s15  ;;  %s404_s21 = sand.u32 1, %s4192_s20  }
  0x42   : > { %s4958_s1 = sld [smem:[#allocation26_spill]]  ;;  %s408_s26 = scalar_lea.vmem [#allocation5], %s4379_s16 }
  0x43   : > { %s415_s7 = sshll.u32 %s408_s26, 4  ;;  %s4198_s12 = smov [#allocation10]   ;;  %s4396_s7 = int_to_ptr.vmem [resolvable:$true] %s415_s7 }
  0x44   : > { %s337_s22 = sshll.u32 %s4198_s12, 4  ;;  %s4398_s15 = scalar_lea.sflag [#allocation6], %s404_s21  ;;  %s338_s22 = int_to_ptr.vmem [resolvable:$true] %s337_s22 }
  0x45   : > { %p4404_p2 = pneg %p4384_p13 }
  0x47   : > { %s4959_s20 = scalar_select %p4404_p2, 1, 0 }
  0x48   : > { %s4393_s3 = scalar_lea.hbm %s4958_s1, %s4382_s25  ;;  %s3985_s26 = scalar_lea.hbm %s4958_s1, 256 }
  0x49   : > { %s3980_s17 = scalar_lea.hbm %s4393_s3, 128  ;;  %p3986_p10 = scmp.lt.s32.totalorder %s4393_s3, %s4958_s1 }
  0x4a   : > { %p3981_p0 = scmp.ne.s32.totalorder %s4393_s3, %s3980_s17  ;;  %p3987_p11 = scmp.lt.s32.totalorder %s3985_s26, %s3980_s17 }
  0x4c   : > { %p3983_p5 = pnand %p4404_p2, %p3981_p0  ;;  %p3988_p12 = por %p3987_p11, %p3986_p10 }
  0x4e   : > { %p3984_p8 = pneg %p3983_p5 }
  0x50   : > { %p3989_p1 = pnand %p3988_p12, %p3984_p8 }
  0x52   : > { %3992 = shalt.err (!%p3989_p1)
}
  0x53   : > { %s3993_s12 = scalar_lea.vmem %s4396_s7, 128  ;;  %s4199_s21 = smov [#allocation5]  }
  0x54   : > { %p3994_p7 = scmp.ne.s32.totalorder %s4396_s7, %s3993_s12  ;;  %s3998_s29 = sshll.u32 %s4199_s21, 4  ;;  %s3999_s29 = int_to_ptr.vmem [resolvable:$false] %s3998_s29 }
  0x55   : > { %s4000_s30 = scalar_lea.vmem %s3999_s29, 256  ;;  %p4001_p4 = scmp.lt.s32.totalorder %s4396_s7, %s3999_s29 }
  0x56   : > { %p3996_p0 = pnand %p3994_p7, %p4404_p2  ;;  %p4002_p9 = scmp.lt.s32.totalorder %s4000_s30, %s3993_s12 }
  0x58   : > { %p3997_p5 = pneg %p3996_p0  ;;  %p4003_p3 = por %p4002_p9, %p4001_p4 }
  0x5a   : > { %p4004_p6 = pnand %p4003_p3, %p3997_p5 }
  0x5c   : > { %4007 = shalt.err (!%p4004_p6)
}
  0x5d   : > { %3822 = dma.hbm_to_vmem [thread:$0]  (!%p4384_p13), %s4393_s3, 128, %s4396_s7, %s4398_s15  }
  0x5e   : > { %s4019_s10 = scalar_lea.vmem %s338_s22, 512  ;;  %p4960_p7 = scmp.ne.s32.totalorder %s4948_s27, 0 }
  0x5f   : > { %p4020_p1 = scmp.ne.s32.totalorder %s338_s22, %s4019_s10  ;;  %p4027_p12 = scmp.lt.s32.totalorder %s338_s22, %s338_s22 }
  0x60   : > { %p4961_p8 = pneg %p4960_p7  ;;  %p4028_p0 = scmp.lt.s32.totalorder %s4019_s10, %s4019_s10 }
  0x62   : > { %p4022_p10 = pnand %p4020_p1, %p4961_p8  ;;  %p4029_p2 = por %p4028_p0, %p4027_p12 }
  0x64   : > { %p4023_p11 = pneg %p4022_p10 }
  0x66   : > { %p4030_p4 = pnand %p4029_p2, %p4023_p11 }
  0x68   : > { %4033 = shalt.err (!%p4030_p4)
}
  0x69   : > { %s4962_s11 = smov 8   ;;  %s4963_s17 = smov 128  }
  0x6a   : > { %3809 = dma.hbm_to_vmem [thread:$0]  (!%p4960_p7), %s4912_s5, 512, %s338_s22, [#allocation9], %s4963_s17, %s4963_s17, %s4962_s11  }
  0x6b   : > { %s4200_s3 = smov [#allocation13]   ;;  %p4964_p6 = pmov %p4961_p8 }
  0x6c   : > { %s369_s7 = sshll.u32 %s4200_s3, 4  ;;  %s370_s7 = int_to_ptr.vmem [resolvable:$true] %s369_s7 }
  0x6d   : > { %s4045_s21 = scalar_lea.vmem %s370_s7, 512  ;;  %p4053_p5 = scmp.lt.s32.totalorder %s370_s7, %s370_s7 }
  0x6e   : > { %p4046_p3 = scmp.ne.s32.totalorder %s370_s7, %s4045_s21  ;;  %p4054_p1 = scmp.lt.s32.totalorder %s4045_s21, %s4045_s21 }
  0x70   : > { %p4048_p9 = pnand %p4046_p3, %p4964_p6  ;;  %p4055_p8 = por %p4054_p1, %p4053_p5 }
  0x72   : > { %p4049_p2 = pneg %p4048_p9 }
  0x74   : > { %p4056_p10 = pnand %p4055_p8, %p4049_p2 }
  0x76   : > { %4059 = shalt.err (!%p4056_p10)
}
  0x77   : > { %3815 = dma.hbm_to_vmem [thread:$0]  (!%p4960_p7), %s4916_s9, 512, %s370_s7, [#allocation12], %s4963_s17, %s4963_s17, %s4962_s11  }
  0x78   : > { %s4965_s0 = sld [smem:[#allocation25_spill]]  ;;  %s390_s27 = scalar_lea.vmem [#allocation2], %s4379_s16 }
  0x79   : > { %s397_s12 = sshll.u32 %s390_s27, 4  ;;  %s4966_s3 = sand.u32 1, %s4188_s19   ;;  %s398_s12 = int_to_ptr.vmem [resolvable:$true] %s397_s12 }
  0x7a   : > { %s387_s21 = scalar_lea.sflag [#allocation3], %s4966_s3  ;;  %p4967_p12 = scmp.ne.s32.totalorder %s4959_s20, 0 }
  0x7e   : > { %s4453_s26 = scalar_lea.hbm %s4965_s0, %s4382_s25  ;;  %s4065_s17 = scalar_lea.hbm %s4965_s0, 256 }
  0x7f   : > { %s4060_s1 = scalar_lea.hbm %s4453_s26, 128  ;;  %p4066_p7 = scmp.lt.s32.totalorder %s4453_s26, %s4965_s0 }
  0x80   : > { %p4061_p11 = scmp.ne.s32.totalorder %s4453_s26, %s4060_s1  ;;  %p4067_p3 = scmp.lt.s32.totalorder %s4065_s17, %s4060_s1 }
  0x82   : > { %p4063_p0 = pnand %p4061_p11, %p4967_p12  ;;  %p4068_p6 = por %p4067_p3, %p4066_p7 }
  0x84   : > { %p4064_p4 = pneg %p4063_p0 }
  0x86   : > { %p4069_p9 = pnand %p4068_p6, %p4064_p4 }
  0x88   : > { %4072 = shalt.err (!%p4069_p9)
}
  0x89   : > { %s4073_s30 = scalar_lea.vmem %s398_s12, 128  ;;  %s4201_s10 = smov [#allocation2]  }
  0x8a   : > { %p4074_p2 = scmp.ne.s32.totalorder %s398_s12, %s4073_s30  ;;  %s4078_s27 = sshll.u32 %s4201_s10, 4  ;;  %s4079_s27 = int_to_ptr.vmem [resolvable:$false] %s4078_s27 }
  0x8b   : > { %s4080_s3 = scalar_lea.vmem %s4079_s27, 256  ;;  %p4081_p8 = scmp.lt.s32.totalorder %s398_s12, %s4079_s27 }
  0x8c   : > { %p4076_p5 = pnand %p4074_p2, %p4967_p12  ;;  %p4082_p10 = scmp.lt.s32.totalorder %s4080_s3, %s4073_s30 }
  0x8e   : > { %p4077_p1 = pneg %p4076_p5  ;;  %p4083_p11 = por %p4082_p10, %p4081_p8 }
  0x90   : > { %p4084_p0 = pnand %p4083_p11, %p4077_p1 }
  0x92   : > { %4087 = shalt.err (!%p4084_p0)
}
  0x93   : > { %3819 = dma.hbm_to_vmem [thread:$0]  (!%p4384_p13), %s4453_s26, 128, %s398_s12, %s387_s21  }
  0x94   : > { %s431_s11 = scalar_lea.hbm %s4909_s2, %s4382_s25  ;;  %s426_s17 = scalar_lea.vmem [#allocation7], %s4379_s16 }
  0x95   : > { %s433_s7 = sshll.u32 %s426_s17, 4  ;;  %s4088_s29 = scalar_lea.hbm %s431_s11, 128  ;;  %s434_s7 = int_to_ptr.vmem [resolvable:$true] %s433_s7 }
  0x96   : > { %p4089_p4 = scmp.ne.s32.totalorder %s431_s11, %s4088_s29  ;;  %s4093_s27 = scalar_lea.hbm %s4909_s2, 256 }
  0x97   : > { %p4094_p6 = scmp.lt.s32.totalorder %s431_s11, %s4909_s2  ;;  %p4095_p9 = scmp.lt.s32.totalorder %s4093_s27, %s4088_s29 }
  0x98   : > { %p4091_p7 = pnand %p4089_p4, %p4967_p12 }
  0x99   : > { %p4096_p2 = por %p4095_p9, %p4094_p6 }
  0x9a   : > { %p4092_p3 = pneg %p4091_p7 }
  0x9c   : > { %p4097_p5 = pnand %p4096_p2, %p4092_p3 }
  0x9e   : > { %4100 = shalt.err (!%p4097_p5)
}
  0x9f   : > { %s4101_s16 = scalar_lea.vmem %s434_s7, 128  ;;  %s4202_s25 = smov [#allocation7]  }
  0xa0   : > { %p4102_p1 = scmp.ne.s32.totalorder %s434_s7, %s4101_s16  ;;  %s4106_s26 = sshll.u32 %s4202_s25, 4  ;;  %s4107_s26 = int_to_ptr.vmem [resolvable:$false] %s4106_s26 }
  0xa1   : > { %s4108_s12 = scalar_lea.vmem %s4107_s26, 256  ;;  %p4109_p11 = scmp.lt.s32.totalorder %s434_s7, %s4107_s26 }
  0xa2   : > { %p4104_p8 = pnand %p4102_p1, %p4967_p12  ;;  %p4110_p0 = scmp.lt.s32.totalorder %s4108_s12, %s4101_s16 }
  0xa4   : > { %p4105_p10 = pneg %p4104_p8  ;;  %p4111_p4 = por %p4110_p0, %p4109_p11 }
  0xa6   : > { %p4112_p7 = pnand %p4111_p4, %p4105_p10 }
  0xa8   : > { %4115 = shalt.err (!%p4112_p7)
}
  0xa9   : > { %3825 = dma.hbm_to_vmem [thread:$0]  (!%p4384_p13), %s431_s11, 128, %s434_s7, %s4398_s15  }
  0xaa   : > { %p4968_p3 = scmp.ne.s32.totalorder %s4947_s24, 0 }
  0xab   : > { %s4495_s0 = sand.u32 (!%p4968_p3), 1, %s4184_s18   ;;  %p4969_p12 = scmp.ne.s32.totalorder (!%p4968_p3), %s4953_s13, 0 }
  0xac   : > { %442 = sbr.rel (%p4968_p3) target bundleno = 1464 (0x5b8), region = 64  ;;  %s4498_s20 = sshll.u32 (!%p4968_p3), %s4495_s0, 3 }
  0xad   : > { %s445_s21 = scalar_lea.sflag (!%p4968_p3), [#allocation3], %s4495_s0  ;;  %s448_s1 = scalar_lea.vmem (!%p4968_p3), [#allocation2], %s4498_s20 }
  0xb1   : > { %4159 = dma.done.wait (%p4969_p12), %s445_s21, 128  }
  0xb2   : > { %4161 = vsyncadd (%p4969_p12), %s445_s21, 4294967168  ;;  %s453_s24 = sand.u32 1, %s4303_s23   ;;  %s457_s28 = scalar_lea.vmem [#allocation5], %s4498_s20 }
  0xb3   : > { %s454_s15 = scalar_lea.sflag [#allocation6], %s453_s24 }
  0xb4   : > { %4163 = dma.done.wait (%p4969_p12), %s454_s15, 256  }
  0xb5   : > { %4165 = vsyncadd (%p4969_p12), %s454_s15, 4294967040  ;;  %s466_s22 = scalar_lea.vmem [#allocation7], %s4498_s20  ;;  %p4970_p13 = scmp.eq.s32.totalorder %s4303_s23, 0 }
  0xb7   : > { %4167 = dma.done.wait (%p4970_p13), [#allocation9], 1024   ;;  %p4971_p6 = pmov %p4970_p13 }
  0xb9   : > { %4169 = vsyncadd (%p4971_p6), [#allocation9], 4294966272  ;;  %p4972_p9 = pmov %p4971_p6 }
  0xba   : > { %p4973_p2 = pmov %p4971_p6 }
  0xbb   : > { %4171 = dma.done.wait (%p4972_p9), [#allocation12], 1024  }
  0xbc   : > { %4173 = vsyncadd (%p4973_p2), [#allocation12], 4294966272  ;;  %v4203_v0 = vmov 0.0   ;;  %vm4204_vm0 = vmmov 0   ;;  %v622_v1 = vld [vmem:[#allocation10 + $0x18] sm:$0xff]  ;;  %v621_v3 = vld [vmem:[#allocation10 + $0x10] sm:$0xff]  ;;  %v814_v30 = vlaneseq }
  0xbd   : > { %3666 = vmatprep.subr.mxu1 %v4203_v0  ;;  %3655 = vmatprep.subr.mxu0 %v4203_v0  ;;  %v537_v2 = vld [vmem:[#allocation8 + $0x18] sm:$0xff]  ;;  %v536_v4 = vld [vmem:[#allocation8 + $0x10] sm:$0xff]  ;;  %v620_v5 = vld [vmem:[#allocation10 + $0x8] sm:$0xff]  ;;  %vm545_vm1 = vcmask 261120   ;;  %s4205_s29 = smov 116   ;;  %s4206_s30 = smov 124  }
  0xbe   : > { %3674 = vmatprep.mubr.msk.f32.mxu1 %vm4204_vm0, %v4203_v0  ;;  %3663 = vmatprep.mubr.msk.f32.mxu0 %vm4204_vm0, %v4203_v0  ;;  %v535_v6 = vld [vmem:[#allocation8 + $0x8] sm:$0xff]  ;;  %v619_v7 = vld [vmem:[#allocation10] sm:$0xff]  ;;  %v531_v10 = vld [vmem:[%s448_s1] sm:$0xff]  ;;  %s4207_s10 = smov 120   ;;  %s4208_s27 = smov 112   ;;  %v815_v34 = vshrl.u32 %v814_v30, 7 }
  0xbf   : > { %3667 = vmatpush3.msra.mxu1 %v622_v1  ;;  %3656 = vmatpush3.msra.mxu0 %v537_v2  ;;  %v534_v8 = vld [vmem:[#allocation8] sm:$0xff]  ;;  %v706_v11 = vld [vmem:[#allocation11 + $0x18] sm:$0xff]  ;;  %v705_v12 = vld [vmem:[#allocation11 + $0x10] sm:$0xff]  ;;  %s4209_s3 = smov 108   ;;  %s4210_s16 = smov 104   ;;  %vm1669_vm2 = vcmask 31744  }
  0xc0   : > { %3668 = vmatprep.subr.mxu1 %v4203_v0  ;;  %3657 = vmatprep.subr.mxu0 %v4203_v0  ;;  %v532_v9 = vld [vmem:[%s457_s28] sm:$0xff]  ;;  %v533_v15 = vld [vmem:[%s466_s22] sm:$0xff]  ;;  %s4211_s25 = smov 100   ;;  %v4212_v28 = vmov 1983009808   ;;  %vm2278_vm3 = vcmask 64512  }
  0xc1   : > { %3669 = vmatpush3.msra.mxu1 %v621_v3  ;;  %3658 = vmatpush3.msra.mxu0 %v536_v4  ;;  %v704_v13 = vld [vmem:[#allocation11 + $0x8] sm:$0xff]  ;;  %v703_v14 = vld [vmem:[#allocation11] sm:$0xff]  ;;  %v3537_v16 = vld [vmem:[%s4913_s6] ss:$0 sm:$0xff]  ;;  %v812_v29 = vunpack.c.l.s4 %v4212_v28  ;;  %v4213_v31 = vmov 1934713408  }
  0xc2   : > { %3670 = vmatprep.subr.mxu1 %v4203_v0  ;;  %3659 = vmatprep.subr.mxu0 %v4203_v0  ;;  %v3535_v18 = vld [vmem:[%s4911_s4] ss:$0 sm:$0xff]  ;;  %v876_v32 = vunpack.c.l.s4 %v4213_v31  ;;  %s4214_s21 = smov 8   ;;  %s4215_s1 = smov 4   ;;  %vm3253_vm4 = vcmask 97280   ;;  %vm3255_vm5 = vcmask 130048  }
  0xc3   : > { %3671 = vmatpush3.msra.mxu1 %v620_v5  ;;  %3660 = vmatpush3.msra.mxu0 %v535_v6  ;;  %v3539_v24 = vld [vmem:[%s4915_s8] ss:$0 sm:$0xff]  ;;  %v813_v33 = vunpack.c.0.s8 %v812_v29  ;;  %s4216_s24 = smov 12   ;;  %s4217_s15 = smov 20   ;;  %vm3257_vm6 = vcmask 162816   ;;  %vm3259_vm7 = vcmask 195584  }
  0xc4   : > { %3672 = vmatprep.subr.mxu1 %v4203_v0  ;;  %3661 = vmatprep.subr.mxu0 %v4203_v0  ;;  %v877_v37 = vunpack.c.0.s8 %v876_v32  ;;  %s4218_s28 = smov 16   ;;  %s4219_s22 = smov 28   ;;  %vm3261_vm8 = vcmask 228352  }
  0xc5   : > { %3673 = vmatpush3.msra.mxu1 %v619_v7  ;;  %3662 = vmatpush3.msra.mxu0 %v534_v8  ;;  %v4583_v38 = vsub.s32 %v813_v33, %v815_v34  ;;  %s4220_s13 = smov 24   ;;  %s4974_s7 = sld [smem:[#allocation29_spill]] }
  0xc6   : > { %3675 = vmatmul.mubr.msk.f32.vlgmr.msra.gmra.mxu1 %vm545_vm1, %v532_v9  ;;  %3664 = vmatmul.mubr.msk.f32.vlgmr.msra.gmra.mxu0 %vm545_vm1, %v531_v10  ;;  %v4585_v45 = vsub.s32 %v877_v37, %v815_v34  ;;  %s3349_s26 = scalar_lea.sflag [#allocation4], %s4495_s0  ;;  %p4976_p1 = scmp.ne.s32.totalorder %s4954_s14, 0 }
  0xc7   : > { %3677 = vmatprep.subr.mxu0 %v4203_v0  ;;  %3685 = vmatprep.mubr.msk.f32.mxu0 %vm4204_vm0, %v4203_v0 }
  0xc8   : > { %3678 = vmatpush3.msra.mxu0 %v706_v11  ;;  %3688 = vmatprep.subr.mxu1 %v4203_v0 }
  0xc9   : > { %3679 = vmatprep.subr.mxu0 %v4203_v0  ;;  %3690 = vmatprep.mubr.msk.f32.mxu1 %vm4204_vm0, %v4203_v0 }
  0xca   : > { %3680 = vmatpush3.msra.mxu0 %v705_v12 }
  0xcb   : > { %3681 = vmatprep.subr.mxu0 %v4203_v0 }
  0xcc   : > { %3682 = vmatpush3.msra.mxu0 %v704_v13 }
  0xcd   : > { %3683 = vmatprep.subr.mxu0 %v4203_v0 }
  0xce   : > { %3684 = vmatpush3.msra.mxu0 %v703_v14 }
  0xcf   : > { %3686 = vmatmul.mubr.msk.f32.vlgmr.msra.gmra.mxu0 %vm545_vm1, %v533_v15  ;;  %3708 = vmatprep.subr.mxu0 %v4203_v0 }
  0xd0   : > { %3710 = vmatprep.mubr.msk.f32.mxu0 %vm4204_vm0, %v4203_v0 }
 0x186   : > { %v699_v17 = vpop.f32.mrf.mxu1  ;;  %v615_v19 = vpop.f32.mrf.mxu0 }
 0x187   : > { %v700_v20 = vadd.f32 %v3537_v16, %v699_v17  ;;  %v4560_v23 = vadd.f32 %v3535_v18, %v615_v19 }
 0x188   : > { %v3676_v21 = vpop.f32.mrf.mxu1  ;;  %v3665_v22 = vpop.f32.mrf.mxu0 }
 0x189   : > { %1088 = vrot.lane.b32.xlu1 %v700_v20, %s4205_s29  ;;  %1082 = vrot.lane.b32.xlu0 %v700_v20, %s4206_s30 }
 0x18d   : > { %1085 = vrot.lane.b32.xlu0 %v700_v20, %s4207_s10  ;;  %788 = vrot.lane.b32.xlu1 %v4560_v23, %s4206_s30 }
 0x18f   : > { %v783_v25 = vpop.f32.mrf.mxu0 }
 0x190   : > { %v4576_v26 = vadd.f32 %v3539_v24, %v783_v25 }
 0x191   : > { %791 = vrot.lane.b32.xlu0 %v4560_v23, %s4207_s10  ;;  %794 = vrot.lane.b32.xlu1 %v4560_v23, %s4205_s29  ;;  %v3687_v27 = vpop.f32.mrf.mxu0 }
 0x195   : > { %1091 = vrot.lane.b32.xlu0 %v700_v20, %s4208_s27  ;;  %1094 = vrot.lane.b32.xlu1 %v700_v20, %s4209_s3 }
 0x199   : > { %1097 = vrot.lane.b32.xlu0 %v700_v20, %s4210_s16  ;;  %1100 = vrot.lane.b32.xlu1 %v700_v20, %s4211_s25 }
 0x19d   : > { %797 = vrot.lane.b32.xlu0 %v4560_v23, %s4208_s27  ;;  %800 = vrot.lane.b32.xlu1 %v4560_v23, %s4209_s3 }
 0x1a1   : > { %803 = vrot.lane.b32.xlu0 %v4560_v23, %s4210_s16  ;;  %806 = vrot.lane.b32.xlu1 %v4560_v23, %s4211_s25 }
 0x1a5   : > { %1376 = vrot.lane.b32.xlu1 %v4576_v26, %s4206_s30  ;;  %1379 = vrot.lane.b32.xlu0 %v4576_v26, %s4207_s10  ;;  %s530_s30 = scalar_lea.vmem [#allocation14], %s4498_s20 }
 0x1a6   : > { %s3362_s10 = sshll.u32 %s530_s30, 4  ;;  %s3363_s10 = int_to_ptr.vmem [resolvable:$true] %s3362_s10 }
 0x1a7   : > { %s4116_s12 = scalar_lea.vmem %s3363_s10, 128 }
 0x1a8   : > { %p4117_p5 = scmp.ne.s32.totalorder %s3363_s10, %s4116_s12 }
 0x1a9   : > { %1382 = vrot.lane.b32.xlu1 %v4576_v26, %s4205_s29  ;;  %1385 = vrot.lane.b32.xlu0 %v4576_v26, %s4208_s27  ;;  %s3600_s29 = sshll.u32 %s4303_s23, 7  ;;  %s4221_s23 = smov [#allocation14]  }
 0x1aa   : > { %p4118_p8 = pnand %p4117_p5, %p4976_p1  ;;  %s4120_s20 = sshll.u32 %s4221_s23, 4  ;;  %s4121_s20 = int_to_ptr.vmem [resolvable:$false] %s4120_s20 }
 0x1ab   : > { %p4123_p11 = scmp.lt.s32.totalorder %s3363_s10, %s4121_s20 }
 0x1ac   : > { %p4119_p10 = pneg %p4118_p8 }
 0x1ad   : > { %1388 = vrot.lane.b32.xlu1 %v4576_v26, %s4209_s3 }
 0x1fb   : > { %v1089_v35 = vpop.permute.xlu1 %1088  ;;  %v1083_v36 = vpop.permute.xlu0 %1082 }
 0x1fc   : > { %v1119_v39 = vcombine.low %v1083_v36, %v1089_v35  ;;  %v1120_v40 = vcombine.high %v1083_v36, %v1089_v35 }
 0x1fe   : > { %v1127_v46 = vrot.slane %v1119_v39, %v4583_v38  ;;  %v1134_v47 = vrot.slane %v1120_v40, %v4583_v38 }
 0x1ff   : > { %v1086_v41 = vpop.permute.xlu0 %1085  ;;  %v789_v42 = vpop.permute.xlu1 %788 }
 0x200   : > { %v1103_v43 = vcombine.low %v700_v20, %v1086_v41  ;;  %v1104_v44 = vcombine.high %v700_v20, %v1086_v41 }
 0x202   : > { %v1111_v48 = vrot.slane %v1103_v43, %v4583_v38  ;;  %v1118_v49 = vrot.slane %v1104_v44, %v4583_v38 }
 0x203   : > { %v792_v50 = vpop.permute.xlu0 %791  ;;  %v795_v51 = vpop.permute.xlu1 %794 }
 0x204   : > { %v1167_v52 = vcombine.low %v1111_v48, %v1127_v46  ;;  %v1168_v53 = vcombine.high %v1111_v48, %v1127_v46  ;;  %v1183_v54 = vcombine.low %v1118_v49, %v1134_v47  ;;  %v1184_v55 = vcombine.high %v1118_v49, %v1134_v47 }
 0x205   : > { %v809_v56 = vcombine.low %v4560_v23, %v792_v50  ;;  %v810_v57 = vcombine.high %v4560_v23, %v792_v50  ;;  %v825_v58 = vcombine.low %v789_v42, %v795_v51  ;;  %v826_v59 = vcombine.high %v789_v42, %v795_v51 }
 0x206   : > { %v1175_v60 = vrot.slane %v1167_v52, %v4585_v45  ;;  %v1182_v61 = vrot.slane %v1168_v53, %v4585_v45  ;;  %v1191_v62 = vrot.slane %v1183_v54, %v4585_v45  ;;  %v1198_v63 = vrot.slane %v1184_v55, %v4585_v45 }
 0x207   : > { %v817_v1 = vrot.slane %v809_v56, %v4583_v38  ;;  %v824_v2 = vrot.slane %v810_v57, %v4583_v38  ;;  %v833_v3 = vrot.slane %v825_v58, %v4583_v38  ;;  %v840_v4 = vrot.slane %v826_v59, %v4583_v38  ;;  %v1092_v5 = vpop.permute.xlu0 %1091  ;;  %v1095_v6 = vpop.permute.xlu1 %1094 }
 0x208   : > { %v3549_v7 = vcombine.low %v1175_v60, %v1182_v61  ;;  %v3551_v8 = vcombine.high %v1175_v60, %v1182_v61  ;;  %v3553_v9 = vcombine.low %v1191_v62, %v1198_v63  ;;  %v3555_v10 = vcombine.high %v1191_v62, %v1198_v63 }
 0x209   : > { %v873_v11 = vcombine.low %v817_v1, %v833_v3  ;;  %v874_v12 = vcombine.high %v817_v1, %v833_v3  ;;  %v889_v13 = vcombine.low %v824_v2, %v840_v4  ;;  %v890_v14 = vcombine.high %v824_v2, %v840_v4 }
 0x20a   : > { %v4602_v15 = vrot.slane %v3549_v7, %v4583_v38  ;;  %v4605_v16 = vrot.slane %v3551_v8, %v4583_v38  ;;  %v4608_v17 = vrot.slane %v3553_v9, %v4583_v38  ;;  %v4611_v18 = vrot.slane %v3555_v10, %v4583_v38 }
 0x20b   : > { %v881_v19 = vrot.slane %v873_v11, %v4585_v45  ;;  %v888_v20 = vrot.slane %v874_v12, %v4585_v45  ;;  %v897_v21 = vrot.slane %v889_v13, %v4585_v45  ;;  %v904_v22 = vrot.slane %v890_v14, %v4585_v45  ;;  %v1098_v23 = vpop.permute.xlu0 %1097  ;;  %v1101_v24 = vpop.permute.xlu1 %1100 }
 0x20c   : > { %v1303_v25 = vcombine.low %v4602_v15, %v4605_v16  ;;  %v1335_v27 = vcombine.low %v4608_v17, %v4611_v18  ;;  %v1135_v32 = vcombine.low %v1092_v5, %v1098_v23  ;;  %v1136_v33 = vcombine.high %v1092_v5, %v1098_v23 }
 0x20d   : > { %v3541_v28 = vcombine.low %v881_v19, %v888_v20  ;;  %v3543_v29 = vcombine.high %v881_v19, %v888_v20  ;;  %v3545_v30 = vcombine.low %v897_v21, %v904_v22  ;;  %v3547_v31 = vcombine.high %v897_v21, %v904_v22 }
 0x20e   : > { %v1151_v34 = vcombine.low %v1095_v6, %v1101_v24  ;;  %v1152_v35 = vcombine.high %v1095_v6, %v1101_v24  ;;  %v1143_v43 = vrot.slane %v1135_v32, %v4583_v38  ;;  %v1150_v44 = vrot.slane %v1136_v33, %v4583_v38 }
 0x20f   : > { %v4622_v36 = vrot.slane %v3541_v28, %v4583_v38  ;;  %v4625_v37 = vrot.slane %v3543_v29, %v4583_v38  ;;  %v4628_v39 = vrot.slane %v3545_v30, %v4583_v38  ;;  %v4631_v40 = vrot.slane %v3547_v31, %v4583_v38  ;;  %v798_v41 = vpop.permute.xlu0 %797  ;;  %v801_v42 = vpop.permute.xlu1 %800 }
 0x210   : > { %v1159_v46 = vrot.slane %v1151_v34, %v4583_v38  ;;  %v1166_v47 = vrot.slane %v1152_v35, %v4583_v38  ;;  %v1304_v48 = vcombine.high %v4602_v15, %v4605_v16  ;;  %v1336_v49 = vcombine.high %v4608_v17, %v4611_v18 }
 0x211   : > { %v1009_v50 = vcombine.low %v4622_v36, %v4625_v37  ;;  %v1041_v51 = vcombine.low %v4628_v39, %v4631_v40  ;;  %v1311_v56 = vrot.slane %v1303_v25, %v4585_v45  ;;  %v1343_v57 = vrot.slane %v1335_v27, %v4585_v45 }
 0x212   : > { %v1199_v52 = vcombine.low %v1143_v43, %v1159_v46  ;;  %v1200_v53 = vcombine.high %v1143_v43, %v1159_v46  ;;  %v1215_v54 = vcombine.low %v1150_v44, %v1166_v47  ;;  %v1216_v55 = vcombine.high %v1150_v44, %v1166_v47 }
 0x213   : > { %v804_v58 = vpop.permute.xlu0 %803  ;;  %v807_v59 = vpop.permute.xlu1 %806  ;;  %v4648_v60 = vrot.slane %v1009_v50, %v4585_v45  ;;  %v1049_v61 = vrot.slane %v1041_v51, %v4585_v45  ;;  %v1367_v3 = vcombine.low %v1311_v56, %v1343_v57  ;;  %v1010_v23 = vcombine.high %v4622_v36, %v4625_v37 }
 0x214   : > { %v1207_v62 = vrot.slane %v1199_v52, %v4585_v45  ;;  %v1214_v63 = vrot.slane %v1200_v53, %v4585_v45  ;;  %v1223_v1 = vrot.slane %v1215_v54, %v4585_v45  ;;  %v1230_v2 = vrot.slane %v1216_v55, %v4585_v45 }
 0x215   : > { %v841_v4 = vcombine.low %v798_v41, %v804_v58  ;;  %v842_v5 = vcombine.high %v798_v41, %v804_v58  ;;  %v857_v6 = vcombine.low %v801_v42, %v807_v59  ;;  %3689 = vmatpush3.xpose.msk.msra.mxu1 %vm1669_vm2, %v1367_v3  ;;  %v858_v13 = vcombine.high %v801_v42, %v807_v59 }
 0x216   : > { %v3550_v7 = vcombine.low %v1207_v62, %v1214_v63  ;;  %v3552_v8 = vcombine.high %v1207_v62, %v1214_v63  ;;  %v3554_v9 = vcombine.low %v1223_v1, %v1230_v2  ;;  %v3556_v10 = vcombine.high %v1223_v1, %v1230_v2  ;;  %3693 = vmatprep.subr.mxu1 %v4203_v0 }
 0x217   : > { %v849_v11 = vrot.slane %v841_v4, %v4583_v38  ;;  %v856_v12 = vrot.slane %v842_v5, %v4583_v38  ;;  %v865_v14 = vrot.slane %v857_v6, %v4583_v38  ;;  %v872_v19 = vrot.slane %v858_v13, %v4583_v38  ;;  %v1377_v3 = vpop.permute.xlu1 %1376  ;;  %v1380_v4 = vpop.permute.xlu0 %1379 }
 0x218   : > { %v1254_v15 = vrot.slane %v3550_v7, %v4583_v38  ;;  %v1270_v16 = vrot.slane %v3552_v8, %v4583_v38  ;;  %v1286_v17 = vrot.slane %v3554_v9, %v4583_v38  ;;  %v1302_v18 = vrot.slane %v3556_v10, %v4583_v38 }
 0x219   : > { %v905_v20 = vcombine.low %v849_v11, %v865_v14  ;;  %v906_v21 = vcombine.high %v849_v11, %v865_v14  ;;  %v1073_v22 = vcombine.low %v4648_v60, %v1049_v61  ;;  %v1042_v24 = vcombine.high %v4628_v39, %v4631_v40 }
 0x21a   : > { %v1319_v25 = vcombine.low %v1254_v15, %v1270_v16  ;;  %v921_v29 = vcombine.low %v856_v12, %v872_v19  ;;  %v922_v30 = vcombine.high %v856_v12, %v872_v19  ;;  %v1351_v31 = vcombine.low %v1286_v17, %v1302_v18 }
 0x21b   : > { %v913_v27 = vrot.slane %v905_v20, %v4585_v45  ;;  %v920_v28 = vrot.slane %v906_v21, %v4585_v45  ;;  %3691 = vmatmul.mubr.msk.f32.vlgmr.msra.gmra.mxu1 %vm1669_vm2, %v1073_v22  ;;  %v1368_v32 = vcombine.high %v1311_v56, %v1343_v57  ;;  %v1318_v33 = vrot.slane %v1304_v48, %v4585_v45 }
 0x21c   : > { %3695 = vmatprep.mubr.msk.f32.mxu1 %vm4204_vm0, %v4203_v0  ;;  %v1350_v34 = vrot.slane %v1336_v49, %v4585_v45  ;;  %v929_v35 = vrot.slane %v921_v29, %v4585_v45  ;;  %v936_v36 = vrot.slane %v922_v30, %v4585_v45  ;;  %v1074_v40 = vcombine.high %v4648_v60, %v1049_v61 }
 0x21d   : > { %v3542_v37 = vcombine.low %v913_v27, %v920_v28  ;;  %v3544_v39 = vcombine.high %v913_v27, %v920_v28  ;;  %3694 = vmatpush3.xpose.msk.msra.mxu1 %vm1669_vm2, %v1368_v32  ;;  %v1024_v41 = vrot.slane %v1010_v23, %v4585_v45  ;;  %v1056_v42 = vrot.slane %v1042_v24, %v4585_v45 }
 0x21e   : > { %v3546_v46 = vcombine.low %v929_v35, %v936_v36  ;;  %v3548_v47 = vcombine.high %v929_v35, %v936_v36  ;;  %3698 = vmatprep.subr.mxu1 %v4203_v0  ;;  %v1320_v48 = vcombine.high %v1254_v15, %v1270_v16  ;;  %v1369_v49 = vcombine.low %v1318_v33, %v1350_v34  ;;  %v1383_v15 = vpop.permute.xlu1 %1382 }
 0x21f   : > { %v960_v43 = vrot.slane %v3542_v37, %v4583_v38  ;;  %v976_v44 = vrot.slane %v3544_v39, %v4583_v38  ;;  %v1327_v50 = vrot.slane %v1319_v25, %v4585_v45  ;;  %v1359_v51 = vrot.slane %v1351_v31, %v4585_v45 }
 0x220   : > { %v1352_v52 = vcombine.high %v1286_v17, %v1302_v18  ;;  %v992_v53 = vrot.slane %v3546_v46, %v4583_v38  ;;  %v1008_v54 = vrot.slane %v3548_v47, %v4583_v38  ;;  %3696 = vmatmul.mubr.msk.f32.vlgmr.msra.gmra.mxu1 %vm1669_vm2, %v1074_v40  ;;  %v1075_v58 = vcombine.low %v1024_v41, %v1056_v42 }
 0x221   : > { %v1025_v55 = vcombine.low %v960_v43, %v976_v44  ;;  %3699 = vmatpush3.xpose.msk.msra.mxu1 %vm1669_vm2, %v1369_v49  ;;  %3700 = vmatprep.mubr.msk.f32.mxu1 %vm4204_vm0, %v4203_v0  ;;  %v1371_v56 = vcombine.low %v1327_v50, %v1359_v51  ;;  %v1026_v60 = vcombine.high %v960_v43, %v976_v44 }
 0x222   : > { %v1057_v57 = vcombine.low %v992_v53, %v1008_v54  ;;  %3703 = vmatprep.subr.mxu1 %v4203_v0  ;;  %v1370_v61 = vcombine.high %v1318_v33, %v1350_v34  ;;  %v1334_v62 = vrot.slane %v1320_v48, %v4585_v45  ;;  %v1058_v63 = vcombine.high %v992_v53, %v1008_v54 }
 0x223   : > { %v1033_v59 = vrot.slane %v1025_v55, %v4585_v45  ;;  %3709 = vmatpush3.xpose.msk.msra.mxu0 %vm1669_vm2, %v1371_v56  ;;  %v1366_v2 = vrot.slane %v1352_v52, %v4585_v45  ;;  %v1076_v5 = vcombine.high %v1024_v41, %v1056_v42  ;;  %v1397_v7 = vcombine.low %v4576_v26, %v1380_v4 }
 0x224   : > { %3701 = vmatmul.mubr.msk.f32.vlgmr.msra.gmra.mxu1 %vm1669_vm2, %v1075_v58  ;;  %3718 = vmatprep.subr.mxu0 %v4203_v0  ;;  %v1065_v1 = vrot.slane %v1057_v57, %v4585_v45  ;;  %v1398_v8 = vcombine.high %v4576_v26, %v1380_v4  ;;  %v1372_v9 = vcombine.high %v1327_v50, %v1359_v51 }
 0x225   : > { %3704 = vmatpush3.xpose.msk.msra.mxu1 %vm1669_vm2, %v1370_v61  ;;  %3705 = vmatprep.mubr.msk.f32.mxu1 %vm4204_vm0, %v4203_v0  ;;  %v1040_v10 = vrot.slane %v1026_v60, %v4585_v45  ;;  %v1373_v12 = vcombine.low %v1334_v62, %v1366_v2  ;;  %v1072_v13 = vrot.slane %v1058_v63, %v4585_v45 }
 0x226   : > { %3713 = vmatprep.subr.mxu1 %v4203_v0  ;;  %v1077_v6 = vcombine.low %v1033_v59, %v1065_v1  ;;  %v1078_v11 = vcombine.high %v1033_v59, %v1065_v1  ;;  %v1405_v14 = vrot.slane %v1397_v7, %v4583_v38  ;;  %v1412_v16 = vrot.slane %v1398_v8, %v4583_v38 }
 0x227   : > { %v1413_v17 = vcombine.low %v1377_v3, %v1383_v15  ;;  %v1414_v18 = vcombine.high %v1377_v3, %v1383_v15  ;;  %v1374_v19 = vcombine.high %v1334_v62, %v1366_v2  ;;  %v1079_v20 = vcombine.low %v1040_v10, %v1072_v13 }
 0x228   : > { %3706 = vmatmul.mubr.msk.f32.vlgmr.msra.gmra.mxu1 %vm1669_vm2, %v1076_v5  ;;  %3711 = vmatmul.mubr.msk.f32.vlgmr.msra.gmra.mxu0 %vm1669_vm2, %v1077_v6  ;;  %v1080_v23 = vcombine.high %v1040_v10, %v1072_v13 }
 0x229   : > { %3714 = vmatpush3.xpose.msk.msra.mxu1 %vm1669_vm2, %v1372_v9  ;;  %3715 = vmatprep.mubr.msk.f32.mxu1 %vm4204_vm0, %v4203_v0  ;;  %v1421_v21 = vrot.slane %v1413_v17, %v4583_v38  ;;  %v1428_v22 = vrot.slane %v1414_v18, %v4583_v38 }
 0x22a   : > { %3723 = vmatprep.subr.mxu1 %v4203_v0  ;;  %3719 = vmatpush3.xpose.msk.msra.mxu0 %vm1669_vm2, %v1373_v12 }
 0x22b   : > { %3720 = vmatprep.mubr.msk.f32.mxu0 %vm4204_vm0, %v4203_v0  ;;  %3728 = vmatprep.subr.mxu0 %v4203_v0  ;;  %v1461_v24 = vcombine.low %v1405_v14, %v1421_v21  ;;  %v1462_v25 = vcombine.high %v1405_v14, %v1421_v21  ;;  %v1477_v27 = vcombine.low %v1412_v16, %v1428_v22 }
 0x22c   : > { %3716 = vmatmul.mubr.msk.f32.vlgmr.msra.gmra.mxu1 %vm1669_vm2, %v1078_v11  ;;  %v1478_v28 = vcombine.high %v1412_v16, %v1428_v22  ;;  %v1386_v16 = vpop.permute.xlu0 %1385 }
 0x22d   : > { %3724 = vmatpush3.xpose.msk.msra.mxu1 %vm1669_vm2, %v1374_v19  ;;  %3725 = vmatprep.mubr.msk.f32.mxu1 %vm4204_vm0, %v4203_v0  ;;  %v1469_v29 = vrot.slane %v1461_v24, %v4585_v45  ;;  %v1476_v30 = vrot.slane %v1462_v25, %v4585_v45  ;;  %v1485_v31 = vrot.slane %v1477_v27, %v4585_v45 }
 0x22e   : > { %3721 = vmatmul.mubr.msk.f32.vlgmr.msra.gmra.mxu0 %vm1669_vm2, %v1079_v20  ;;  %3733 = vmatprep.subr.mxu1 %v4203_v0  ;;  %v1492_v32 = vrot.slane %v1478_v28, %v4585_v45  ;;  %v1389_v20 = vpop.permute.xlu1 %1388 }
 0x22f   : > { %3730 = vmatprep.mubr.msk.f32.mxu0 %vm4204_vm0, %v4203_v0  ;;  %v3557_v33 = vcombine.low %v1469_v29, %v1476_v30  ;;  %v3559_v34 = vcombine.high %v1469_v29, %v1476_v30 }
 0x230   : > { %3726 = vmatmul.mubr.msk.f32.vlgmr.msra.gmra.mxu1 %vm1669_vm2, %v1080_v23  ;;  %v3561_v35 = vcombine.low %v1485_v31, %v1492_v32  ;;  %v3563_v36 = vcombine.high %v1485_v31, %v1492_v32 }
 0x231   : > { %3735 = vmatprep.mubr.msk.f32.mxu1 %vm4204_vm0, %v4203_v0  ;;  %v1541_v37 = vrot.slane %v3557_v33, %v4583_v38  ;;  %v1557_v39 = vrot.slane %v3559_v34, %v4583_v38 }
 0x232   : > { %v1573_v40 = vrot.slane %v3561_v35, %v4583_v38  ;;  %v1589_v41 = vrot.slane %v3563_v36, %v4583_v38 }
 0x233   : > { %v1597_v42 = vcombine.low %v1541_v37, %v1557_v39  ;;  %v1598_v49 = vcombine.high %v1541_v37, %v1557_v39 }
 0x234   : > { %v1629_v43 = vcombine.low %v1573_v40, %v1589_v41  ;;  %v1630_v50 = vcombine.high %v1573_v40, %v1589_v41 }
 0x235   : > { %v1605_v44 = vrot.slane %v1597_v42, %v4585_v45  ;;  %v4748_v51 = vrot.slane %v1598_v49, %v4585_v45 }
 0x236   : > { %v1637_v46 = vrot.slane %v1629_v43, %v4585_v45  ;;  %v4751_v52 = vrot.slane %v1630_v50, %v4585_v45 }
 0x238   : > { %v1661_v47 = vcombine.low %v1605_v44, %v1637_v46  ;;  %v1662_v48 = vcombine.high %v1605_v44, %v1637_v46  ;;  %v1663_v53 = vcombine.low %v4748_v51, %v4751_v52  ;;  %v1664_v54 = vcombine.high %v4748_v51, %v4751_v52 }
 0x23a   : > { %3729 = vmatpush3.msra.mxu0 %v1661_v47  ;;  %3734 = vmatpush3.msra.mxu1 %v1662_v48 }
 0x23b   : > { %3738 = vmatprep.subr.mxu0 %v4203_v0  ;;  %3743 = vmatprep.subr.mxu1 %v4203_v0 }
 0x2db   : > { %v1742_v55 = vpop.f32.mrf.mxu1 }
 0x2dc   : > { %v2279_v56 = vsel %vm2278_vm3, %v1742_v55, -inf }
 0x2dd   : > { %v3692_v57 = vpop.f32.mrf.mxu1  ;;  %2280 = vmax.xlane.f32.xlu0 %v2279_v56 }
 0x2e0   : > { %v1818_v58 = vpop.f32.mrf.mxu1 }
 0x2e1   : > { %v2282_v8 = vsel %vm2278_vm3, %v1818_v58, -inf }
 0x2e2   : > { %v3697_v59 = vpop.f32.mrf.mxu1 }
 0x2e4   : > { %v1894_v60 = vpop.f32.mrf.mxu1 }
 0x2e5   : > { %v2285_v61 = vsel %vm2278_vm3, %v1894_v60, -inf }
 0x2e6   : > { %v3702_v62 = vpop.f32.mrf.mxu1  ;;  %2286 = vmax.xlane.f32.xlu0 %v2285_v61 }
 0x2e8   : > { %v1970_v63 = vpop.f32.mrf.mxu1  ;;  %v2046_v1 = vpop.f32.mrf.mxu0 }
 0x2e9   : > { %v2288_v2 = vsel %vm2278_vm3, %v1970_v63, -inf  ;;  %v2291_v3 = vsel %vm2278_vm3, %v2046_v1, -inf }
 0x2ea   : > { %v3707_v4 = vpop.f32.mrf.mxu1  ;;  %2289 = vmax.xlane.f32.xlu0 %v2288_v2  ;;  %2292 = vmax.xlane.f32.xlu1 %v2291_v3  ;;  %v3712_v5 = vpop.f32.mrf.mxu0 }
 0x2ec   : > { %v2122_v6 = vpop.f32.mrf.mxu1 }
 0x2ed   : > { %v2294_v7 = vsel %vm2278_vm3, %v2122_v6, -inf }
 0x2ee   : > { %v3717_v9 = vpop.f32.mrf.mxu1  ;;  %2295 = vmax.xlane.f32.xlu0 %v2294_v7  ;;  %v2198_v10 = vpop.f32.mrf.mxu0  ;;  %2283 = vmax.xlane.f32.xlu1 %v2282_v8 }
 0x2ef   : > { %v2297_v14 = vsel %vm2278_vm3, %v2198_v10, -inf }
 0x2f0   : > { %v2274_v11 = vpop.f32.mrf.mxu1  ;;  %v3722_v12 = vpop.f32.mrf.mxu0 }
 0x2f1   : > { %v2300_v13 = vsel %vm2278_vm3, %v2274_v11, -inf }
 0x2f2   : > { %v3727_v15 = vpop.f32.mrf.mxu1  ;;  %2301 = vmax.xlane.f32.xlu0 %v2300_v13  ;;  %2298 = vmax.xlane.f32.xlu1 %v2297_v14 }
 0x303   : > { %1391 = vrot.lane.b32.xlu1 %v4576_v26, %s4210_s16  ;;  %s4975_s16 = sld [smem:[#allocation30_spill]] }
 0x308   : > { %1394 = vrot.lane.b32.xlu0 %v4576_v26, %s4211_s25 }
 0x309   : > { %s4869_s25 = scalar_lea.hbm %s4975_s16, %s3600_s29 }
 0x366   : > { %v2281_v17 = vpop.xlane.xlu0 %2280 }
 0x367   : > { %v2303_v18 = vsub.f32 %v1742_v55, %v2281_v17 }
 0x369   : > { %v2311_v19 = vmul.f32 1.442695, %v2303_v18 }
 0x36b   : > { %3896 = vpow2.f32 %v2311_v19 }
 0x36f   : > { %v2287_v21 = vpop.xlane.xlu0 %2286 }
 0x370   : > { %v2305_v22 = vsub.f32 %v1894_v60, %v2287_v21 }
 0x372   : > { %v2315_v23 = vmul.f32 1.442695, %v2305_v22 }
 0x373   : > { %v2290_v24 = vpop.xlane.xlu0 %2289  ;;  %v2293_v25 = vpop.xlane.xlu1 %2292 }
 0x374   : > { %3898 = vpow2.f32 %v2315_v23  ;;  %v2306_v27 = vsub.f32 %v1970_v63, %v2290_v24  ;;  %v2307_v28 = vsub.f32 %v2046_v1, %v2293_v25 }
 0x376   : > { %v2317_v29 = vmul.f32 1.442695, %v2306_v27  ;;  %v2319_v30 = vmul.f32 1.442695, %v2307_v28 }
 0x377   : > { %v2296_v32 = vpop.xlane.xlu0 %2295  ;;  %v2284_v33 = vpop.xlane.xlu1 %2283 }
 0x378   : > { %v3897_v31 = vpop.eup %3896  ;;  %3900 = vpow2.f32 %v2317_v29  ;;  %v2308_v26 = vsub.f32 %v2122_v6, %v2296_v32  ;;  %v2304_v34 = vsub.f32 %v1818_v58, %v2284_v33 }
 0x379   : > { %3731 = vmatmul.mubr.msk.f32.vlgmr.msra.gmra.mxu0 %vm2278_vm3, %v3897_v31  ;;  %v2327_v35 = vsel %vm2278_vm3, %v3897_v31, 0.0  ;;  %3902 = vpow2.f32 %v2319_v30 }
 0x37a   : > { %3739 = vmatpush3.msra.mxu0 %v1663_v53  ;;  %2328 = vadd.xlane.f32.xlu1 %v2327_v35  ;;  %v2321_v36 = vmul.f32 1.442695, %v2308_v26  ;;  %v2313_v37 = vmul.f32 1.442695, %v2304_v34 }
 0x37b   : > { %3740 = vmatprep.mubr.msk.f32.mxu0 %vm4204_vm0, %v4203_v0  ;;  %3748 = vmatprep.subr.mxu0 %v4203_v0  ;;  %v2302_v39 = vpop.xlane.xlu0 %2301  ;;  %v2299_v40 = vpop.xlane.xlu1 %2298 }
 0x37c   : > { %3904 = vpow2.f32 %v2321_v36  ;;  %v2310_v41 = vsub.f32 %v2274_v11, %v2302_v39  ;;  %v2309_v42 = vsub.f32 %v2198_v10, %v2299_v40 }
 0x37d   : > { %3906 = vpow2.f32 %v2313_v37 }
 0x37e   : > { %v2325_v43 = vmul.f32 1.442695, %v2310_v41  ;;  %v2323_v46 = vmul.f32 1.442695, %v2309_v42 }
 0x37f   : > { %v1395_v44 = vpop.permute.xlu0 %1394  ;;  %v1392_v47 = vpop.permute.xlu1 %1391 }
 0x380   : > { %3908 = vpow2.f32 %v2325_v43  ;;  %v1445_v48 = vcombine.low %v1389_v20, %v1395_v44  ;;  %v1446_v49 = vcombine.high %v1389_v20, %v1395_v44  ;;  %v1429_v50 = vcombine.low %v1386_v16, %v1392_v47 }
 0x381   : > { %v3899_v53 = vpop.eup %3898  ;;  %v1430_v55 = vcombine.high %v1386_v16, %v1392_v47  ;;  %3910 = vpow2.f32 %v2323_v46 }
 0x382   : > { %v1453_v56 = vrot.slane %v1445_v48, %v4583_v38  ;;  %3741 = vmatmul.mubr.msk.f32.vlgmr.msra.gmra.mxu0 %vm2278_vm3, %v3899_v53  ;;  %v1437_v57 = vrot.slane %v1429_v50, %v4583_v38  ;;  %v1460_v58 = vrot.slane %v1446_v49, %v4583_v38  ;;  %v2333_v51 = vsel %vm2278_vm3, %v3899_v53, 0.0 }
 0x383   : > { %v1444_v59 = vrot.slane %v1430_v55, %v4583_v38  ;;  %3750 = vmatprep.mubr.msk.f32.mxu0 %vm4204_vm0, %v4203_v0 }
 0x384   : > { %v1493_v60 = vcombine.low %v1437_v57, %v1453_v56  ;;  %v1494_v61 = vcombine.high %v1437_v57, %v1453_v56 }
 0x385   : > { %v3901_v62 = vpop.eup %3900  ;;  %v1509_v63 = vcombine.low %v1444_v59, %v1460_v58  ;;  %v1510_v1 = vcombine.high %v1444_v59, %v1460_v58 }
 0x386   : > { %v3903_v2 = vpop.eup %3902  ;;  %v1501_v3 = vrot.slane %v1493_v60, %v4585_v45  ;;  %v1508_v4 = vrot.slane %v1494_v61, %v4585_v45  ;;  %v2336_v5 = vsel %vm2278_vm3, %v3901_v62, 0.0 }
 0x387   : > { %v1517_v6 = vrot.slane %v1509_v63, %v4585_v45  ;;  %v1524_v7 = vrot.slane %v1510_v1, %v4585_v45  ;;  %2337 = vadd.xlane.f32.xlu1 %v2336_v5  ;;  %v2339_v8 = vsel %vm2278_vm3, %v3903_v2, 0.0 }
 0x388   : > { %v3558_v9 = vcombine.low %v1501_v3, %v1508_v4  ;;  %v3560_v10 = vcombine.high %v1501_v3, %v1508_v4  ;;  %2340 = vadd.xlane.f32.xlu0 %v2339_v8 }
 0x389   : > { %v3905_v11 = vpop.eup %3904  ;;  %v3562_v12 = vcombine.low %v1517_v6, %v1524_v7  ;;  %v3564_v13 = vcombine.high %v1517_v6, %v1524_v7 }
 0x38a   : > { %v3907_v14 = vpop.eup %3906  ;;  %v1548_v15 = vrot.slane %v3558_v9, %v4583_v38  ;;  %v1564_v16 = vrot.slane %v3560_v10, %v4583_v38  ;;  %v2342_v17 = vsel %vm2278_vm3, %v3905_v11, 0.0 }
 0x38b   : > { %v1580_v18 = vrot.slane %v3562_v12, %v4583_v38  ;;  %v1596_v19 = vrot.slane %v3564_v13, %v4583_v38  ;;  %2343 = vadd.xlane.f32.xlu1 %v2342_v17  ;;  %3736 = vmatmul.mubr.msk.f32.vlgmr.msra.gmra.mxu1 %vm2278_vm3, %v3907_v14  ;;  %v2330_v20 = vsel %vm2278_vm3, %v3907_v14, 0.0 }
 0x38c   : > { %3744 = vmatpush3.msra.mxu1 %v1664_v54  ;;  %2331 = vadd.xlane.f32.xlu0 %v2330_v20  ;;  %v1613_v21 = vcombine.low %v1548_v15, %v1564_v16  ;;  %v1614_v22 = vcombine.high %v1548_v15, %v1564_v16 }
 0x38d   : > { %v3909_v23 = vpop.eup %3908  ;;  %3745 = vmatprep.mubr.msk.f32.mxu1 %vm4204_vm0, %v4203_v0  ;;  %3753 = vmatprep.subr.mxu1 %v4203_v0  ;;  %v1645_v24 = vcombine.low %v1580_v18, %v1596_v19  ;;  %v1646_v25 = vcombine.high %v1580_v18, %v1596_v19 }
 0x38e   : > { %v2348_v27 = vsel %vm2278_vm3, %v3909_v23, 0.0  ;;  %v1621_v28 = vrot.slane %v1613_v21, %v4585_v45  ;;  %v3911_v54 = vpop.eup %3910  ;;  %v1628_v29 = vrot.slane %v1614_v22, %v4585_v45 }
 0x38f   : > { %2349 = vadd.xlane.f32.xlu1 %v2348_v27  ;;  %3746 = vmatmul.mubr.msk.f32.vlgmr.msra.gmra.mxu1 %vm2278_vm3, %v3901_v62  ;;  %v1653_v52 = vrot.slane %v1645_v24, %v4585_v45  ;;  %v1660_v30 = vrot.slane %v1646_v25, %v4585_v45  ;;  %v2345_v33 = vsel %vm2278_vm3, %v3911_v54, 0.0 }
 0x390   : > { %2334 = vadd.xlane.f32.xlu0 %v2333_v51  ;;  %3755 = vmatprep.mubr.msk.f32.mxu1 %vm4204_vm0, %v4203_v0 }
 0x391   : > { %v1665_v31 = vcombine.low %v1621_v28, %v1653_v52  ;;  %v1666_v32 = vcombine.high %v1621_v28, %v1653_v52  ;;  %v1667_v26 = vcombine.low %v1628_v29, %v1660_v30  ;;  %v1668_v34 = vcombine.high %v1628_v29, %v1660_v30 }
 0x393   : > { %3749 = vmatpush3.msra.mxu0 %v1665_v31  ;;  %3754 = vmatpush3.msra.mxu1 %v1666_v32 }
 0x394   : > { %2346 = vadd.xlane.f32.xlu0 %v2345_v33  ;;  %3751 = vmatmul.mubr.msk.f32.vlgmr.msra.gmra.mxu0 %vm2278_vm3, %v3903_v2 }
 0x395   : > { %3756 = vmatmul.mubr.msk.f32.vlgmr.msra.gmra.mxu1 %vm2278_vm3, %v3905_v11  ;;  %3758 = vmatprep.subr.mxu0 %v4203_v0 }
 0x396   : > { %3763 = vmatprep.subr.mxu1 %v4203_v0  ;;  %3759 = vmatpush3.msra.mxu0 %v1667_v26 }
 0x397   : > { %3764 = vmatpush3.msra.mxu1 %v1668_v34  ;;  %3760 = vmatprep.mubr.msk.f32.mxu0 %vm4204_vm0, %v4203_v0 }
 0x398   : > { %3765 = vmatprep.mubr.msk.f32.mxu1 %vm4204_vm0, %v4203_v0  ;;  %3761 = vmatmul.mubr.msk.f32.vlgmr.msra.gmra.mxu0 %vm2278_vm3, %v3911_v54 }
 0x399   : > { %3766 = vmatmul.mubr.msk.f32.vlgmr.msra.gmra.mxu1 %vm2278_vm3, %v3909_v23  ;;  %3768 = vmatprep.subr.mxu0 %v4203_v0 }
 0x39a   : > { %3776 = vmatprep.mubr.msk.f32.mxu0 %vm4204_vm0, %v4203_v0 }
 0x403   : > { %v2329_v39 = vpop.xlane.xlu1 %2328 }
 0x410   : > { %v2338_v42 = vpop.xlane.xlu1 %2337 }
 0x411   : > { %v2341_v35 = vpop.xlane.xlu0 %2340 }
 0x414   : > { %v2344_v44 = vpop.xlane.xlu1 %2343 }
 0x415   : > { %v2332_v36 = vpop.xlane.xlu0 %2331 }
 0x418   : > { %v2350_v48 = vpop.xlane.xlu1 %2349 }
 0x419   : > { %v2335_v41 = vpop.xlane.xlu0 %2334 }
 0x41a   : > { %3912 = vrcp.f32 %v2335_v41 }
 0x41b   : > { %3914 = vrcp.f32 %v2329_v39 }
 0x41c   : > { %3916 = vrcp.f32 %v2338_v42 }
 0x41d   : > { %3918 = vrcp.f32 %v2332_v36  ;;  %v2347_v47 = vpop.xlane.xlu0 %2346  ;;  %v3266_v36 = vld [vmem:[#allocation13 + $0x18] sm:$0xff] }
 0x41e   : > { %3920 = vrcp.f32 %v2341_v35  ;;  %3769 = vmatpush3.msra.mxu0 %v3266_v36 }
 0x41f   : > { %3922 = vrcp.f32 %v2347_v47  ;;  %3770 = vmatprep.subr.mxu0 %v4203_v0 }
 0x420   : > { %3924 = vrcp.f32 %v2344_v44 }
 0x421   : > { %3926 = vrcp.f32 %v2350_v48 }
 0x427   : > { %v3913_v49 = vpop.eup %3912 }
 0x428   : > { %v3915_v55 = vpop.eup %3914 }
 0x429   : > { %v3917_v57 = vpop.eup %3916 }
 0x42a   : > { %v3919_v59 = vpop.eup %3918 }
 0x42b   : > { %v3921_v16 = vpop.eup %3920 }
 0x42c   : > { %v3923_v18 = vpop.eup %3922 }
 0x42d   : > { %v3925_v24 = vpop.eup %3924 }
 0x42e   : > { %v3927_v51 = vpop.eup %3926 }
 0x439   : > { %v2420_v37 = vpop.f32.mrf.mxu0 }
 0x43a   : > { %v2943_v58 = vmul.f32 %v3915_v55, %v2420_v37 }
 0x43b   : > { %v3732_v40 = vpop.f32.mrf.mxu0 }
 0x442   : > { %v2566_v43 = vpop.f32.mrf.mxu0 }
 0x443   : > { %v2945_v53 = vmul.f32 %v3913_v49, %v2566_v43 }
 0x444   : > { %v3742_v46 = vpop.f32.mrf.mxu0 }
 0x445   : > { %v2951_v61 = vcombine.low %v2943_v58, %v2945_v53  ;;  %v2952_v62 = vcombine.high %v2943_v58, %v2945_v53 }
 0x447   : > { %v2959_v5 = vrot.slane %v2951_v61, %v4583_v38  ;;  %v2966_v6 = vrot.slane %v2952_v62, %v4583_v38 }
 0x44b   : > { %v2493_v50 = vpop.f32.mrf.mxu1 }
 0x44c   : > { %v2944_v63 = vmul.f32 %v3919_v59, %v2493_v50 }
 0x44d   : > { %v3737_v56 = vpop.f32.mrf.mxu1 }
 0x44f   : > { %v2639_v60 = vpop.f32.mrf.mxu1 }
 0x450   : > { %v2946_v1 = vmul.f32 %v3917_v57, %v2639_v60 }
 0x451   : > { %v3747_v2 = vpop.f32.mrf.mxu1 }
 0x452   : > { %v2967_v3 = vcombine.low %v2944_v63, %v2946_v1  ;;  %v2968_v4 = vcombine.high %v2944_v63, %v2946_v1 }
 0x454   : > { %v2975_v7 = vrot.slane %v2967_v3, %v4583_v38  ;;  %v2982_v8 = vrot.slane %v2968_v4, %v4583_v38  ;;  %v2712_v9 = vpop.f32.mrf.mxu0  ;;  %v3265_v4 = vld [vmem:[#allocation13 + $0x10] sm:$0xff] }
 0x455   : > { %v2785_v10 = vpop.f32.mrf.mxu1  ;;  %v2947_v25 = vmul.f32 %v3921_v16, %v2712_v9  ;;  %3771 = vmatpush3.msra.mxu0 %v3265_v4  ;;  %v3264_v9 = vld [vmem:[#allocation13 + $0x8] sm:$0xff] }
 0x456   : > { %v3015_v11 = vcombine.low %v2959_v5, %v2975_v7  ;;  %v3016_v12 = vcombine.high %v2959_v5, %v2975_v7  ;;  %v3031_v13 = vcombine.low %v2966_v6, %v2982_v8  ;;  %v3032_v14 = vcombine.high %v2966_v6, %v2982_v8  ;;  %v3752_v15 = vpop.f32.mrf.mxu0  ;;  %3772 = vmatprep.subr.mxu0 %v4203_v0 }
 0x457   : > { %v3757_v17 = vpop.f32.mrf.mxu1  ;;  %v2948_v32 = vmul.f32 %v3925_v24, %v2785_v10  ;;  %3773 = vmatpush3.msra.mxu0 %v3264_v9 }
 0x458   : > { %v3023_v19 = vrot.slane %v3015_v11, %v4585_v45  ;;  %v3030_v20 = vrot.slane %v3016_v12, %v4585_v45  ;;  %v3039_v21 = vrot.slane %v3031_v13, %v4585_v45  ;;  %v3046_v22 = vrot.slane %v3032_v14, %v4585_v45  ;;  %v2858_v23 = vpop.f32.mrf.mxu0  ;;  %3774 = vmatprep.subr.mxu0 %v4203_v0 }
 0x459   : > { %v2949_v27 = vmul.f32 %v3923_v18, %v2858_v23  ;;  %v2931_v28 = vpop.f32.mrf.mxu1 }
 0x45a   : > { %v3589_v52 = vcombine.low %v3023_v19, %v3030_v20  ;;  %v3591_v54 = vcombine.high %v3023_v19, %v3030_v20  ;;  %v3593_v29 = vcombine.low %v3039_v21, %v3046_v22  ;;  %v3595_v30 = vcombine.high %v3039_v21, %v3046_v22  ;;  %v3762_v31 = vpop.f32.mrf.mxu0  ;;  %v3263_v19 = vld [vmem:[#allocation13] sm:$0xff] }
 0x45b   : > { %v2983_v33 = vcombine.low %v2947_v25, %v2949_v27  ;;  %v2984_v26 = vcombine.high %v2947_v25, %v2949_v27  ;;  %v2950_v34 = vmul.f32 %v3927_v51, %v2931_v28  ;;  %v3767_v35 = vpop.f32.mrf.mxu1  ;;  %3775 = vmatpush3.msra.mxu0 %v3263_v19 }
 0x45c   : > { %v3095_v37 = vrot.slane %v3589_v52, %v4583_v38  ;;  %v3111_v39 = vrot.slane %v3591_v54, %v4583_v38  ;;  %v3127_v40 = vrot.slane %v3593_v29, %v4583_v38  ;;  %v3143_v41 = vrot.slane %v3595_v30, %v4583_v38 }
 0x45d   : > { %v2991_v42 = vrot.slane %v2983_v33, %v4583_v38  ;;  %v2998_v43 = vrot.slane %v2984_v26, %v4583_v38  ;;  %v2999_v44 = vcombine.low %v2948_v32, %v2950_v34  ;;  %v3000_v46 = vcombine.high %v2948_v32, %v2950_v34 }
 0x45e   : > { %v3152_v47 = vcombine.high %v3095_v37, %v3111_v39  ;;  %v3184_v48 = vcombine.high %v3127_v40, %v3143_v41  ;;  %v3151_v49 = vcombine.low %v3095_v37, %v3111_v39  ;;  %v3183_v50 = vcombine.low %v3127_v40, %v3143_v41  ;;  %v3597_v41 = vld [vmem:[%s4974_s7] ss:$0 sm:$0xff] }
 0x45f   : > { %v3007_v53 = vrot.slane %v2999_v44, %v4583_v38  ;;  %v3014_v55 = vrot.slane %v3000_v46, %v4583_v38 }
 0x460   : > { %v3166_v56 = vrot.slane %v3152_v47, %v4585_v45  ;;  %v3198_v57 = vrot.slane %v3184_v48, %v4585_v45  ;;  %v3159_v58 = vrot.slane %v3151_v49, %v4585_v45  ;;  %v3191_v59 = vrot.slane %v3183_v50, %v4585_v45 }
 0x461   : > { %v3047_v60 = vcombine.low %v2991_v42, %v3007_v53  ;;  %v3048_v61 = vcombine.high %v2991_v42, %v3007_v53  ;;  %v3063_v62 = vcombine.low %v2998_v43, %v3014_v55  ;;  %v3064_v63 = vcombine.high %v2998_v43, %v3014_v55 }
 0x462   : > { %v3217_v1 = vcombine.low %v3166_v56, %v3198_v57  ;;  %v3216_v2 = vcombine.high %v3159_v58, %v3191_v59  ;;  %v3215_v3 = vcombine.low %v3159_v58, %v3191_v59  ;;  %v3218_v14 = vcombine.high %v3166_v56, %v3198_v57 }
 0x463   : > { %v3055_v5 = vrot.slane %v3047_v60, %v4585_v45  ;;  %v3062_v6 = vrot.slane %v3048_v61, %v4585_v45  ;;  %v3071_v7 = vrot.slane %v3063_v62, %v4585_v45  ;;  %v3078_v8 = vrot.slane %v3064_v63, %v4585_v45 }
 0x464   : > { %3228 = vrot.lane.b32.xlu1 %v3217_v1, %s4214_s21  ;;  %3224 = vrot.lane.b32.xlu0 %v3216_v2, %s4215_s1  ;;  %s4122_s21 = scalar_lea.vmem %s4121_s20, 256 }
 0x465   : > { %v3590_v10 = vcombine.low %v3055_v5, %v3062_v6  ;;  %v3592_v11 = vcombine.high %v3055_v5, %v3062_v6  ;;  %v3594_v12 = vcombine.low %v3071_v7, %v3078_v8  ;;  %v3596_v13 = vcombine.high %v3071_v7, %v3078_v8  ;;  %p4124_p0 = scmp.lt.s32.totalorder %s4122_s21, %s4116_s12 }
 0x467   : > { %v3102_v15 = vrot.slane %v3590_v10, %v4583_v38  ;;  %v3118_v16 = vrot.slane %v3592_v11, %v4583_v38  ;;  %v3134_v17 = vrot.slane %v3594_v12, %v4583_v38  ;;  %v3150_v18 = vrot.slane %v3596_v13, %v4583_v38  ;;  %p4125_p4 = por %p4124_p0, %p4123_p11 }
 0x468   : > { %3232 = vrot.lane.b32.xlu1 %v3218_v14, %s4216_s24 }
 0x469   : > { %v3167_v20 = vcombine.low %v3102_v15, %v3118_v16  ;;  %v3199_v21 = vcombine.low %v3134_v17, %v3150_v18  ;;  %v3168_v22 = vcombine.high %v3102_v15, %v3118_v16  ;;  %v3200_v23 = vcombine.high %v3134_v17, %v3150_v18  ;;  %p4126_p7 = pnand %p4125_p4, %p4119_p10 }
 0x46b   : > { %v3175_v24 = vrot.slane %v3167_v20, %v4585_v45  ;;  %v3207_v25 = vrot.slane %v3199_v21, %v4585_v45  ;;  %v3182_v51 = vrot.slane %v3168_v22, %v4585_v45  ;;  %v3214_v38 = vrot.slane %v3200_v23, %v4585_v45 }
 0x46d   : > { %v3220_v27 = vcombine.high %v3175_v24, %v3207_v25  ;;  %v3219_v28 = vcombine.low %v3175_v24, %v3207_v25  ;;  %v3222_v0 = vcombine.high %v3182_v51, %v3214_v38  ;;  %v3221_v52 = vcombine.low %v3182_v51, %v3214_v38 }
 0x46f   : > { %3240 = vrot.lane.b32.xlu1 %v3220_v27, %s4217_s15  ;;  %3236 = vrot.lane.b32.xlu0 %v3219_v28, %s4218_s28 }
 0x473   : > { %3248 = vrot.lane.b32.xlu1 %v3222_v0, %s4219_s22  ;;  %3244 = vrot.lane.b32.xlu0 %v3221_v52, %s4220_s13 }
 0x4d6   : > { %v3229_v54 = vpop.permute.xlu1 %3228  ;;  %v3225_v29 = vpop.permute.xlu0 %3224 }
 0x4d7   : > { %v3251_v31 = vsel %vm1669_vm2, %v3215_v3, %v3225_v29 }
 0x4d8   : > { %v3252_v45 = vsel %vm2278_vm3, %v3251_v31, %v3229_v54 }
 0x4da   : > { %v3233_v30 = vpop.permute.xlu1 %3232 }
 0x4db   : > { %v3254_v32 = vsel %vm3253_vm4, %v3252_v45, %v3233_v30 }
 0x4e1   : > { %v3241_v33 = vpop.permute.xlu1 %3240  ;;  %v3237_v26 = vpop.permute.xlu0 %3236 }
 0x4e2   : > { %v3256_v34 = vsel %vm3255_vm5, %v3254_v32, %v3237_v26 }
 0x4e3   : > { %v3258_v36 = vsel %vm3257_vm6, %v3256_v34, %v3241_v33 }
 0x4e5   : > { %v3249_v35 = vpop.permute.xlu1 %3248  ;;  %v3245_v37 = vpop.permute.xlu0 %3244 }
 0x4e6   : > { %v3260_v39 = vsel %vm3259_vm7, %v3258_v36, %v3245_v37 }
 0x4e7   : > { %v3262_v40 = vsel %vm3261_vm8, %v3260_v39, %v3249_v35 }
 0x4e8   : > { %3777 = vmatmul.mubr.msk.f32.vlgmr.msra.gmra.mxu0 %vm545_vm1, %v3262_v40 }
 0x5a8   : > { %v3343_v42 = vpop.f32.mrf.mxu0 }
 0x5a9   : > { %v3344_v43 = vadd.f32 %v3597_v41, %v3343_v42 }
 0x5aa   : > { %v3778_v44 = vpop.f32.mrf.mxu0 }
 0x5ab   : > { %3347 = vst.msk [vmem:[%s530_s30] sm:$0xff] %vm545_vm1, %v3344_v43 }
 0x5ac   : > { %4129 = shalt.err (!%p4126_p7)
}
 0x5ad   : > { %s4130_s1 = scalar_lea.hbm %s4869_s25, 128  ;;  %s4134_s15 = scalar_lea.hbm %s4975_s16, 256 }
 0x5ae   : > { %p4131_p3 = scmp.ne.s32.totalorder %s4869_s25, %s4130_s1  ;;  %p4135_p6 = scmp.lt.s32.totalorder %s4869_s25, %s4975_s16 }
 0x5af   : > { %p4136_p9 = scmp.lt.s32.totalorder %s4134_s15, %s4130_s1 }
 0x5b0   : > { %p4132_p12 = pnand %p4131_p3, %p4976_p1 }
 0x5b1   : > { %p4137_p2 = por %p4136_p9, %p4135_p6 }
 0x5b2   : > { %p4133_p13 = pneg %p4132_p12 }
 0x5b4   : > { %p4138_p5 = pnand %p4137_p2, %p4133_p13 }
 0x5b6   : > { %4141 = shalt.err (!%p4138_p5)
}
 0x5b7   : > { %3801 = dma.vmem_to_hbm [thread:$0]  (%p4976_p1), %s3363_s10, 128, %s4869_s25, %s3349_s26  }
 0x5b8 PF: > { %s4977_s13 = sld [smem:[#allocation20_spill]] }
 0x5b9   : > { %s4978_s11 = sld [smem:[#allocation24_spill]] }
 0x5ba   : > { %s4979_s17 = sld [smem:[#allocation21_spill]] }
 0x5be   : > { %s3374_s7 = sand.u32 1, %s4977_s13  }
 0x5bf   : > { %p4980_p8 = scmp.ne.s32.totalorder %s4978_s11, 0  ;;  %s3375_s29 = scalar_lea.sflag [#allocation4], %s3374_s7 }
 0x5c0   : > { %p4981_p10 = scmp.ge.s32.totalorder %s4979_s17, 2 }
 0x5c2   : > { %p3827_p11 = pnand %p4981_p10, %p4980_p8 }
 0x5c4   : > { %p3828_p0 = pneg %p3827_p11 }
 0x5c6   : > { %4175 = dma.done.wait (%p3828_p0), %s3375_s29, 128  }
 0x5c7   : > { %4177 = vsyncadd (%p3828_p0), %s3375_s29, 4294967168  ;;  %s4982_s20 = sld [smem:[#allocation22_spill]]  ;;  %s4984_s17 = smov %s4184_s18 }
 0x5c8   : > { %s4983_s30 = sld [smem:[#allocation23_spill]]  ;;  %s4985_s18 = smov %s4188_s19 }
 0x5cd   : > { %p29_p4 = scmp.ge.s32.totalorder %s4982_s20, 4  }
 0x5ce   : > { %s4986_s19 = smov %s4983_s30 }
 0x5cf   :  { %31 = sbr.rel (!%p29_p4) target bundleno = 16 (0x10), region = 149 }
 0x5d4   :  { %3380 = vsyncpa [#allocation3], 1 }
 0x5d5   :  { %3382 = vsyncpa [#allocation3 + $0x1], 1 }
 0x5d6   :  { %3383 = vsyncpa [#allocation6], 1 }
 0x5d7   :  { %3385 = vsyncpa [#allocation6 + $0x1], 1 }
 0x5d8   :  { %3386 = vsyncpa [#allocation9], 1 }
 0x5d9   :  { %3387 = vsyncpa [#allocation12], 1 }
 0x5da   :  { %3388 = vsyncpa [#allocation4], 1 }
 0x5db   :  { %3390 = vsyncpa [#allocation4 + $0x1], 1 }

// kernel: tpu_custom_call.1
= control target key start
LH: loop header
LB: loop body
LE: loop exit
PB: predicated region body
PF: predicated region fallthrough
CT: control target
= control target key end

     0   :  { %s4907_s0 = inlined_call_operand.hbm [shape: f32[2,8,32], index: 0, kind: input, shape index: {}]   ;;  %s4908_s1 = inlined_call_operand.hbm [shape: f32[2,8,32], index: 1, kind: input, shape index: {}]   ;;  %s4909_s2 = inlined_call_operand.hbm [shape: f32[2,8,32], index: 2, kind: input, shape index: {}]   ;;  %s4910_s3 = inlined_call_operand.hbm [shape: f32[32,32], index: 3, kind: input, shape index: {}]   ;;  %s4911_s4 = inlined_call_operand.vmem [shape: f32[1,32], index: 4, kind: input, shape index: {}]   ;;  %s4912_s5 = inlined_call_operand.hbm [shape: f32[32,32], index: 5, kind: input, shape index: {}]   ;;  %s4913_s6 = inlined_call_operand.vmem [shape: f32[1,32], index: 6, kind: input, shape index: {}]   ;;  %s4914_s7 = inlined_call_operand.hbm [shape: f32[32,32], index: 7, kind: input, shape index: {}]   ;;  %s4915_s8 = inlined_call_operand.vmem [shape: f32[1,32], index: 8, kind: input, shape index: {}]   ;;  %s4916_s9 = inlined_call_operand.hbm [shape: f32[32,32], index: 9, kind: input, shape index: {}]   ;;  %s4917_s10 = inlined_call_operand.vmem [shape: f32[1,32], index: 10, kind: input, shape index: {}]   ;;  %s4918_s11 = inlined_call_operand.hbm [shape: f32[2,8,32], index: 11, kind: output, shape index: {}]  }
   0x1   :  { %4939 = sst [smem:[#allocation25_spill]] %s4907_s0 }
   0x2   :  { %4940 = sst [smem:[#allocation26_spill]] %s4908_s1 }
   0x3   :  { %4941 = sst [smem:[#allocation27_spill]] %s4910_s3 }
   0x4   :  { %4942 = sst [smem:[#allocation28_spill]] %s4914_s7 }
   0x5   :  { %4943 = sst [smem:[#allocation29_spill]] %s4917_s10 }
   0x6   :  { %4944 = sst [smem:[#allocation30_spill]] %s4918_s11 }
   0x7   :  { %16 = vsyncpa [#allocation3], 0 }
   0x8   :  { %18 = vsyncpa [#allocation3 + $0x1], 0 }
   0x9   :  { %19 = vsyncpa [#allocation6], 0 }
   0xa   :  { %21 = vsyncpa [#allocation6 + $0x1], 0 }
   0xb   :  { %22 = vsyncpa [#allocation9], 0 }
   0xc   :  { %23 = vsyncpa [#allocation12], 0 }
   0xd   :  { %24 = vsyncpa [#allocation4], 0 }
   0xe   :  { %26 = vsyncpa [#allocation4 + $0x1], 0  ;;  %s4282_s17 = smov 0   ;;  %s4284_s18 = smov 0  }
   0xf   :  { %s4286_s19 = smov 0   ;;  %s4288_s20 = smov 0  }
  0x10 LB: > { %4945 = sst [smem:[#allocation20_spill]] %s4180_s17  ;;  %s4194_s21 = smov [#allocation8]   ;;  %s4192_s20 = sphi %s4288_s20, %s4982_s20   ;;  %s4188_s19 = sphi %s4286_s19, %s4986_s19   ;;  %s4184_s18 = sphi %s4284_s18, %s4985_s18   ;;  %s4180_s17 = sphi %s4282_s17, %s4984_s17  }
  0x11   : > { %4946 = sst [smem:[#allocation21_spill]] %s4192_s20  ;;  %s321_s22 = sshll.u32 %s4194_s21, 4  ;;  %s322_s22 = int_to_ptr.vmem [resolvable:$true] %s321_s22 }
  0x12   : > { %s4303_s23 = sadd.s32 4294967295, %s4192_s20   ;;  %p3514_p0 = scmp.ge.s32.totalorder %s4192_s20, 1 }
  0x13   : > { %p4931_p1 = scmp.eq.s32.totalorder %s4303_s23, 0  ;;  %p309_p2 = scmp.lt.s32.totalorder %s4192_s20, 3 }
  0x14   : > { %s4195_s25 = smov [#allocation11]   ;;  %s3939_s28 = scalar_lea.vmem %s322_s22, 512 }
  0x15   : > { %p4308_p3 = pnand %p3514_p0, %p309_p2  ;;  %s353_s26 = sshll.u32 %s4195_s25, 4  ;;  %s354_s26 = int_to_ptr.vmem [resolvable:$true] %s353_s26 }
  0x16   : > { %p3940_p8 = scmp.ne.s32.totalorder %s322_s22, %s3939_s28  ;;  %p3947_p11 = scmp.lt.s32.totalorder %s322_s22, %s322_s22 }
  0x17   : > { %s4947_s24 = scalar_select %p4308_p3, 1, 0 }
  0x18   : > { %p3803_p5 = pneg %p4308_p3  ;;  %p3948_p12 = scmp.lt.s32.totalorder %s3939_s28, %s3939_s28 }
  0x1a   : > { %p4317_p6 = pnand %p3803_p5, %p4931_p1  ;;  %p3949_p13 = por %p3948_p12, %p3947_p11 }
  0x1c   : > { %s4948_s27 = scalar_select %p4317_p6, 1, 0 }
  0x1d   : > { %p4919_p7 = pneg %p4317_p6 }
  0x1f   : > { %p3942_p9 = pnand %p3940_p8, %p4919_p7 }
  0x21   : > { %p3943_p10 = pneg %p3942_p9 }
  0x23   : > { %p3950_p0 = pnand %p3949_p13, %p3943_p10 }
  0x25   : > { %3953 = shalt.err (!%p3950_p0)
}
  0x26   : > { %s4920_s29 = smov 128   ;;  %s4922_s30 = smov 8  }
  0x27   : > { %s4949_s3 = sld [smem:[#allocation27_spill]]  ;;  %s3965_s14 = scalar_lea.vmem %s354_s26, 512 }
  0x28   : > { %p3966_p2 = scmp.ne.s32.totalorder %s354_s26, %s3965_s14  ;;  %p3973_p9 = scmp.lt.s32.totalorder %s354_s26, %s354_s26 }
  0x29   : > { %p3974_p10 = scmp.lt.s32.totalorder %s3965_s14, %s3965_s14 }
  0x2a   : > { %p3968_p5 = pnand %p3966_p2, %p4919_p7 }
  0x2b   : > { %p3975_p11 = por %p3974_p10, %p3973_p9 }
  0x2c   : > { %p3969_p8 = pneg %p3968_p5 }
  0x2d   : > { %3806 = dma.hbm_to_vmem [thread:$0]  (!%p4317_p6), %s4949_s3, 512, %s322_s22, [#allocation9], %s4920_s29, %s4920_s29, %s4922_s30  }
  0x2e   : > { %p3976_p12 = pnand %p3975_p11, %p3969_p8 }
  0x30   : > { %3979 = shalt.err (!%p3976_p12)
}
  0x31   : > { %s4950_s7 = sld [smem:[#allocation28_spill]]  ;;  %s3513_s21 = sadd.s32 4294967294, %s4192_s20  }
  0x32   : > { %s4347_s22 = sadd.s32 1, %s4192_s20   ;;  %s39_s28 = sadd.s32 1, %s4188_s19 }
  0x33   : > { %4951 = sst [smem:[#allocation22_spill]] %s4347_s22  ;;  %s36_s25 = ssub.s32 %s4192_s20, %s4347_s22 }
  0x34   : > { %p37_p13 = scmp.eq.s32.totalorder %s36_s25, 0  ;;  %p46_p0 = scmp.ne.s32.totalorder %s4188_s19, %s4184_s18 }
  0x35   : > { %p47_p2 = scmp.eq.s32.totalorder %s4192_s20, 0  ;;  %p52_p5 = scmp.ne.s32.totalorder %s4184_s18, %s4180_s17 }
  0x36   : > { %s4358_s12 = scalar_select %p37_p13, %s4188_s19, %s39_s28  }
  0x37   : > { %3812 = dma.hbm_to_vmem [thread:$0]  (!%p4317_p6), %s4950_s7, 512, %s354_s26, [#allocation12], %s4920_s29, %s4920_s29, %s4922_s30  }
  0x38   : > { %4952 = sst [smem:[#allocation23_spill]] %s4358_s12  ;;  %p48_p8 = por %p47_p2, %p46_p0 }
  0x39   : > { %p4362_p9 = por %p4931_p1, %p52_p5  ;;  %p296_p10 = scmp.eq.s32.totalorder %s4303_s23, 1 }
  0x3a   : > { %p302_p11 = scmp.eq.s32.totalorder %s3513_s21, 1  ;;  %p3834_p12 = scmp.lt.s32.totalorder %s4192_s20, 2 }
  0x3b   : > { %s4953_s13 = scalar_select %p4362_p9, 1, 0 }
  0x3c   : > { %s4924_s26 = sand.u32 1, %s4188_s19   ;;  %p4369_p4 = por %p296_p10, %p46_p0 }
  0x3d   : > { %p4373_p7 = por %p302_p11, %p52_p5  ;;  %s4379_s16 = sshll.u32 %s4924_s26, 3 }
  0x3e   : > { %s4954_s14 = scalar_select %p4369_p4, 1, 0 }
  0x3f   : > { %s4955_s15 = scalar_select %p4373_p7, 1, 0 }
  0x40   : > { %s4382_s25 = sshll.u32 %s4192_s20, 7  ;;  %p4384_p13 = pnand %p3834_p12, %p48_p8 }
  0x41   : > { %4956 = sst [smem:[#allocation24_spill]] %s4955_s15  ;;  %s404_s21 = sand.u32 1, %s4192_s20  }
  0x42   : > { %s4958_s1 = sld [smem:[#allocation26_spill]]  ;;  %s408_s26 = scalar_lea.vmem [#allocation5], %s4379_s16 }
  0x43   : > { %s415_s7 = sshll.u32 %s408_s26, 4  ;;  %s4198_s12 = smov [#allocation10]   ;;  %s4396_s7 = int_to_ptr.vmem [resolvable:$true] %s415_s7 }
  0x44   : > { %s337_s22 = sshll.u32 %s4198_s12, 4  ;;  %s4398_s15 = scalar_lea.sflag [#allocation6], %s404_s21  ;;  %s338_s22 = int_to_ptr.vmem [resolvable:$true] %s337_s22 }
  0x45   : > { %p4404_p2 = pneg %p4384_p13 }
  0x47   : > { %s4959_s20 = scalar_select %p4404_p2, 1, 0 }
  0x48   : > { %s4393_s3 = scalar_lea.hbm %s4958_s1, %s4382_s25  ;;  %s3985_s26 = scalar_lea.hbm %s4958_s1, 256 }
  0x49   : > { %s3980_s17 = scalar_lea.hbm %s4393_s3, 128  ;;  %p3986_p10 = scmp.lt.s32.totalorder %s4393_s3, %s4958_s1 }
  0x4a   : > { %p3981_p0 = scmp.ne.s32.totalorder %s4393_s3, %s3980_s17  ;;  %p3987_p11 = scmp.lt.s32.totalorder %s3985_s26, %s3980_s17 }
  0x4c   : > { %p3983_p5 = pnand %p4404_p2, %p3981_p0  ;;  %p3988_p12 = por %p3987_p11, %p3986_p10 }
  0x4e   : > { %p3984_p8 = pneg %p3983_p5 }
  0x50   : > { %p3989_p1 = pnand %p3988_p12, %p3984_p8 }
  0x52   : > { %3992 = shalt.err (!%p3989_p1)
}
  0x53   : > { %s3993_s12 = scalar_lea.vmem %s4396_s7, 128  ;;  %s4199_s21 = smov [#allocation5]  }
  0x54   : > { %p3994_p7 = scmp.ne.s32.totalorder %s4396_s7, %s3993_s12  ;;  %s3998_s29 = sshll.u32 %s4199_s21, 4  ;;  %s3999_s29 = int_to_ptr.vmem [resolvable:$false] %s3998_s29 }
  0x55   : > { %s4000_s30 = scalar_lea.vmem %s3999_s29, 256  ;;  %p4001_p4 = scmp.lt.s32.totalorder %s4396_s7, %s3999_s29 }
  0x56   : > { %p3996_p0 = pnand %p3994_p7, %p4404_p2  ;;  %p4002_p9 = scmp.lt.s32.totalorder %s4000_s30, %s3993_s12 }
  0x58   : > { %p3997_p5 = pneg %p3996_p0  ;;  %p4003_p3 = por %p4002_p9, %p4001_p4 }
  0x5a   : > { %p4004_p6 = pnand %p4003_p3, %p3997_p5 }
  0x5c   : > { %4007 = shalt.err (!%p4004_p6)
}
  0x5d   : > { %3822 = dma.hbm_to_vmem [thread:$0]  (!%p4384_p13), %s4393_s3, 128, %s4396_s7, %s4398_s15  }
  0x5e   : > { %s4019_s10 = scalar_lea.vmem %s338_s22, 512  ;;  %p4960_p7 = scmp.ne.s32.totalorder %s4948_s27, 0 }
  0x5f   : > { %p4020_p1 = scmp.ne.s32.totalorder %s338_s22, %s4019_s10  ;;  %p4027_p12 = scmp.lt.s32.totalorder %s338_s22, %s338_s22 }
  0x60   : > { %p4961_p8 = pneg %p4960_p7  ;;  %p4028_p0 = scmp.lt.s32.totalorder %s4019_s10, %s4019_s10 }
  0x62   : > { %p4022_p10 = pnand %p4020_p1, %p4961_p8  ;;  %p4029_p2 = por %p4028_p0, %p4027_p12 }
  0x64   : > { %p4023_p11 = pneg %p4022_p10 }
  0x66   : > { %p4030_p4 = pnand %p4029_p2, %p4023_p11 }
  0x68   : > { %4033 = shalt.err (!%p4030_p4)
}
  0x69   : > { %s4962_s11 = smov 8   ;;  %s4963_s17 = smov 128  }
  0x6a   : > { %3809 = dma.hbm_to_vmem [thread:$0]  (!%p4960_p7), %s4912_s5, 512, %s338_s22, [#allocation9], %s4963_s17, %s4963_s17, %s4962_s11  }
  0x6b   : > { %s4200_s3 = smov [#allocation13]   ;;  %p4964_p6 = pmov %p4961_p8 }
  0x6c   : > { %s369_s7 = sshll.u32 %s4200_s3, 4  ;;  %s370_s7 = int_to_ptr.vmem [resolvable:$true] %s369_s7 }
  0x6d   : > { %s4045_s21 = scalar_lea.vmem %s370_s7, 512  ;;  %p4053_p5 = scmp.lt.s32.totalorder %s370_s7, %s370_s7 }
  0x6e   : > { %p4046_p3 = scmp.ne.s32.totalorder %s370_s7, %s4045_s21  ;;  %p4054_p1 = scmp.lt.s32.totalorder %s4045_s21, %s4045_s21 }
  0x70   : > { %p4048_p9 = pnand %p4046_p3, %p4964_p6  ;;  %p4055_p8 = por %p4054_p1, %p4053_p5 }
  0x72   : > { %p4049_p2 = pneg %p4048_p9 }
  0x74   : > { %p4056_p10 = pnand %p4055_p8, %p4049_p2 }
  0x76   : > { %4059 = shalt.err (!%p4056_p10)
}
  0x77   : > { %3815 = dma.hbm_to_vmem [thread:$0]  (!%p4960_p7), %s4916_s9, 512, %s370_s7, [#allocation12], %s4963_s17, %s4963_s17, %s4962_s11  }
  0x78   : > { %s4965_s0 = sld [smem:[#allocation25_spill]]  ;;  %s390_s27 = scalar_lea.vmem [#allocation2], %s4379_s16 }
  0x79   : > { %s397_s12 = sshll.u32 %s390_s27, 4  ;;  %s4966_s3 = sand.u32 1, %s4188_s19   ;;  %s398_s12 = int_to_ptr.vmem [resolvable:$true] %s397_s12 }
  0x7a   : > { %s387_s21 = scalar_lea.sflag [#allocation3], %s4966_s3  ;;  %p4967_p12 = scmp.ne.s32.totalorder %s4959_s20, 0 }
  0x7e   : > { %s4453_s26 = scalar_lea.hbm %s4965_s0, %s4382_s25  ;;  %s4065_s17 = scalar_lea.hbm %s4965_s0, 256 }
  0x7f   : > { %s4060_s1 = scalar_lea.hbm %s4453_s26, 128  ;;  %p4066_p7 = scmp.lt.s32.totalorder %s4453_s26, %s4965_s0 }
  0x80   : > { %p4061_p11 = scmp.ne.s32.totalorder %s4453_s26, %s4060_s1  ;;  %p4067_p3 = scmp.lt.s32.totalorder %s4065_s17, %s4060_s1 }
  0x82   : > { %p4063_p0 = pnand %p4061_p11, %p4967_p12  ;;  %p4068_p6 = por %p4067_p3, %p4066_p7 }
  0x84   : > { %p4064_p4 = pneg %p4063_p0 }
  0x86   : > { %p4069_p9 = pnand %p4068_p6, %p4064_p4 }
  0x88   : > { %4072 = shalt.err (!%p4069_p9)
}
  0x89   : > { %s4073_s30 = scalar_lea.vmem %s398_s12, 128  ;;  %s4201_s10 = smov [#allocation2]  }
  0x8a   : > { %p4074_p2 = scmp.ne.s32.totalorder %s398_s12, %s4073_s30  ;;  %s4078_s27 = sshll.u32 %s4201_s10, 4  ;;  %s4079_s27 = int_to_ptr.vmem [resolvable:$false] %s4078_s27 }
  0x8b   : > { %s4080_s3 = scalar_lea.vmem %s4079_s27, 256  ;;  %p4081_p8 = scmp.lt.s32.totalorder %s398_s12, %s4079_s27 }
  0x8c   : > { %p4076_p5 = pnand %p4074_p2, %p4967_p12  ;;  %p4082_p10 = scmp.lt.s32.totalorder %s4080_s3, %s4073_s30 }
  0x8e   : > { %p4077_p1 = pneg %p4076_p5  ;;  %p4083_p11 = por %p4082_p10, %p4081_p8 }
  0x90   : > { %p4084_p0 = pnand %p4083_p11, %p4077_p1 }
  0x92   : > { %4087 = shalt.err (!%p4084_p0)
}
  0x93   : > { %3819 = dma.hbm_to_vmem [thread:$0]  (!%p4384_p13), %s4453_s26, 128, %s398_s12, %s387_s21  }
  0x94   : > { %s431_s11 = scalar_lea.hbm %s4909_s2, %s4382_s25  ;;  %s426_s17 = scalar_lea.vmem [#allocation7], %s4379_s16 }
  0x95   : > { %s433_s7 = sshll.u32 %s426_s17, 4  ;;  %s4088_s29 = scalar_lea.hbm %s431_s11, 128  ;;  %s434_s7 = int_to_ptr.vmem [resolvable:$true] %s433_s7 }
  0x96   : > { %p4089_p4 = scmp.ne.s32.totalorder %s431_s11, %s4088_s29  ;;  %s4093_s27 = scalar_lea.hbm %s4909_s2, 256 }
  0x97   : > { %p4094_p6 = scmp.lt.s32.totalorder %s431_s11, %s4909_s2  ;;  %p4095_p9 = scmp.lt.s32.totalorder %s4093_s27, %s4088_s29 }
  0x98   : > { %p4091_p7 = pnand %p4089_p4, %p4967_p12 }
  0x99   : > { %p4096_p2 = por %p4095_p9, %p4094_p6 }
  0x9a   : > { %p4092_p3 = pneg %p4091_p7 }
  0x9c   : > { %p4097_p5 = pnand %p4096_p2, %p4092_p3 }
  0x9e   : > { %4100 = shalt.err (!%p4097_p5)
}
  0x9f   : > { %s4101_s16 = scalar_lea.vmem %s434_s7, 128  ;;  %s4202_s25 = smov [#allocation7]  }
  0xa0   : > { %p4102_p1 = scmp.ne.s32.totalorder %s434_s7, %s4101_s16  ;;  %s4106_s26 = sshll.u32 %s4202_s25, 4  ;;  %s4107_s26 = int_to_ptr.vmem [resolvable:$false] %s4106_s26 }
  0xa1   : > { %s4108_s12 = scalar_lea.vmem %s4107_s26, 256  ;;  %p4109_p11 = scmp.lt.s32.totalorder %s434_s7, %s4107_s26 }
  0xa2   : > { %p4104_p8 = pnand %p4102_p1, %p4967_p12  ;;  %p4110_p0 = scmp.lt.s32.totalorder %s4108_s12, %s4101_s16 }
  0xa4   : > { %p4105_p10 = pneg %p4104_p8  ;;  %p4111_p4 = por %p4110_p0, %p4109_p11 }
  0xa6   : > { %p4112_p7 = pnand %p4111_p4, %p4105_p10 }
  0xa8   : > { %4115 = shalt.err (!%p4112_p7)
}
  0xa9   : > { %3825 = dma.hbm_to_vmem [thread:$0]  (!%p4384_p13), %s431_s11, 128, %s434_s7, %s4398_s15  }
  0xaa   : > { %p4968_p3 = scmp.ne.s32.totalorder %s4947_s24, 0 }
  0xab   : > { %s4495_s0 = sand.u32 (!%p4968_p3), 1, %s4184_s18   ;;  %p4969_p12 = scmp.ne.s32.totalorder (!%p4968_p3), %s4953_s13, 0 }
  0xac   : > { %442 = sbr.rel (%p4968_p3) target bundleno = 1464 (0x5b8), region = 64  ;;  %s4498_s20 = sshll.u32 (!%p4968_p3), %s4495_s0, 3 }
  0xad   : > { %s445_s21 = scalar_lea.sflag (!%p4968_p3), [#allocation3], %s4495_s0  ;;  %s448_s1 = scalar_lea.vmem (!%p4968_p3), [#allocation2], %s4498_s20 }
  0xb1   : > { %4159 = dma.done.wait (%p4969_p12), %s445_s21, 128  }
  0xb2   : > { %4161 = vsyncadd (%p4969_p12), %s445_s21, 4294967168  ;;  %s453_s24 = sand.u32 1, %s4303_s23   ;;  %s457_s28 = scalar_lea.vmem [#allocation5], %s4498_s20 }
  0xb3   : > { %s454_s15 = scalar_lea.sflag [#allocation6], %s453_s24 }
  0xb4   : > { %4163 = dma.done.wait (%p4969_p12), %s454_s15, 256  }
  0xb5   : > { %4165 = vsyncadd (%p4969_p12), %s454_s15, 4294967040  ;;  %s466_s22 = scalar_lea.vmem [#allocation7], %s4498_s20  ;;  %p4970_p13 = scmp.eq.s32.totalorder %s4303_s23, 0 }
  0xb7   : > { %4167 = dma.done.wait (%p4970_p13), [#allocation9], 1024   ;;  %p4971_p6 = pmov %p4970_p13 }
  0xb9   : > { %4169 = vsyncadd (%p4971_p6), [#allocation9], 4294966272  ;;  %p4972_p9 = pmov %p4971_p6 }
  0xba   : > { %p4973_p2 = pmov %p4971_p6 }
  0xbb   : > { %4171 = dma.done.wait (%p4972_p9), [#allocation12], 1024  }
  0xbc   : > { %4173 = vsyncadd (%p4973_p2), [#allocation12], 4294966272  ;;  %v4203_v0 = vmov 0.0   ;;  %vm4204_vm0 = vmmov 0   ;;  %v622_v1 = vld [vmem:[#allocation10 + $0x18] sm:$0xff]  ;;  %v621_v3 = vld [vmem:[#allocation10 + $0x10] sm:$0xff]  ;;  %v814_v30 = vlaneseq }
  0xbd   : > { %3666 = vmatprep.subr.mxu1 %v4203_v0  ;;  %3655 = vmatprep.subr.mxu0 %v4203_v0  ;;  %v537_v2 = vld [vmem:[#allocation8 + $0x18] sm:$0xff]  ;;  %v536_v4 = vld [vmem:[#allocation8 + $0x10] sm:$0xff]  ;;  %v620_v5 = vld [vmem:[#allocation10 + $0x8] sm:$0xff]  ;;  %vm545_vm1 = vcmask 261120   ;;  %s4205_s29 = smov 116   ;;  %s4206_s30 = smov 124  }
  0xbe   : > { %3674 = vmatprep.mubr.msk.f32.mxu1 %vm4204_vm0, %v4203_v0  ;;  %3663 = vmatprep.mubr.msk.f32.mxu0 %vm4204_vm0, %v4203_v0  ;;  %v535_v6 = vld [vmem:[#allocation8 + $0x8] sm:$0xff]  ;;  %v619_v7 = vld [vmem:[#allocation10] sm:$0xff]  ;;  %v531_v10 = vld [vmem:[%s448_s1] sm:$0xff]  ;;  %s4207_s10 = smov 120   ;;  %s4208_s27 = smov 112   ;;  %v815_v34 = vshrl.u32 %v814_v30, 7 }
  0xbf   : > { %3667 = vmatpush3.msra.mxu1 %v622_v1  ;;  %3656 = vmatpush3.msra.mxu0 %v537_v2  ;;  %v534_v8 = vld [vmem:[#allocation8] sm:$0xff]  ;;  %v706_v11 = vld [vmem:[#allocation11 + $0x18] sm:$0xff]  ;;  %v705_v12 = vld [vmem:[#allocation11 + $0x10] sm:$0xff]  ;;  %s4209_s3 = smov 108   ;;  %s4210_s16 = smov 104   ;;  %vm1669_vm2 = vcmask 31744  }
  0xc0   : > { %3668 = vmatprep.subr.mxu1 %v4203_v0  ;;  %3657 = vmatprep.subr.mxu0 %v4203_v0  ;;  %v532_v9 = vld [vmem:[%s457_s28] sm:$0xff]  ;;  %v533_v15 = vld [vmem:[%s466_s22] sm:$0xff]  ;;  %s4211_s25 = smov 100   ;;  %v4212_v28 = vmov 1983009808   ;;  %vm2278_vm3 = vcmask 64512  }
  0xc1   : > { %3669 = vmatpush3.msra.mxu1 %v621_v3  ;;  %3658 = vmatpush3.msra.mxu0 %v536_v4  ;;  %v704_v13 = vld [vmem:[#allocation11 + $0x8] sm:$0xff]  ;;  %v703_v14 = vld [vmem:[#allocation11] sm:$0xff]  ;;  %v3537_v16 = vld [vmem:[%s4913_s6] ss:$0 sm:$0xff]  ;;  %v812_v29 = vunpack.c.l.s4 %v4212_v28  ;;  %v4213_v31 = vmov 1934713408  }
  0xc2   : > { %3670 = vmatprep.subr.mxu1 %v4203_v0  ;;  %3659 = vmatprep.subr.mxu0 %v4203_v0  ;;  %v3535_v18 = vld [vmem:[%s4911_s4] ss:$0 sm:$0xff]  ;;  %v876_v32 = vunpack.c.l.s4 %v4213_v31  ;;  %s4214_s21 = smov 8   ;;  %s4215_s1 = smov 4   ;;  %vm3253_vm4 = vcmask 97280   ;;  %vm3255_vm5 = vcmask 130048  }
  0xc3   : > { %3671 = vmatpush3.msra.mxu1 %v620_v5  ;;  %3660 = vmatpush3.msra.mxu0 %v535_v6  ;;  %v3539_v24 = vld [vmem:[%s4915_s8] ss:$0 sm:$0xff]  ;;  %v813_v33 = vunpack.c.0.s8 %v812_v29  ;;  %s4216_s24 = smov 12   ;;  %s4217_s15 = smov 20   ;;  %vm3257_vm6 = vcmask 162816   ;;  %vm3259_vm7 = vcmask 195584  }
  0xc4   : > { %3672 = vmatprep.subr.mxu1 %v4203_v0  ;;  %3661 = vmatprep.subr.mxu0 %v4203_v0  ;;  %v877_v37 = vunpack.c.0.s8 %v876_v32  ;;  %s4218_s28 = smov 16   ;;  %s4219_s22 = smov 28   ;;  %vm3261_vm8 = vcmask 228352  }
  0xc5   : > { %3673 = vmatpush3.msra.mxu1 %v619_v7  ;;  %3662 = vmatpush3.msra.mxu0 %v534_v8  ;;  %v4583_v38 = vsub.s32 %v813_v33, %v815_v34  ;;  %s4220_s13 = smov 24   ;;  %s4974_s7 = sld [smem:[#allocation29_spill]] }
  0xc6   : > { %3675 = vmatmul.mubr.msk.f32.vlgmr.msra.gmra.mxu1 %vm545_vm1, %v532_v9  ;;  %3664 = vmatmul.mubr.msk.f32.vlgmr.msra.gmra.mxu0 %vm545_vm1, %v531_v10  ;;  %v4585_v45 = vsub.s32 %v877_v37, %v815_v34  ;;  %s3349_s26 = scalar_lea.sflag [#allocation4], %s4495_s0  ;;  %p4976_p1 = scmp.ne.s32.totalorder %s4954_s14, 0 }
  0xc7   : > { %3677 = vmatprep.subr.mxu0 %v4203_v0  ;;  %3685 = vmatprep.mubr.msk.f32.mxu0 %vm4204_vm0, %v4203_v0 }
  0xc8   : > { %3678 = vmatpush3.msra.mxu0 %v706_v11  ;;  %3688 = vmatprep.subr.mxu1 %v4203_v0 }
  0xc9   : > { %3679 = vmatprep.subr.mxu0 %v4203_v0  ;;  %3690 = vmatprep.mubr.msk.f32.mxu1 %vm4204_vm0, %v4203_v0 }
  0xca   : > { %3680 = vmatpush3.msra.mxu0 %v705_v12 }
  0xcb   : > { %3681 = vmatprep.subr.mxu0 %v4203_v0 }
  0xcc   : > { %3682 = vmatpush3.msra.mxu0 %v704_v13 }
  0xcd   : > { %3683 = vmatprep.subr.mxu0 %v4203_v0 }
  0xce   : > { %3684 = vmatpush3.msra.mxu0 %v703_v14 }
  0xcf   : > { %3686 = vmatmul.mubr.msk.f32.vlgmr.msra.gmra.mxu0 %vm545_vm1, %v533_v15  ;;  %3708 = vmatprep.subr.mxu0 %v4203_v0 }
  0xd0   : > { %3710 = vmatprep.mubr.msk.f32.mxu0 %vm4204_vm0, %v4203_v0 }
 0x186   : > { %v699_v17 = vpop.f32.mrf.mxu1  ;;  %v615_v19 = vpop.f32.mrf.mxu0 }
 0x187   : > { %v700_v20 = vadd.f32 %v3537_v16, %v699_v17  ;;  %v4560_v23 = vadd.f32 %v3535_v18, %v615_v19 }
 0x188   : > { %v3676_v21 = vpop.f32.mrf.mxu1  ;;  %v3665_v22 = vpop.f32.mrf.mxu0 }
 0x189   : > { %1088 = vrot.lane.b32.xlu1 %v700_v20, %s4205_s29  ;;  %1082 = vrot.lane.b32.xlu0 %v700_v20, %s4206_s30 }
 0x18d   : > { %1085 = vrot.lane.b32.xlu0 %v700_v20, %s4207_s10  ;;  %788 = vrot.lane.b32.xlu1 %v4560_v23, %s4206_s30 }
 0x18f   : > { %v783_v25 = vpop.f32.mrf.mxu0 }
 0x190   : > { %v4576_v26 = vadd.f32 %v3539_v24, %v783_v25 }
 0x191   : > { %791 = vrot.lane.b32.xlu0 %v4560_v23, %s4207_s10  ;;  %794 = vrot.lane.b32.xlu1 %v4560_v23, %s4205_s29  ;;  %v3687_v27 = vpop.f32.mrf.mxu0 }
 0x195   : > { %1091 = vrot.lane.b32.xlu0 %v700_v20, %s4208_s27  ;;  %1094 = vrot.lane.b32.xlu1 %v700_v20, %s4209_s3 }
 0x199   : > { %1097 = vrot.lane.b32.xlu0 %v700_v20, %s4210_s16  ;;  %1100 = vrot.lane.b32.xlu1 %v700_v20, %s4211_s25 }
 0x19d   : > { %797 = vrot.lane.b32.xlu0 %v4560_v23, %s4208_s27  ;;  %800 = vrot.lane.b32.xlu1 %v4560_v23, %s4209_s3 }
 0x1a1   : > { %803 = vrot.lane.b32.xlu0 %v4560_v23, %s4210_s16  ;;  %806 = vrot.lane.b32.xlu1 %v4560_v23, %s4211_s25 }
 0x1a5   : > { %1376 = vrot.lane.b32.xlu1 %v4576_v26, %s4206_s30  ;;  %1379 = vrot.lane.b32.xlu0 %v4576_v26, %s4207_s10  ;;  %s530_s30 = scalar_lea.vmem [#allocation14], %s4498_s20 }
 0x1a6   : > { %s3362_s10 = sshll.u32 %s530_s30, 4  ;;  %s3363_s10 = int_to_ptr.vmem [resolvable:$true] %s3362_s10 }
 0x1a7   : > { %s4116_s12 = scalar_lea.vmem %s3363_s10, 128 }
 0x1a8   : > { %p4117_p5 = scmp.ne.s32.totalorder %s3363_s10, %s4116_s12 }
 0x1a9   : > { %1382 = vrot.lane.b32.xlu1 %v4576_v26, %s4205_s29  ;;  %1385 = vrot.lane.b32.xlu0 %v4576_v26, %s4208_s27  ;;  %s3600_s29 = sshll.u32 %s4303_s23, 7  ;;  %s4221_s23 = smov [#allocation14]  }
 0x1aa   : > { %p4118_p8 = pnand %p4117_p5, %p4976_p1  ;;  %s4120_s20 = sshll.u32 %s4221_s23, 4  ;;  %s4121_s20 = int_to_ptr.vmem [resolvable:$false] %s4120_s20 }
 0x1ab   : > { %p4123_p11 = scmp.lt.s32.totalorder %s3363_s10, %s4121_s20 }
 0x1ac   : > { %p4119_p10 = pneg %p4118_p8 }
 0x1ad   : > { %1388 = vrot.lane.b32.xlu1 %v4576_v26, %s4209_s3 }
 0x1fb   : > { %v1089_v35 = vpop.permute.xlu1 %1088  ;;  %v1083_v36 = vpop.permute.xlu0 %1082 }
 0x1fc   : > { %v1119_v39 = vcombine.low %v1083_v36, %v1089_v35  ;;  %v1120_v40 = vcombine.high %v1083_v36, %v1089_v35 }
 0x1fe   : > { %v1127_v46 = vrot.slane %v1119_v39, %v4583_v38  ;;  %v1134_v47 = vrot.slane %v1120_v40, %v4583_v38 }
 0x1ff   : > { %v1086_v41 = vpop.permute.xlu0 %1085  ;;  %v789_v42 = vpop.permute.xlu1 %788 }
 0x200   : > { %v1103_v43 = vcombine.low %v700_v20, %v1086_v41  ;;  %v1104_v44 = vcombine.high %v700_v20, %v1086_v41 }
 0x202   : > { %v1111_v48 = vrot.slane %v1103_v43, %v4583_v38  ;;  %v1118_v49 = vrot.slane %v1104_v44, %v4583_v38 }
 0x203   : > { %v792_v50 = vpop.permute.xlu0 %791  ;;  %v795_v51 = vpop.permute.xlu1 %794 }
 0x204   : > { %v1167_v52 = vcombine.low %v1111_v48, %v1127_v46  ;;  %v1168_v53 = vcombine.high %v1111_v48, %v1127_v46  ;;  %v1183_v54 = vcombine.low %v1118_v49, %v1134_v47  ;;  %v1184_v55 = vcombine.high %v1118_v49, %v1134_v47 }
 0x205   : > { %v809_v56 = vcombine.low %v4560_v23, %v792_v50  ;;  %v810_v57 = vcombine.high %v4560_v23, %v792_v50  ;;  %v825_v58 = vcombine.low %v789_v42, %v795_v51  ;;  %v826_v59 = vcombine.high %v789_v42, %v795_v51 }
 0x206   : > { %v1175_v60 = vrot.slane %v1167_v52, %v4585_v45  ;;  %v1182_v61 = vrot.slane %v1168_v53, %v4585_v45  ;;  %v1191_v62 = vrot.slane %v1183_v54, %v4585_v45  ;;  %v1198_v63 = vrot.slane %v1184_v55, %v4585_v45 }
 0x207   : > { %v817_v1 = vrot.slane %v809_v56, %v4583_v38  ;;  %v824_v2 = vrot.slane %v810_v57, %v4583_v38  ;;  %v833_v3 = vrot.slane %v825_v58, %v4583_v38  ;;  %v840_v4 = vrot.slane %v826_v59, %v4583_v38  ;;  %v1092_v5 = vpop.permute.xlu0 %1091  ;;  %v1095_v6 = vpop.permute.xlu1 %1094 }
 0x208   : > { %v3549_v7 = vcombine.low %v1175_v60, %v1182_v61  ;;  %v3551_v8 = vcombine.high %v1175_v60, %v1182_v61  ;;  %v3553_v9 = vcombine.low %v1191_v62, %v1198_v63  ;;  %v3555_v10 = vcombine.high %v1191_v62, %v1198_v63 }
 0x209   : > { %v873_v11 = vcombine.low %v817_v1, %v833_v3  ;;  %v874_v12 = vcombine.high %v817_v1, %v833_v3  ;;  %v889_v13 = vcombine.low %v824_v2, %v840_v4  ;;  %v890_v14 = vcombine.high %v824_v2, %v840_v4 }
 0x20a   : > { %v4602_v15 = vrot.slane %v3549_v7, %v4583_v38  ;;  %v4605_v16 = vrot.slane %v3551_v8, %v4583_v38  ;;  %v4608_v17 = vrot.slane %v3553_v9, %v4583_v38  ;;  %v4611_v18 = vrot.slane %v3555_v10, %v4583_v38 }
 0x20b   : > { %v881_v19 = vrot.slane %v873_v11, %v4585_v45  ;;  %v888_v20 = vrot.slane %v874_v12, %v4585_v45  ;;  %v897_v21 = vrot.slane %v889_v13, %v4585_v45  ;;  %v904_v22 = vrot.slane %v890_v14, %v4585_v45  ;;  %v1098_v23 = vpop.permute.xlu0 %1097  ;;  %v1101_v24 = vpop.permute.xlu1 %1100 }
 0x20c   : > { %v1303_v25 = vcombine.low %v4602_v15, %v4605_v16  ;;  %v1335_v27 = vcombine.low %v4608_v17, %v4611_v18  ;;  %v1135_v32 = vcombine.low %v1092_v5, %v1098_v23  ;;  %v1136_v33 = vcombine.high %v1092_v5, %v1098_v23 }
 0x20d   : > { %v3541_v28 = vcombine.low %v881_v19, %v888_v20  ;;  %v3543_v29 = vcombine.high %v881_v19, %v888_v20  ;;  %v3545_v30 = vcombine.low %v897_v21, %v904_v22  ;;  %v3547_v31 = vcombine.high %v897_v21, %v904_v22 }
 0x20e   : > { %v1151_v34 = vcombine.low %v1095_v6, %v1101_v24  ;;  %v1152_v35 = vcombine.high %v1095_v6, %v1101_v24  ;;  %v1143_v43 = vrot.slane %v1135_v32, %v4583_v38  ;;  %v1150_v44 = vrot.slane %v1136_v33, %v4583_v38 }
 0x20f   : > { %v4622_v36 = vrot.slane %v3541_v28, %v4583_v38  ;;  %v4625_v37 = vrot.slane %v3543_v29, %v4583_v38  ;;  %v4628_v39 = vrot.slane %v3545_v30, %v4583_v38  ;;  %v4631_v40 = vrot.slane %v3547_v31, %v4583_v38  ;;  %v798_v41 = vpop.permute.xlu0 %797  ;;  %v801_v42 = vpop.permute.xlu1 %800 }
 0x210   : > { %v1159_v46 = vrot.slane %v1151_v34, %v4583_v38  ;;  %v1166_v47 = vrot.slane %v1152_v35, %v4583_v38  ;;  %v1304_v48 = vcombine.high %v4602_v15, %v4605_v16  ;;  %v1336_v49 = vcombine.high %v4608_v17, %v4611_v18 }
 0x211   : > { %v1009_v50 = vcombine.low %v4622_v36, %v4625_v37  ;;  %v1041_v51 = vcombine.low %v4628_v39, %v4631_v40  ;;  %v1311_v56 = vrot.slane %v1303_v25, %v4585_v45  ;;  %v1343_v57 = vrot.slane %v1335_v27, %v4585_v45 }
 0x212   : > { %v1199_v52 = vcombine.low %v1143_v43, %v1159_v46  ;;  %v1200_v53 = vcombine.high %v1143_v43, %v1159_v46  ;;  %v1215_v54 = vcombine.low %v1150_v44, %v1166_v47  ;;  %v1216_v55 = vcombine.high %v1150_v44, %v1166_v47 }
 0x213   : > { %v804_v58 = vpop.permute.xlu0 %803  ;;  %v807_v59 = vpop.permute.xlu1 %806  ;;  %v4648_v60 = vrot.slane %v1009_v50, %v4585_v45  ;;  %v1049_v61 = vrot.slane %v1041_v51, %v4585_v45  ;;  %v1367_v3 = vcombine.low %v1311_v56, %v1343_v57  ;;  %v1010_v23 = vcombine.high %v4622_v36, %v4625_v37 }
 0x214   : > { %v1207_v62 = vrot.slane %v1199_v52, %v4585_v45  ;;  %v1214_v63 = vrot.slane %v1200_v53, %v4585_v45  ;;  %v1223_v1 = vrot.slane %v1215_v54, %v4585_v45  ;;  %v1230_v2 = vrot.slane %v1216_v55, %v4585_v45 }
 0x215   : > { %v841_v4 = vcombine.low %v798_v41, %v804_v58  ;;  %v842_v5 = vcombine.high %v798_v41, %v804_v58  ;;  %v857_v6 = vcombine.low %v801_v42, %v807_v59  ;;  %3689 = vmatpush3.xpose.msk.msra.mxu1 %vm1669_vm2, %v1367_v3  ;;  %v858_v13 = vcombine.high %v801_v42, %v807_v59 }
 0x216   : > { %v3550_v7 = vcombine.low %v1207_v62, %v1214_v63  ;;  %v3552_v8 = vcombine.high %v1207_v62, %v1214_v63  ;;  %v3554_v9 = vcombine.low %v1223_v1, %v1230_v2  ;;  %v3556_v10 = vcombine.high %v1223_v1, %v1230_v2  ;;  %3693 = vmatprep.subr.mxu1 %v4203_v0 }
 0x217   : > { %v849_v11 = vrot.slane %v841_v4, %v4583_v38  ;;  %v856_v12 = vrot.slane %v842_v5, %v4583_v38  ;;  %v865_v14 = vrot.slane %v857_v6, %v4583_v38  ;;  %v872_v19 = vrot.slane %v858_v13, %v4583_v38  ;;  %v1377_v3 = vpop.permute.xlu1 %1376  ;;  %v1380_v4 = vpop.permute.xlu0 %1379 }
 0x218   : > { %v1254_v15 = vrot.slane %v3550_v7, %v4583_v38  ;;  %v1270_v16 = vrot.slane %v3552_v8, %v4583_v38  ;;  %v1286_v17 = vrot.slane %v3554_v9, %v4583_v38  ;;  %v1302_v18 = vrot.slane %v3556_v10, %v4583_v38 }
 0x219   : > { %v905_v20 = vcombine.low %v849_v11, %v865_v14  ;;  %v906_v21 = vcombine.high %v849_v11, %v865_v14  ;;  %v1073_v22 = vcombine.low %v4648_v60, %v1049_v61  ;;  %v1042_v24 = vcombine.high %v4628_v39, %v4631_v40 }
 0x21a   : > { %v1319_v25 = vcombine.low %v1254_v15, %v1270_v16  ;;  %v921_v29 = vcombine.low %v856_v12, %v872_v19  ;;  %v922_v30 = vcombine.high %v856_v12, %v872_v19  ;;  %v1351_v31 = vcombine.low %v1286_v17, %v1302_v18 }
 0x21b   : > { %v913_v27 = vrot.slane %v905_v20, %v4585_v45  ;;  %v920_v28 = vrot.slane %v906_v21, %v4585_v45  ;;  %3691 = vmatmul.mubr.msk.f32.vlgmr.msra.gmra.mxu1 %vm1669_vm2, %v1073_v22  ;;  %v1368_v32 = vcombine.high %v1311_v56, %v1343_v57  ;;  %v1318_v33 = vrot.slane %v1304_v48, %v4585_v45 }
 0x21c   : > { %3695 = vmatprep.mubr.msk.f32.mxu1 %vm4204_vm0, %v4203_v0  ;;  %v1350_v34 = vrot.slane %v1336_v49, %v4585_v45  ;;  %v929_v35 = vrot.slane %v921_v29, %v4585_v45  ;;  %v936_v36 = vrot.slane %v922_v30, %v4585_v45  ;;  %v1074_v40 = vcombine.high %v4648_v60, %v1049_v61 }
 0x21d   : > { %v3542_v37 = vcombine.low %v913_v27, %v920_v28  ;;  %v3544_v39 = vcombine.high %v913_v27, %v920_v28  ;;  %3694 = vmatpush3.xpose.msk.msra.mxu1 %vm1669_vm2, %v1368_v32  ;;  %v1024_v41 = vrot.slane %v1010_v23, %v4585_v45  ;;  %v1056_v42 = vrot.slane %v1042_v24, %v4585_v45 }
 0x21e   : > { %v3546_v46 = vcombine.low %v929_v35, %v936_v36  ;;  %v3548_v47 = vcombine.high %v929_v35, %v936_v36  ;;  %3698 = vmatprep.subr.mxu1 %v4203_v0  ;;  %v1320_v48 = vcombine.high %v1254_v15, %v1270_v16  ;;  %v1369_v49 = vcombine.low %v1318_v33, %v1350_v34  ;;  %v1383_v15 = vpop.permute.xlu1 %1382 }
 0x21f   : > { %v960_v43 = vrot.slane %v3542_v37, %v4583_v38  ;;  %v976_v44 = vrot.slane %v3544_v39, %v4583_v38  ;;  %v1327_v50 = vrot.slane %v1319_v25, %v4585_v45  ;;  %v1359_v51 = vrot.slane %v1351_v31, %v4585_v45 }
 0x220   : > { %v1352_v52 = vcombine.high %v1286_v17, %v1302_v18  ;;  %v992_v53 = vrot.slane %v3546_v46, %v4583_v38  ;;  %v1008_v54 = vrot.slane %v3548_v47, %v4583_v38  ;;  %3696 = vmatmul.mubr.msk.f32.vlgmr.msra.gmra.mxu1 %vm1669_vm2, %v1074_v40  ;;  %v1075_v58 = vcombine.low %v1024_v41, %v1056_v42 }
 0x221   : > { %v1025_v55 = vcombine.low %v960_v43, %v976_v44  ;;  %3699 = vmatpush3.xpose.msk.msra.mxu1 %vm1669_vm2, %v1369_v49  ;;  %3700 = vmatprep.mubr.msk.f32.mxu1 %vm4204_vm0, %v4203_v0  ;;  %v1371_v56 = vcombine.low %v1327_v50, %v1359_v51  ;;  %v1026_v60 = vcombine.high %v960_v43, %v976_v44 }
 0x222   : > { %v1057_v57 = vcombine.low %v992_v53, %v1008_v54  ;;  %3703 = vmatprep.subr.mxu1 %v4203_v0  ;;  %v1370_v61 = vcombine.high %v1318_v33, %v1350_v34  ;;  %v1334_v62 = vrot.slane %v1320_v48, %v4585_v45  ;;  %v1058_v63 = vcombine.high %v992_v53, %v1008_v54 }
 0x223   : > { %v1033_v59 = vrot.slane %v1025_v55, %v4585_v45  ;;  %3709 = vmatpush3.xpose.msk.msra.mxu0 %vm1669_vm2, %v1371_v56  ;;  %v1366_v2 = vrot.slane %v1352_v52, %v4585_v45  ;;  %v1076_v5 = vcombine.high %v1024_v41, %v1056_v42  ;;  %v1397_v7 = vcombine.low %v4576_v26, %v1380_v4 }
 0x224   : > { %3701 = vmatmul.mubr.msk.f32.vlgmr.msra.gmra.mxu1 %vm1669_vm2, %v1075_v58  ;;  %3718 = vmatprep.subr.mxu0 %v4203_v0  ;;  %v1065_v1 = vrot.slane %v1057_v57, %v4585_v45  ;;  %v1398_v8 = vcombine.high %v4576_v26, %v1380_v4  ;;  %v1372_v9 = vcombine.high %v1327_v50, %v1359_v51 }
 0x225   : > { %3704 = vmatpush3.xpose.msk.msra.mxu1 %vm1669_vm2, %v1370_v61  ;;  %3705 = vmatprep.mubr.msk.f32.mxu1 %vm4204_vm0, %v4203_v0  ;;  %v1040_v10 = vrot.slane %v1026_v60, %v4585_v45  ;;  %v1373_v12 = vcombine.low %v1334_v62, %v1366_v2  ;;  %v1072_v13 = vrot.slane %v1058_v63, %v4585_v45 }
 0x226   : > { %3713 = vmatprep.subr.mxu1 %v4203_v0  ;;  %v1077_v6 = vcombine.low %v1033_v59, %v1065_v1  ;;  %v1078_v11 = vcombine.high %v1033_v59, %v1065_v1  ;;  %v1405_v14 = vrot.slane %v1397_v7, %v4583_v38  ;;  %v1412_v16 = vrot.slane %v1398_v8, %v4583_v38 }
 0x227   : > { %v1413_v17 = vcombine.low %v1377_v3, %v1383_v15  ;;  %v1414_v18 = vcombine.high %v1377_v3, %v1383_v15  ;;  %v1374_v19 = vcombine.high %v1334_v62, %v1366_v2  ;;  %v1079_v20 = vcombine.low %v1040_v10, %v1072_v13 }
 0x228   : > { %3706 = vmatmul.mubr.msk.f32.vlgmr.msra.gmra.mxu1 %vm1669_vm2, %v1076_v5  ;;  %3711 = vmatmul.mubr.msk.f32.vlgmr.msra.gmra.mxu0 %vm1669_vm2, %v1077_v6  ;;  %v1080_v23 = vcombine.high %v1040_v10, %v1072_v13 }
 0x229   : > { %3714 = vmatpush3.xpose.msk.msra.mxu1 %vm1669_vm2, %v1372_v9  ;;  %3715 = vmatprep.mubr.msk.f32.mxu1 %vm4204_vm0, %v4203_v0  ;;  %v1421_v21 = vrot.slane %v1413_v17, %v4583_v38  ;;  %v1428_v22 = vrot.slane %v1414_v18, %v4583_v38 }
 0x22a   : > { %3723 = vmatprep.subr.mxu1 %v4203_v0  ;;  %3719 = vmatpush3.xpose.msk.msra.mxu0 %vm1669_vm2, %v1373_v12 }
 0x22b   : > { %3720 = vmatprep.mubr.msk.f32.mxu0 %vm4204_vm0, %v4203_v0  ;;  %3728 = vmatprep.subr.mxu0 %v4203_v0  ;;  %v1461_v24 = vcombine.low %v1405_v14, %v1421_v21  ;;  %v1462_v25 = vcombine.high %v1405_v14, %v1421_v21  ;;  %v1477_v27 = vcombine.low %v1412_v16, %v1428_v22 }
 0x22c   : > { %3716 = vmatmul.mubr.msk.f32.vlgmr.msra.gmra.mxu1 %vm1669_vm2, %v1078_v11  ;;  %v1478_v28 = vcombine.high %v1412_v16, %v1428_v22  ;;  %v1386_v16 = vpop.permute.xlu0 %1385 }
 0x22d   : > { %3724 = vmatpush3.xpose.msk.msra.mxu1 %vm1669_vm2, %v1374_v19  ;;  %3725 = vmatprep.mubr.msk.f32.mxu1 %vm4204_vm0, %v4203_v0  ;;  %v1469_v29 = vrot.slane %v1461_v24, %v4585_v45  ;;  %v1476_v30 = vrot.slane %v1462_v25, %v4585_v45  ;;  %v1485_v31 = vrot.slane %v1477_v27, %v4585_v45 }
 0x22e   : > { %3721 = vmatmul.mubr.msk.f32.vlgmr.msra.gmra.mxu0 %vm1669_vm2, %v1079_v20  ;;  %3733 = vmatprep.subr.mxu1 %v4203_v0  ;;  %v1492_v32 = vrot.slane %v1478_v28, %v4585_v45  ;;  %v1389_v20 = vpop.permute.xlu1 %1388 }
 0x22f   : > { %3730 = vmatprep.mubr.msk.f32.mxu0 %vm4204_vm0, %v4203_v0  ;;  %v3557_v33 = vcombine.low %v1469_v29, %v1476_v30  ;;  %v3559_v34 = vcombine.high %v1469_v29, %v1476_v30 }
 0x230   : > { %3726 = vmatmul.mubr.msk.f32.vlgmr.msra.gmra.mxu1 %vm1669_vm2, %v1080_v23  ;;  %v3561_v35 = vcombine.low %v1485_v31, %v1492_v32  ;;  %v3563_v36 = vcombine.high %v1485_v31, %v1492_v32 }
 0x231   : > { %3735 = vmatprep.mubr.msk.f32.mxu1 %vm4204_vm0, %v4203_v0  ;;  %v1541_v37 = vrot.slane %v3557_v33, %v4583_v38  ;;  %v1557_v39 = vrot.slane %v3559_v34, %v4583_v38 }
 0x232   : > { %v1573_v40 = vrot.slane %v3561_v35, %v4583_v38  ;;  %v1589_v41 = vrot.slane %v3563_v36, %v4583_v38 }
 0x233   : > { %v1597_v42 = vcombine.low %v1541_v37, %v1557_v39  ;;  %v1598_v49 = vcombine.high %v1541_v37, %v1557_v39 }
 0x234   : > { %v1629_v43 = vcombine.low %v1573_v40, %v1589_v41  ;;  %v1630_v50 = vcombine.high %v1573_v40, %v1589_v41 }
 0x235   : > { %v1605_v44 = vrot.slane %v1597_v42, %v4585_v45  ;;  %v4748_v51 = vrot.slane %v1598_v49, %v4585_v45 }
 0x236   : > { %v1637_v46 = vrot.slane %v1629_v43, %v4585_v45  ;;  %v4751_v52 = vrot.slane %v1630_v50, %v4585_v45 }
 0x238   : > { %v1661_v47 = vcombine.low %v1605_v44, %v1637_v46  ;;  %v1662_v48 = vcombine.high %v1605_v44, %v1637_v46  ;;  %v1663_v53 = vcombine.low %v4748_v51, %v4751_v52  ;;  %v1664_v54 = vcombine.high %v4748_v51, %v4751_v52 }
 0x23a   : > { %3729 = vmatpush3.msra.mxu0 %v1661_v47  ;;  %3734 = vmatpush3.msra.mxu1 %v1662_v48 }
 0x23b   : > { %3738 = vmatprep.subr.mxu0 %v4203_v0  ;;  %3743 = vmatprep.subr.mxu1 %v4203_v0 }
 0x2db   : > { %v1742_v55 = vpop.f32.mrf.mxu1 }
 0x2dc   : > { %v2279_v56 = vsel %vm2278_vm3, %v1742_v55, -inf }
 0x2dd   : > { %v3692_v57 = vpop.f32.mrf.mxu1  ;;  %2280 = vmax.xlane.f32.xlu0 %v2279_v56 }
 0x2e0   : > { %v1818_v58 = vpop.f32.mrf.mxu1 }
 0x2e1   : > { %v2282_v8 = vsel %vm2278_vm3, %v1818_v58, -inf }
 0x2e2   : > { %v3697_v59 = vpop.f32.mrf.mxu1 }
 0x2e4   : > { %v1894_v60 = vpop.f32.mrf.mxu1 }
 0x2e5   : > { %v2285_v61 = vsel %vm2278_vm3, %v1894_v60, -inf }
 0x2e6   : > { %v3702_v62 = vpop.f32.mrf.mxu1  ;;  %2286 = vmax.xlane.f32.xlu0 %v2285_v61 }
 0x2e8   : > { %v1970_v63 = vpop.f32.mrf.mxu1  ;;  %v2046_v1 = vpop.f32.mrf.mxu0 }
 0x2e9   : > { %v2288_v2 = vsel %vm2278_vm3, %v1970_v63, -inf  ;;  %v2291_v3 = vsel %vm2278_vm3, %v2046_v1, -inf }
 0x2ea   : > { %v3707_v4 = vpop.f32.mrf.mxu1  ;;  %2289 = vmax.xlane.f32.xlu0 %v2288_v2  ;;  %2292 = vmax.xlane.f32.xlu1 %v2291_v3  ;;  %v3712_v5 = vpop.f32.mrf.mxu0 }
 0x2ec   : > { %v2122_v6 = vpop.f32.mrf.mxu1 }
 0x2ed   : > { %v2294_v7 = vsel %vm2278_vm3, %v2122_v6, -inf }
 0x2ee   : > { %v3717_v9 = vpop.f32.mrf.mxu1  ;;  %2295 = vmax.xlane.f32.xlu0 %v2294_v7  ;;  %v2198_v10 = vpop.f32.mrf.mxu0  ;;  %2283 = vmax.xlane.f32.xlu1 %v2282_v8 }
 0x2ef   : > { %v2297_v14 = vsel %vm2278_vm3, %v2198_v10, -inf }
 0x2f0   : > { %v2274_v11 = vpop.f32.mrf.mxu1  ;;  %v3722_v12 = vpop.f32.mrf.mxu0 }
 0x2f1   : > { %v2300_v13 = vsel %vm2278_vm3, %v2274_v11, -inf }
 0x2f2   : > { %v3727_v15 = vpop.f32.mrf.mxu1  ;;  %2301 = vmax.xlane.f32.xlu0 %v2300_v13  ;;  %2298 = vmax.xlane.f32.xlu1 %v2297_v14 }
 0x303   : > { %1391 = vrot.lane.b32.xlu1 %v4576_v26, %s4210_s16  ;;  %s4975_s16 = sld [smem:[#allocation30_spill]] }
 0x308   : > { %1394 = vrot.lane.b32.xlu0 %v4576_v26, %s4211_s25 }
 0x309   : > { %s4869_s25 = scalar_lea.hbm %s4975_s16, %s3600_s29 }
 0x366   : > { %v2281_v17 = vpop.xlane.xlu0 %2280 }
 0x367   : > { %v2303_v18 = vsub.f32 %v1742_v55, %v2281_v17 }
 0x369   : > { %v2311_v19 = vmul.f32 1.442695, %v2303_v18 }
 0x36b   : > { %3896 = vpow2.f32 %v2311_v19 }
 0x36f   : > { %v2287_v21 = vpop.xlane.xlu0 %2286 }
 0x370   : > { %v2305_v22 = vsub.f32 %v1894_v60, %v2287_v21 }
 0x372   : > { %v2315_v23 = vmul.f32 1.442695, %v2305_v22 }
 0x373   : > { %v2290_v24 = vpop.xlane.xlu0 %2289  ;;  %v2293_v25 = vpop.xlane.xlu1 %2292 }
 0x374   : > { %3898 = vpow2.f32 %v2315_v23  ;;  %v2306_v27 = vsub.f32 %v1970_v63, %v2290_v24  ;;  %v2307_v28 = vsub.f32 %v2046_v1, %v2293_v25 }
 0x376   : > { %v2317_v29 = vmul.f32 1.442695, %v2306_v27  ;;  %v2319_v30 = vmul.f32 1.442695, %v2307_v28 }
 0x377   : > { %v2296_v32 = vpop.xlane.xlu0 %2295  ;;  %v2284_v33 = vpop.xlane.xlu1 %2283 }
 0x378   : > { %v3897_v31 = vpop.eup %3896  ;;  %3900 = vpow2.f32 %v2317_v29  ;;  %v2308_v26 = vsub.f32 %v2122_v6, %v2296_v32  ;;  %v2304_v34 = vsub.f32 %v1818_v58, %v2284_v33 }
 0x379   : > { %3731 = vmatmul.mubr.msk.f32.vlgmr.msra.gmra.mxu0 %vm2278_vm3, %v3897_v31  ;;  %v2327_v35 = vsel %vm2278_vm3, %v3897_v31, 0.0  ;;  %3902 = vpow2.f32 %v2319_v30 }
 0x37a   : > { %3739 = vmatpush3.msra.mxu0 %v1663_v53  ;;  %2328 = vadd.xlane.f32.xlu1 %v2327_v35  ;;  %v2321_v36 = vmul.f32 1.442695, %v2308_v26  ;;  %v2313_v37 = vmul.f32 1.442695, %v2304_v34 }
 0x37b   : > { %3740 = vmatprep.mubr.msk.f32.mxu0 %vm4204_vm0, %v4203_v0  ;;  %3748 = vmatprep.subr.mxu0 %v4203_v0  ;;  %v2302_v39 = vpop.xlane.xlu0 %2301  ;;  %v2299_v40 = vpop.xlane.xlu1 %2298 }
 0x37c   : > { %3904 = vpow2.f32 %v2321_v36  ;;  %v2310_v41 = vsub.f32 %v2274_v11, %v2302_v39  ;;  %v2309_v42 = vsub.f32 %v2198_v10, %v2299_v40 }
 0x37d   : > { %3906 = vpow2.f32 %v2313_v37 }
 0x37e   : > { %v2325_v43 = vmul.f32 1.442695, %v2310_v41  ;;  %v2323_v46 = vmul.f32 1.442695, %v2309_v42 }
 0x37f   : > { %v1395_v44 = vpop.permute.xlu0 %1394  ;;  %v1392_v47 = vpop.permute.xlu1 %1391 }
 0x380   : > { %3908 = vpow2.f32 %v2325_v43  ;;  %v1445_v48 = vcombine.low %v1389_v20, %v1395_v44  ;;  %v1446_v49 = vcombine.high %v1389_v20, %v1395_v44  ;;  %v1429_v50 = vcombine.low %v1386_v16, %v1392_v47 }
 0x381   : > { %v3899_v53 = vpop.eup %3898  ;;  %v1430_v55 = vcombine.high %v1386_v16, %v1392_v47  ;;  %3910 = vpow2.f32 %v2323_v46 }
 0x382   : > { %v1453_v56 = vrot.slane %v1445_v48, %v4583_v38  ;;  %3741 = vmatmul.mubr.msk.f32.vlgmr.msra.gmra.mxu0 %vm2278_vm3, %v3899_v53  ;;  %v1437_v57 = vrot.slane %v1429_v50, %v4583_v38  ;;  %v1460_v58 = vrot.slane %v1446_v49, %v4583_v38  ;;  %v2333_v51 = vsel %vm2278_vm3, %v3899_v53, 0.0 }
 0x383   : > { %v1444_v59 = vrot.slane %v1430_v55, %v4583_v38  ;;  %3750 = vmatprep.mubr.msk.f32.mxu0 %vm4204_vm0, %v4203_v0 }
 0x384   : > { %v1493_v60 = vcombine.low %v1437_v57, %v1453_v56  ;;  %v1494_v61 = vcombine.high %v1437_v57, %v1453_v56 }
 0x385   : > { %v3901_v62 = vpop.eup %3900  ;;  %v1509_v63 = vcombine.low %v1444_v59, %v1460_v58  ;;  %v1510_v1 = vcombine.high %v1444_v59, %v1460_v58 }
 0x386   : > { %v3903_v2 = vpop.eup %3902  ;;  %v1501_v3 = vrot.slane %v1493_v60, %v4585_v45  ;;  %v1508_v4 = vrot.slane %v1494_v61, %v4585_v45  ;;  %v2336_v5 = vsel %vm2278_vm3, %v3901_v62, 0.0 }
 0x387   : > { %v1517_v6 = vrot.slane %v1509_v63, %v4585_v45  ;;  %v1524_v7 = vrot.slane %v1510_v1, %v4585_v45  ;;  %2337 = vadd.xlane.f32.xlu1 %v2336_v5  ;;  %v2339_v8 = vsel %vm2278_vm3, %v3903_v2, 0.0 }
 0x388   : > { %v3558_v9 = vcombine.low %v1501_v3, %v1508_v4  ;;  %v3560_v10 = vcombine.high %v1501_v3, %v1508_v4  ;;  %2340 = vadd.xlane.f32.xlu0 %v2339_v8 }
 0x389   : > { %v3905_v11 = vpop.eup %3904  ;;  %v3562_v12 = vcombine.low %v1517_v6, %v1524_v7  ;;  %v3564_v13 = vcombine.high %v1517_v6, %v1524_v7 }
 0x38a   : > { %v3907_v14 = vpop.eup %3906  ;;  %v1548_v15 = vrot.slane %v3558_v9, %v4583_v38  ;;  %v1564_v16 = vrot.slane %v3560_v10, %v4583_v38  ;;  %v2342_v17 = vsel %vm2278_vm3, %v3905_v11, 0.0 }
 0x38b   : > { %v1580_v18 = vrot.slane %v3562_v12, %v4583_v38  ;;  %v1596_v19 = vrot.slane %v3564_v13, %v4583_v38  ;;  %2343 = vadd.xlane.f32.xlu1 %v2342_v17  ;;  %3736 = vmatmul.mubr.msk.f32.vlgmr.msra.gmra.mxu1 %vm2278_vm3, %v3907_v14  ;;  %v2330_v20 = vsel %vm2278_vm3, %v3907_v14, 0.0 }
 0x38c   : > { %3744 = vmatpush3.msra.mxu1 %v1664_v54  ;;  %2331 = vadd.xlane.f32.xlu0 %v2330_v20  ;;  %v1613_v21 = vcombine.low %v1548_v15, %v1564_v16  ;;  %v1614_v22 = vcombine.high %v1548_v15, %v1564_v16 }
 0x38d   : > { %v3909_v23 = vpop.eup %3908  ;;  %3745 = vmatprep.mubr.msk.f32.mxu1 %vm4204_vm0, %v4203_v0  ;;  %3753 = vmatprep.subr.mxu1 %v4203_v0  ;;  %v1645_v24 = vcombine.low %v1580_v18, %v1596_v19  ;;  %v1646_v25 = vcombine.high %v1580_v18, %v1596_v19 }
 0x38e   : > { %v2348_v27 = vsel %vm2278_vm3, %v3909_v23, 0.0  ;;  %v1621_v28 = vrot.slane %v1613_v21, %v4585_v45  ;;  %v3911_v54 = vpop.eup %3910  ;;  %v1628_v29 = vrot.slane %v1614_v22, %v4585_v45 }
 0x38f   : > { %2349 = vadd.xlane.f32.xlu1 %v2348_v27  ;;  %3746 = vmatmul.mubr.msk.f32.vlgmr.msra.gmra.mxu1 %vm2278_vm3, %v3901_v62  ;;  %v1653_v52 = vrot.slane %v1645_v24, %v4585_v45  ;;  %v1660_v30 = vrot.slane %v1646_v25, %v4585_v45  ;;  %v2345_v33 = vsel %vm2278_vm3, %v3911_v54, 0.0 }
 0x390   : > { %2334 = vadd.xlane.f32.xlu0 %v2333_v51  ;;  %3755 = vmatprep.mubr.msk.f32.mxu1 %vm4204_vm0, %v4203_v0 }
 0x391   : > { %v1665_v31 = vcombine.low %v1621_v28, %v1653_v52  ;;  %v1666_v32 = vcombine.high %v1621_v28, %v1653_v52  ;;  %v1667_v26 = vcombine.low %v1628_v29, %v1660_v30  ;;  %v1668_v34 = vcombine.high %v1628_v29, %v1660_v30 }
 0x393   : > { %3749 = vmatpush3.msra.mxu0 %v1665_v31  ;;  %3754 = vmatpush3.msra.mxu1 %v1666_v32 }
 0x394   : > { %2346 = vadd.xlane.f32.xlu0 %v2345_v33  ;;  %3751 = vmatmul.mubr.msk.f32.vlgmr.msra.gmra.mxu0 %vm2278_vm3, %v3903_v2 }
 0x395   : > { %3756 = vmatmul.mubr.msk.f32.vlgmr.msra.gmra.mxu1 %vm2278_vm3, %v3905_v11  ;;  %3758 = vmatprep.subr.mxu0 %v4203_v0 }
 0x396   : > { %3763 = vmatprep.subr.mxu1 %v4203_v0  ;;  %3759 = vmatpush3.msra.mxu0 %v1667_v26 }
 0x397   : > { %3764 = vmatpush3.msra.mxu1 %v1668_v34  ;;  %3760 = vmatprep.mubr.msk.f32.mxu0 %vm4204_vm0, %v4203_v0 }
 0x398   : > { %3765 = vmatprep.mubr.msk.f32.mxu1 %vm4204_vm0, %v4203_v0  ;;  %3761 = vmatmul.mubr.msk.f32.vlgmr.msra.gmra.mxu0 %vm2278_vm3, %v3911_v54 }
 0x399   : > { %3766 = vmatmul.mubr.msk.f32.vlgmr.msra.gmra.mxu1 %vm2278_vm3, %v3909_v23  ;;  %3768 = vmatprep.subr.mxu0 %v4203_v0 }
 0x39a   : > { %3776 = vmatprep.mubr.msk.f32.mxu0 %vm4204_vm0, %v4203_v0 }
 0x403   : > { %v2329_v39 = vpop.xlane.xlu1 %2328 }
 0x410   : > { %v2338_v42 = vpop.xlane.xlu1 %2337 }
 0x411   : > { %v2341_v35 = vpop.xlane.xlu0 %2340 }
 0x414   : > { %v2344_v44 = vpop.xlane.xlu1 %2343 }
 0x415   : > { %v2332_v36 = vpop.xlane.xlu0 %2331 }
 0x418   : > { %v2350_v48 = vpop.xlane.xlu1 %2349 }
 0x419   : > { %v2335_v41 = vpop.xlane.xlu0 %2334 }
 0x41a   : > { %3912 = vrcp.f32 %v2335_v41 }
 0x41b   : > { %3914 = vrcp.f32 %v2329_v39 }
 0x41c   : > { %3916 = vrcp.f32 %v2338_v42 }
 0x41d   : > { %3918 = vrcp.f32 %v2332_v36  ;;  %v2347_v47 = vpop.xlane.xlu0 %2346  ;;  %v3266_v36 = vld [vmem:[#allocation13 + $0x18] sm:$0xff] }
 0x41e   : > { %3920 = vrcp.f32 %v2341_v35  ;;  %3769 = vmatpush3.msra.mxu0 %v3266_v36 }
 0x41f   : > { %3922 = vrcp.f32 %v2347_v47  ;;  %3770 = vmatprep.subr.mxu0 %v4203_v0 }
 0x420   : > { %3924 = vrcp.f32 %v2344_v44 }
 0x421   : > { %3926 = vrcp.f32 %v2350_v48 }
 0x427   : > { %v3913_v49 = vpop.eup %3912 }
 0x428   : > { %v3915_v55 = vpop.eup %3914 }
 0x429   : > { %v3917_v57 = vpop.eup %3916 }
 0x42a   : > { %v3919_v59 = vpop.eup %3918 }
 0x42b   : > { %v3921_v16 = vpop.eup %3920 }
 0x42c   : > { %v3923_v18 = vpop.eup %3922 }
 0x42d   : > { %v3925_v24 = vpop.eup %3924 }
 0x42e   : > { %v3927_v51 = vpop.eup %3926 }
 0x439   : > { %v2420_v37 = vpop.f32.mrf.mxu0 }
 0x43a   : > { %v2943_v58 = vmul.f32 %v3915_v55, %v2420_v37 }
 0x43b   : > { %v3732_v40 = vpop.f32.mrf.mxu0 }
 0x442   : > { %v2566_v43 = vpop.f32.mrf.mxu0 }
 0x443   : > { %v2945_v53 = vmul.f32 %v3913_v49, %v2566_v43 }
 0x444   : > { %v3742_v46 = vpop.f32.mrf.mxu0 }
 0x445   : > { %v2951_v61 = vcombine.low %v2943_v58, %v2945_v53  ;;  %v2952_v62 = vcombine.high %v2943_v58, %v2945_v53 }
 0x447   : > { %v2959_v5 = vrot.slane %v2951_v61, %v4583_v38  ;;  %v2966_v6 = vrot.slane %v2952_v62, %v4583_v38 }
 0x44b   : > { %v2493_v50 = vpop.f32.mrf.mxu1 }
 0x44c   : > { %v2944_v63 = vmul.f32 %v3919_v59, %v2493_v50 }
 0x44d   : > { %v3737_v56 = vpop.f32.mrf.mxu1 }
 0x44f   : > { %v2639_v60 = vpop.f32.mrf.mxu1 }
 0x450   : > { %v2946_v1 = vmul.f32 %v3917_v57, %v2639_v60 }
 0x451   : > { %v3747_v2 = vpop.f32.mrf.mxu1 }
 0x452   : > { %v2967_v3 = vcombine.low %v2944_v63, %v2946_v1  ;;  %v2968_v4 = vcombine.high %v2944_v63, %v2946_v1 }
 0x454   : > { %v2975_v7 = vrot.slane %v2967_v3, %v4583_v38  ;;  %v2982_v8 = vrot.slane %v2968_v4, %v4583_v38  ;;  %v2712_v9 = vpop.f32.mrf.mxu0  ;;  %v3265_v4 = vld [vmem:[#allocation13 + $0x10] sm:$0xff] }
 0x455   : > { %v2785_v10 = vpop.f32.mrf.mxu1  ;;  %v2947_v25 = vmul.f32 %v3921_v16, %v2712_v9  ;;  %3771 = vmatpush3.msra.mxu0 %v3265_v4  ;;  %v3264_v9 = vld [vmem:[#allocation13 + $0x8] sm:$0xff] }
 0x456   : > { %v3015_v11 = vcombine.low %v2959_v5, %v2975_v7  ;;  %v3016_v12 = vcombine.high %v2959_v5, %v2975_v7  ;;  %v3031_v13 = vcombine.low %v2966_v6, %v2982_v8  ;;  %v3032_v14 = vcombine.high %v2966_v6, %v2982_v8  ;;  %v3752_v15 = vpop.f32.mrf.mxu0  ;;  %3772 = vmatprep.subr.mxu0 %v4203_v0 }
 0x457   : > { %v3757_v17 = vpop.f32.mrf.mxu1  ;;  %v2948_v32 = vmul.f32 %v3925_v24, %v2785_v10  ;;  %3773 = vmatpush3.msra.mxu0 %v3264_v9 }
 0x458   : > { %v3023_v19 = vrot.slane %v3015_v11, %v4585_v45  ;;  %v3030_v20 = vrot.slane %v3016_v12, %v4585_v45  ;;  %v3039_v21 = vrot.slane %v3031_v13, %v4585_v45  ;;  %v3046_v22 = vrot.slane %v3032_v14, %v4585_v45  ;;  %v2858_v23 = vpop.f32.mrf.mxu0  ;;  %3774 = vmatprep.subr.mxu0 %v4203_v0 }
 0x459   : > { %v2949_v27 = vmul.f32 %v3923_v18, %v2858_v23  ;;  %v2931_v28 = vpop.f32.mrf.mxu1 }
 0x45a   : > { %v3589_v52 = vcombine.low %v3023_v19, %v3030_v20  ;;  %v3591_v54 = vcombine.high %v3023_v19, %v3030_v20  ;;  %v3593_v29 = vcombine.low %v3039_v21, %v3046_v22  ;;  %v3595_v30 = vcombine.high %v3039_v21, %v3046_v22  ;;  %v3762_v31 = vpop.f32.mrf.mxu0  ;;  %v3263_v19 = vld [vmem:[#allocation13] sm:$0xff] }
 0x45b   : > { %v2983_v33 = vcombine.low %v2947_v25, %v2949_v27  ;;  %v2984_v26 = vcombine.high %v2947_v25, %v2949_v27  ;;  %v2950_v34 = vmul.f32 %v3927_v51, %v2931_v28  ;;  %v3767_v35 = vpop.f32.mrf.mxu1  ;;  %3775 = vmatpush3.msra.mxu0 %v3263_v19 }
 0x45c   : > { %v3095_v37 = vrot.slane %v3589_v52, %v4583_v38  ;;  %v3111_v39 = vrot.slane %v3591_v54, %v4583_v38  ;;  %v3127_v40 = vrot.slane %v3593_v29, %v4583_v38  ;;  %v3143_v41 = vrot.slane %v3595_v30, %v4583_v38 }
 0x45d   : > { %v2991_v42 = vrot.slane %v2983_v33, %v4583_v38  ;;  %v2998_v43 = vrot.slane %v2984_v26, %v4583_v38  ;;  %v2999_v44 = vcombine.low %v2948_v32, %v2950_v34  ;;  %v3000_v46 = vcombine.high %v2948_v32, %v2950_v34 }
 0x45e   : > { %v3152_v47 = vcombine.high %v3095_v37, %v3111_v39  ;;  %v3184_v48 = vcombine.high %v3127_v40, %v3143_v41  ;;  %v3151_v49 = vcombine.low %v3095_v37, %v3111_v39  ;;  %v3183_v50 = vcombine.low %v3127_v40, %v3143_v41  ;;  %v3597_v41 = vld [vmem:[%s4974_s7] ss:$0 sm:$0xff] }
 0x45f   : > { %v3007_v53 = vrot.slane %v2999_v44, %v4583_v38  ;;  %v3014_v55 = vrot.slane %v3000_v46, %v4583_v38 }
 0x460   : > { %v3166_v56 = vrot.slane %v3152_v47, %v4585_v45  ;;  %v3198_v57 = vrot.slane %v3184_v48, %v4585_v45  ;;  %v3159_v58 = vrot.slane %v3151_v49, %v4585_v45  ;;  %v3191_v59 = vrot.slane %v3183_v50, %v4585_v45 }
 0x461   : > { %v3047_v60 = vcombine.low %v2991_v42, %v3007_v53  ;;  %v3048_v61 = vcombine.high %v2991_v42, %v3007_v53  ;;  %v3063_v62 = vcombine.low %v2998_v43, %v3014_v55  ;;  %v3064_v63 = vcombine.high %v2998_v43, %v3014_v55 }
 0x462   : > { %v3217_v1 = vcombine.low %v3166_v56, %v3198_v57  ;;  %v3216_v2 = vcombine.high %v3159_v58, %v3191_v59  ;;  %v3215_v3 = vcombine.low %v3159_v58, %v3191_v59  ;;  %v3218_v14 = vcombine.high %v3166_v56, %v3198_v57 }
 0x463   : > { %v3055_v5 = vrot.slane %v3047_v60, %v4585_v45  ;;  %v3062_v6 = vrot.slane %v3048_v61, %v4585_v45  ;;  %v3071_v7 = vrot.slane %v3063_v62, %v4585_v45  ;;  %v3078_v8 = vrot.slane %v3064_v63, %v4585_v45 }
 0x464   : > { %3228 = vrot.lane.b32.xlu1 %v3217_v1, %s4214_s21  ;;  %3224 = vrot.lane.b32.xlu0 %v3216_v2, %s4215_s1  ;;  %s4122_s21 = scalar_lea.vmem %s4121_s20, 256 }
 0x465   : > { %v3590_v10 = vcombine.low %v3055_v5, %v3062_v6  ;;  %v3592_v11 = vcombine.high %v3055_v5, %v3062_v6  ;;  %v3594_v12 = vcombine.low %v3071_v7, %v3078_v8  ;;  %v3596_v13 = vcombine.high %v3071_v7, %v3078_v8  ;;  %p4124_p0 = scmp.lt.s32.totalorder %s4122_s21, %s4116_s12 }
 0x467   : > { %v3102_v15 = vrot.slane %v3590_v10, %v4583_v38  ;;  %v3118_v16 = vrot.slane %v3592_v11, %v4583_v38  ;;  %v3134_v17 = vrot.slane %v3594_v12, %v4583_v38  ;;  %v3150_v18 = vrot.slane %v3596_v13, %v4583_v38  ;;  %p4125_p4 = por %p4124_p0, %p4123_p11 }
 0x468   : > { %3232 = vrot.lane.b32.xlu1 %v3218_v14, %s4216_s24 }
 0x469   : > { %v3167_v20 = vcombine.low %v3102_v15, %v3118_v16  ;;  %v3199_v21 = vcombine.low %v3134_v17, %v3150_v18  ;;  %v3168_v22 = vcombine.high %v3102_v15, %v3118_v16  ;;  %v3200_v23 = vcombine.high %v3134_v17, %v3150_v18  ;;  %p4126_p7 = pnand %p4125_p4, %p4119_p10 }
 0x46b   : > { %v3175_v24 = vrot.slane %v3167_v20, %v4585_v45  ;;  %v3207_v25 = vrot.slane %v3199_v21, %v4585_v45  ;;  %v3182_v51 = vrot.slane %v3168_v22, %v4585_v45  ;;  %v3214_v38 = vrot.slane %v3200_v23, %v4585_v45 }
 0x46d   : > { %v3220_v27 = vcombine.high %v3175_v24, %v3207_v25  ;;  %v3219_v28 = vcombine.low %v3175_v24, %v3207_v25  ;;  %v3222_v0 = vcombine.high %v3182_v51, %v3214_v38  ;;  %v3221_v52 = vcombine.low %v3182_v51, %v3214_v38 }
 0x46f   : > { %3240 = vrot.lane.b32.xlu1 %v3220_v27, %s4217_s15  ;;  %3236 = vrot.lane.b32.xlu0 %v3219_v28, %s4218_s28 }
 0x473   : > { %3248 = vrot.lane.b32.xlu1 %v3222_v0, %s4219_s22  ;;  %3244 = vrot.lane.b32.xlu0 %v3221_v52, %s4220_s13 }
 0x4d6   : > { %v3229_v54 = vpop.permute.xlu1 %3228  ;;  %v3225_v29 = vpop.permute.xlu0 %3224 }
 0x4d7   : > { %v3251_v31 = vsel %vm1669_vm2, %v3215_v3, %v3225_v29 }
 0x4d8   : > { %v3252_v45 = vsel %vm2278_vm3, %v3251_v31, %v3229_v54 }
 0x4da   : > { %v3233_v30 = vpop.permute.xlu1 %3232 }
 0x4db   : > { %v3254_v32 = vsel %vm3253_vm4, %v3252_v45, %v3233_v30 }
 0x4e1   : > { %v3241_v33 = vpop.permute.xlu1 %3240  ;;  %v3237_v26 = vpop.permute.xlu0 %3236 }
 0x4e2   : > { %v3256_v34 = vsel %vm3255_vm5, %v3254_v32, %v3237_v26 }
 0x4e3   : > { %v3258_v36 = vsel %vm3257_vm6, %v3256_v34, %v3241_v33 }
 0x4e5   : > { %v3249_v35 = vpop.permute.xlu1 %3248  ;;  %v3245_v37 = vpop.permute.xlu0 %3244 }
 0x4e6   : > { %v3260_v39 = vsel %vm3259_vm7, %v3258_v36, %v3245_v37 }
 0x4e7   : > { %v3262_v40 = vsel %vm3261_vm8, %v3260_v39, %v3249_v35 }
 0x4e8   : > { %3777 = vmatmul.mubr.msk.f32.vlgmr.msra.gmra.mxu0 %vm545_vm1, %v3262_v40 }
 0x5a8   : > { %v3343_v42 = vpop.f32.mrf.mxu0 }
 0x5a9   : > { %v3344_v43 = vadd.f32 %v3597_v41, %v3343_v42 }
 0x5aa   : > { %v3778_v44 = vpop.f32.mrf.mxu0 }
 0x5ab   : > { %3347 = vst.msk [vmem:[%s530_s30] sm:$0xff] %vm545_vm1, %v3344_v43 }
 0x5ac   : > { %4129 = shalt.err (!%p4126_p7)
}
 0x5ad   : > { %s4130_s1 = scalar_lea.hbm %s4869_s25, 128  ;;  %s4134_s15 = scalar_lea.hbm %s4975_s16, 256 }
 0x5ae   : > { %p4131_p3 = scmp.ne.s32.totalorder %s4869_s25, %s4130_s1  ;;  %p4135_p6 = scmp.lt.s32.totalorder %s4869_s25, %s4975_s16 }
 0x5af   : > { %p4136_p9 = scmp.lt.s32.totalorder %s4134_s15, %s4130_s1 }
 0x5b0   : > { %p4132_p12 = pnand %p4131_p3, %p4976_p1 }
 0x5b1   : > { %p4137_p2 = por %p4136_p9, %p4135_p6 }
 0x5b2   : > { %p4133_p13 = pneg %p4132_p12 }
 0x5b4   : > { %p4138_p5 = pnand %p4137_p2, %p4133_p13 }
 0x5b6   : > { %4141 = shalt.err (!%p4138_p5)
}
 0x5b7   : > { %3801 = dma.vmem_to_hbm [thread:$0]  (%p4976_p1), %s3363_s10, 128, %s4869_s25, %s3349_s26  }
 0x5b8 PF: > { %s4977_s13 = sld [smem:[#allocation20_spill]] }
 0x5b9   : > { %s4978_s11 = sld [smem:[#allocation24_spill]] }
 0x5ba   : > { %s4979_s17 = sld [smem:[#allocation21_spill]] }
 0x5be   : > { %s3374_s7 = sand.u32 1, %s4977_s13  }
 0x5bf   : > { %p4980_p8 = scmp.ne.s32.totalorder %s4978_s11, 0  ;;  %s3375_s29 = scalar_lea.sflag [#allocation4], %s3374_s7 }
 0x5c0   : > { %p4981_p10 = scmp.ge.s32.totalorder %s4979_s17, 2 }
 0x5c2   : > { %p3827_p11 = pnand %p4981_p10, %p4980_p8 }
 0x5c4   : > { %p3828_p0 = pneg %p3827_p11 }
 0x5c6   : > { %4175 = dma.done.wait (%p3828_p0), %s3375_s29, 128  }
 0x5c7   : > { %4177 = vsyncadd (%p3828_p0), %s3375_s29, 4294967168  ;;  %s4982_s20 = sld [smem:[#allocation22_spill]]  ;;  %s4984_s17 = smov %s4184_s18 }
 0x5c8   : > { %s4983_s30 = sld [smem:[#allocation23_spill]]  ;;  %s4985_s18 = smov %s4188_s19 }
 0x5cd   : > { %p29_p4 = scmp.ge.s32.totalorder %s4982_s20, 4  }
 0x5ce   : > { %s4986_s19 = smov %s4983_s30 }
 0x5cf   :  { %31 = sbr.rel (!%p29_p4) target bundleno = 16 (0x10), region = 149 }
 0x5d4   :  { %3380 = vsyncpa [#allocation3], 1 }
 0x5d5   :  { %3382 = vsyncpa [#allocation3 + $0x1], 1 }
 0x5d6   :  { %3383 = vsyncpa [#allocation6], 1 }
 0x5d7   :  { %3385 = vsyncpa [#allocation6 + $0x1], 1 }
 0x5d8   :  { %3386 = vsyncpa [#allocation9], 1 }
 0x5d9   :  { %3387 = vsyncpa [#allocation12], 1 }
 0x5da   :  { %3388 = vsyncpa [#allocation4], 1 }
 0x5db   :  { %3390 = vsyncpa [#allocation4 + $0x1], 1 }

</bundles_post_ra>
